<compile_context>
chip_gen: v7x
topology: tpu7x:2x2x1
jax: 0.10.0
libtpu: 0.0.40
codegen_flags: <defaults>
</compile_context>

<pallas_src>
import math

import jax
import jax.numpy as jnp
from jax.experimental import pallas as pl
from jax.experimental.pallas import tpu as pltpu


# ---------------------------------------------------------------------------
# Kernel 1: fused Embedding->LSTM->Linear(H,1) for one block of bn sequences
# ---------------------------------------------------------------------------
def lstm_fused_kernel(ids_ref, proj_ref, whh_ref, b_ref, wout_ref, bout_ref,
                      out_ref, hlast_ref, x_scr):
    """ids_ref (T, bn) int32 token ids (time-major inside the block);
    proj_ref (4H, Vp) bf16 gate-scaled fused Embedding x W_ih^T table;
    whh_ref (4H, H) bf16 gate-scaled W_hh; b_ref (4H, 1) gate-scaled bias;
    wout_ref (H, 1), bout_ref (1, 1) head; out_ref (T, bn) f32 lane-dense out;
    hlast_ref (H, bn) f32; x_scr (T, 4H, bn) f32 hoisted input projection."""
    H = whh_ref.shape[1]
    G = whh_ref.shape[0]                      # 4H
    Vp = proj_ref.shape[1]
    T, _, bn = x_scr.shape

    proj = proj_ref[...]                      # (4H, Vp) bf16
    whh = whh_ref[...]                        # (4H, H)  bf16
    bcol = b_ref[...]                         # (4H, 1)  f32
    wout = wout_ref[...]                      # (H, 1)   f32
    bout = bout_ref[...]                      # (1, 1)   f32

    # sigmoid(z) == 0.5*tanh(z/2) + 0.5; the i/f/o rows of proj/whh/bias were
    # pre-scaled by 0.5 at pack time, so one full-vreg tanh + a VPU affine
    # yields all four gates.  Fixup vectors built once (hoisted).
    row = jax.lax.broadcasted_iota(jnp.int32, (G, 1), 0)
    is_sig = jnp.logical_or(row < 2 * H, row >= 3 * H)
    pscale = jnp.where(is_sig, 0.5, 1.0).astype(jnp.float32)
    pshift = jnp.where(is_sig, 0.5, 0.0).astype(jnp.float32)

    # (1) Hoisted fused Embedding x W_ih projection, off the serial path:
    #     per step a (Vp, bn) bf16 one-hot is built with a VPU compare and
    #     pushed through the MXU against the tiny (4H, Vp) table.
    lane_iota = jax.lax.broadcasted_iota(jnp.int32, (Vp, bn), 0)
    punroll = 4 if T % 4 == 0 else 1

    def proj_block(tb, carry):
        for u in range(punroll):
            t = tb * punroll + u
            ids_row = ids_ref[pl.ds(t, 1), :]                      # (1, bn) int32
            onehot = jnp.where(lane_iota == ids_row, 1.0, 0.0
                               ).astype(jnp.bfloat16)              # (Vp, bn)
            x_scr[t] = jnp.dot(proj, onehot,
                               preferred_element_type=jnp.float32) + bcol
        return carry

    jax.lax.fori_loop(0, T // punroll, proj_block, 0)

    # (2) Recurrence in transposed (H, bn) layout: only the tiny bf16
    #     recurrent matmul + elementwise per step.  Manual 8x unroll lets the
    #     scheduler overlap EUP/VPU of step t with the MXU push of step t+1.
    unroll = 8 if T % 8 == 0 else 1

    def step_block(tb, carry):
        h, c = carry
        for u in range(unroll):
            t = tb * unroll + u
            gates = x_scr[t] + jnp.dot(whh, h.astype(jnp.bfloat16),
                                       preferred_element_type=jnp.float32)
            act = jnp.tanh(gates) * pscale + pshift                # (4H, bn)
            i_g = act[0 * H:1 * H, :]
            f_g = act[1 * H:2 * H, :]
            g_g = act[2 * H:3 * H, :]
            o_g = act[3 * H:4 * H, :]
            c = f_g * c + i_g * g_g
            h = o_g * jnp.tanh(c)                                  # (H, bn)
            # (3) Fused Linear(H,1) head: sublane reduce is free XLU filler
            #     while the recurrence is latency-bound; lane-dense row store.
            red = jnp.sum(h * wout, axis=0, keepdims=True) + bout  # (1, bn)
            out_ref[pl.ds(t, 1), :] = red
        return h, c

    h0 = jnp.zeros((H, bn), jnp.float32)
    h_last, _ = jax.lax.fori_loop(0, T // unroll, step_block, (h0, h0))
    hlast_ref[...] = h_last                                        # (H, bn)


# ---------------------------------------------------------------------------
# Kernel 2 (optional, OFF by default): attention softmax + GraphConv + ReLU.
# This branch never feeds the returned value in the PyTorch forward.
# ---------------------------------------------------------------------------
def attn_gcn_kernel(x_ref, adj_ref, wg_ref, bg_ref, attn_ref, gcn_ref):
    """x_ref (B,m,H); adj_ref (B,m,m); wg_ref (H,H); bg_ref (1,H);
    attn_ref (B,m,m) out; gcn_ref (B,m,H) out.  Single batched invocation."""
    x = x_ref[...]
    adj = adj_ref[...]

    scores = jnp.einsum('bmh,bnh->bmn', x, x,
                        preferred_element_type=jnp.float32)
    scores = scores - jnp.max(scores, axis=-1, keepdims=True)
    p = jnp.exp(scores)
    attn_ref[...] = p / jnp.sum(p, axis=-1, keepdims=True)

    # TODO(synk): GraphConvLayer is defined outside this file; assumed adj @ (x @ W) + b.
    xw = jnp.einsum('bmh,hk->bmk', x, wg_ref[...],
                    preferred_element_type=jnp.float32)            # shared RHS
    h = jnp.einsum('bmn,bnk->bmk', adj, xw,
                   preferred_element_type=jnp.float32) + bg_ref[...]
    gcn_ref[...] = jnp.maximum(h, 0.0)


# ---------------------------------------------------------------------------
# Deterministic parameter construction (synthetic, matches __init__ shapes)
# ---------------------------------------------------------------------------
def _uniform(key, shape, scale):
    return jax.random.uniform(key, shape, jnp.float32, -scale, scale)


def _xavier(key, shape):
    fan_out, fan_in = shape
    a = math.sqrt(6.0 / (fan_in + fan_out))
    return jax.random.uniform(key, shape, jnp.float32, -a, a)


def init_params(key, *, m, n_hidden, embed=300, n_vocab=50, n_months=12):
    H, E = n_hidden, embed
    ks = jax.random.split(key, 10)

    emb_tab = jax.random.normal(ks[0], (n_vocab, E), jnp.float32)
    emb_tab = emb_tab.at[n_vocab - 1].set(0.0)                  # padding_idx row

    w_ih = _xavier(ks[1], (4 * H, E))
    w_hh = _xavier(ks[2], (4 * H, H))
    b_ih = _uniform(ks[3], (4 * H,), 1.0 / math.sqrt(4 * H))
    b_hh = _uniform(ks[4], (4 * H,), 1.0 / math.sqrt(4 * H))

    w_out = _xavier(ks[5], (1, H))                              # self.out
    b_out = _uniform(ks[6], (1,), 1.0)

    w_g = _xavier(ks[7], (H, H))                                # GraphConvLayer(H, H)
    b_g = _uniform(ks[8], (H,), 1.0 / math.sqrt(H))

    adj_raw = jax.random.uniform(ks[9], (n_months, m, m), jnp.float32)
    adjs = adj_raw / jnp.sum(adj_raw, axis=-1, keepdims=True)   # synthetic data.adjs

    return dict(embedding=emb_tab, w_ih=w_ih, w_hh=w_hh, b_ih=b_ih, b_hh=b_hh,
                w_out=w_out, b_out=b_out, w_g=w_g, b_g=b_g, adjs=adjs)


def pack_params(raw):
    """Kernel-ready layouts.  Embedding x W_ih is fused into a tiny (4H, Vp)
    projection table (exact: the lookup is linear selection), transposed for
    the transposed-state kernel, gate-pre-scaled for the sigmoid-as-tanh trick
    (PyTorch gate order i,f,g,o; i/f/o rows x0.5 — exact in bf16), and cast to
    bf16 together with W_hh (the two MXU operands)."""
    w_ih, w_hh = raw["w_ih"], raw["w_hh"]
    H = w_hh.shape[1]
    V = raw["embedding"].shape[0]
    Vp = ((V + 63) // 64) * 64                                  # pad vocab (MXU K)

    gate_scale = jnp.concatenate([jnp.full((H,), 0.5), jnp.full((H,), 0.5),
                                  jnp.ones((H,)), jnp.full((H,), 0.5)])

    proj = raw["embedding"] @ w_ih.T                            # (V, 4H) f32, exact fusion
    proj_t = proj.T * gate_scale[:, None]                       # (4H, V)
    proj_t = jnp.pad(proj_t, ((0, 0), (0, Vp - V))).astype(jnp.bfloat16)

    return dict(
        proj_t=proj_t,                                          # (4H, Vp) bf16
        whh_s=(w_hh * gate_scale[:, None]).astype(jnp.bfloat16),  # (4H, H) bf16
        b_col=((raw["b_ih"] + raw["b_hh"]) * gate_scale).reshape(4 * H, 1),
        wout_col=raw["w_out"].reshape(H, 1),                    # (H, 1)
        bout=raw["b_out"].reshape(1, 1),                        # (1, 1)
        wg=raw["w_g"],                                          # (H, H)
        bg=raw["b_g"].reshape(1, H),                            # (1, H)
        adjs=raw["adjs"],                                       # (12, m, m)
    )


# ---------------------------------------------------------------------------
# Forward pass (glue in JAX, hot path in Pallas)
# ---------------------------------------------------------------------------
def _pick_bn(N):
    # Lane dim of every per-block output is bn, so bn must be a multiple of
    # 128 or equal to N.  Prefer 256 (fills v6e/v7x 256-wide MXU) and nb >= 2
    # (both v7x TensorCores get work); fall back to a single block.
    for bn in (256, 128):
        if N % bn == 0 and N // bn >= 2:
            return bn
    return N


def tl_dynamic_ss_forward(params, x, x2, month_idx, *, compute_aux=False):
    b, w, m = x.shape
    H = params["whh_s"].shape[1]
    G = params["whh_s"].shape[0]
    Vp = params["proj_t"].shape[1]

    # x3 = x2.long().reshape(-1, 64)
    x3 = x2.astype(jnp.int32).reshape(-1, 64)                   # (N, T)
    N, T = x3.shape

    bn = _pick_bn(N)
    nb = N // bn
    # Note: callers with large N should pad N to a multiple of 128 sequences
    # using the padding_idx token (zero embedding row) for best tiling.

    # Only the tiny int32 index array is shuffled into (block, time-major)
    # order; no embedding / projection activation is ever materialized in HBM.
    ids = jnp.swapaxes(x3.reshape(nb, bn, T), 1, 2)             # (nb, T, bn)

    out_tn, hlast_hn = pl.pallas_call(
        lstm_fused_kernel,
        out_shape=(jax.ShapeDtypeStruct((T, N), jnp.float32),
                   jax.ShapeDtypeStruct((H, N), jnp.float32)),
        grid=(nb,),
        in_specs=[
            pl.BlockSpec((None, T, bn), lambda i: (i, 0, 0)),   # token ids
            pl.BlockSpec((G, Vp), lambda i: (0, 0)),            # fused emb x W_ih
            pl.BlockSpec((G, H), lambda i: (0, 0)),             # W_hh (bf16)
            pl.BlockSpec((G, 1), lambda i: (0, 0)),             # fused bias
            pl.BlockSpec((H, 1), lambda i: (0, 0)),             # head weight
            pl.BlockSpec((1, 1), lambda i: (0, 0)),             # head bias
        ],
        out_specs=(
            pl.BlockSpec((T, bn), lambda i: (0, i)),            # lane-dense out
            pl.BlockSpec((H, bn), lambda i: (0, i)),            # last hidden
        ),
        scratch_shapes=[
            pltpu.VMEM((T, G, bn), jnp.float32),                # hoisted projection
        ],
        compiler_params=pltpu.CompilerParams(
            dimension_semantics=("parallel",),
            vmem_limit_bytes=32 * 1024 * 1024),
    )(ids, params["proj_t"], params["whh_s"], params["b_col"],
      params["wout_col"], params["bout"])

    out = jnp.transpose(out_tn)                                 # (N, T)

    if compute_aux:
        # Attention + GraphConv branch of the PyTorch forward; it never feeds
        # the returned value, so it is disabled by default (dead compute).
        out_nlp = jnp.transpose(hlast_hn).reshape(-1, m, H)     # (B, m, H)
        B = out_nlp.shape[0]
        # TODO(synk): month-string -> index lookup and the adjacency-index log
        # file writes are host-side Python side effects with no Pallas
        # equivalent; month_idx arrives as precomputed integer indices.
        adjs = jnp.take(params["adjs"], month_idx, axis=0)      # (B, m, m)
        pl.pallas_call(
            attn_gcn_kernel,
            out_shape=(jax.ShapeDtypeStruct((B, m, m), jnp.float32),
                       jax.ShapeDtypeStruct((B, m, H), jnp.float32)),
            grid=(1,),
            in_specs=[pl.BlockSpec((B, m, H), lambda i: (0, 0, 0)),
                      pl.BlockSpec((B, m, m), lambda i: (0, 0, 0)),
                      pl.BlockSpec((H, H), lambda i: (0, 0)),
                      pl.BlockSpec((1, H), lambda i: (0, 0))],
            out_specs=(pl.BlockSpec((B, m, m), lambda i: (0, 0, 0)),
                       pl.BlockSpec((B, m, H), lambda i: (0, 0, 0))),
        )(out_nlp, adjs, params["wg"], params["bg"])

    # F.dropout: eval-mode no-op.  residual_window == 0 -> residual branch skipped.
    return out, None


# ---------------------------------------------------------------------------
# Pure-JAX reference of the live path (same fused-table / bf16 quantization)
# ---------------------------------------------------------------------------
def reference_forward(raw, x2):
    H = raw["w_hh"].shape[1]
    proj_tab = (raw["embedding"] @ raw["w_ih"].T
                ).astype(jnp.bfloat16).astype(jnp.float32)          # (V, 4H)
    whh = raw["w_hh"].astype(jnp.bfloat16).astype(jnp.float32)      # (4H, H)
    bias = raw["b_ih"] + raw["b_hh"]

    x3 = x2.astype(jnp.int32).reshape(-1, 64)                       # (N, T)
    xg = jnp.take(proj_tab, x3, axis=0) + bias                      # (N, T, 4H)
    N = x3.shape[0]

    def cell(carry, z_in):
        h, c = carry
        z = z_in + h.astype(jnp.bfloat16).astype(jnp.float32) @ whh.T
        i = jax.nn.sigmoid(z[:, 0 * H:1 * H])
        f = jax.nn.sigmoid(z[:, 1 * H:2 * H])
        g = jnp.tanh(z[:, 2 * H:3 * H])
        o = jax.nn.sigmoid(z[:, 3 * H:4 * H])
        c = f * c + i * g
        h = o * jnp.tanh(c)
        return (h, c), h

    init = (jnp.zeros((N, H), jnp.float32), jnp.zeros((N, H), jnp.float32))
    (h_last, _), hseq = jax.lax.scan(cell, init, jnp.swapaxes(xg, 0, 1))
    out = jnp.einsum('tnh,h->nt', hseq, raw["w_out"][0]) + raw["b_out"][0]
    return out, h_last


# ---------------------------------------------------------------------------
if __name__ == "__main__":
    key = jax.random.PRNGKey(0)
    b, w, m = 2, 8, 4          # batch, window, number of nodes (data.m)
    H = 32                     # args.n_hidden
    n_vocab = 50
    T_tokens = 64              # forced by x3 = x2.reshape(-1, 64)

    raw = init_params(jax.random.fold_in(key, 1), m=m, n_hidden=H,
                      n_vocab=n_vocab)
    params = pack_params(raw)

    kx, kt = jax.random.split(jax.random.fold_in(key, 2))
    x = jax.random.normal(kx, (b, w, m), jnp.float32)                    # (batch, window, m)
    x2 = jax.random.randint(kt, (b, T_tokens, m), 0, n_vocab
                            ).astype(jnp.float32)                        # token ids
    month_idx = jnp.array([0, 3], dtype=jnp.int32)                       # per-batch month index

    out, aux = jax.jit(tl_dynamic_ss_forward)(params, x, x2, month_idx)
    out = jax.block_until_ready(out)
    assert out.shape == (b * m, T_tokens), out.shape
    assert aux is None

    ref_out, _ = reference_forward(raw, x2)
    err = float(jnp.max(jnp.abs(out - ref_out)))
    assert err < 2e-2, f"kernel/reference mismatch: max abs err = {err}"

    print("KERNEL_OK")
</pallas_src>

<mosaic_0001>
module attributes {stable_mosaic.version = 11 : i64} {
  func.func @lstm_fused_kernel(%arg0: i32, %arg1: memref<1x64x8xi32, #tpu.memory_space<vmem>>, %arg2: memref<128x64xbf16, #tpu.memory_space<vmem>>, %arg3: memref<128x32xbf16, #tpu.memory_space<vmem>>, %arg4: memref<128x1xf32, #tpu.memory_space<vmem>>, %arg5: memref<32x1xf32, #tpu.memory_space<vmem>>, %arg6: memref<1x1xf32, #tpu.memory_space<vmem>>, %arg7: memref<64x8xf32, #tpu.memory_space<vmem>>, %arg8: memref<32x8xf32, #tpu.memory_space<vmem>>, %arg9: memref<64x128x8xf32, #tpu.memory_space<vmem>>) attributes {dimension_semantics = [#tpu.dimension_semantics<parallel>], iteration_bounds = array<i64: 1>, scalar_prefetch = 0 : i64, scratch_operands = 1 : i64, tpu.core_type = #tpu.core_type<tc>, window_params = [{transform_indices = @transform_0, window_bounds = array<i64: 1, 64, 8>}, {pipeline_mode = #tpu.pipeline_mode<synchronous>, transform_indices = @transform_1, window_bounds = array<i64: 128, 64>}, {pipeline_mode = #tpu.pipeline_mode<synchronous>, transform_indices = @transform_2, window_bounds = array<i64: 128, 32>}, {pipeline_mode = #tpu.pipeline_mode<synchronous>, transform_indices = @transform_3, window_bounds = array<i64: 128, 1>}, {pipeline_mode = #tpu.pipeline_mode<synchronous>, transform_indices = @transform_4, window_bounds = array<i64: 32, 1>}, {pipeline_mode = #tpu.pipeline_mode<synchronous>, transform_indices = @transform_5, window_bounds = array<i64: 1, 1>}, {transform_indices = @transform_6, window_bounds = array<i64: 64, 8>}, {transform_indices = @transform_7, window_bounds = array<i64: 32, 8>}]} {
    %c0 = arith.constant 0 : index
    %c0_0 = arith.constant 0 : index
    %0 = vector.load %arg2[%c0, %c0_0] : memref<128x64xbf16, #tpu.memory_space<vmem>>, vector<128x64xbf16>
    %c0_1 = arith.constant 0 : index
    %c0_2 = arith.constant 0 : index
    %1 = vector.load %arg3[%c0_1, %c0_2] : memref<128x32xbf16, #tpu.memory_space<vmem>>, vector<128x32xbf16>
    %c0_3 = arith.constant 0 : index
    %c0_4 = arith.constant 0 : index
    %2 = vector.load %arg4[%c0_3, %c0_4] : memref<128x1xf32, #tpu.memory_space<vmem>>, vector<128x1xf32>
    %c0_5 = arith.constant 0 : index
    %c0_6 = arith.constant 0 : index
    %3 = vector.load %arg5[%c0_5, %c0_6] : memref<32x1xf32, #tpu.memory_space<vmem>>, vector<32x1xf32>
    %c0_7 = arith.constant 0 : index
    %c0_8 = arith.constant 0 : index
    %4 = vector.load %arg6[%c0_7, %c0_8] : memref<1x1xf32, #tpu.memory_space<vmem>>, vector<1x1xf32>
    %5 = tpu.iota {dimensions = array<i32: 0>} : vector<128x1xi32>
    %c64_i32 = arith.constant 64 : i32
    %6 = vector.broadcast %c64_i32 : i32 to vector<128x1xi32>
    %7 = arith.cmpi slt, %5, %6 : vector<128x1xi32>
    %c96_i32 = arith.constant 96 : i32
    %8 = vector.broadcast %c96_i32 : i32 to vector<128x1xi32>
    %9 = arith.cmpi sge, %5, %8 : vector<128x1xi32>
    %10 = arith.ori %7, %9 : vector<128x1xi1>
    %cst = arith.constant 5.000000e-01 : f32
    %cst_9 = arith.constant 1.000000e+00 : f32
    %11 = vector.broadcast %cst : f32 to vector<128x1xf32>
    %12 = vector.broadcast %cst_9 : f32 to vector<128x1xf32>
    %13 = arith.select %10, %11, %12 : vector<128x1xi1>, vector<128x1xf32>
    %cst_10 = arith.constant 5.000000e-01 : f32
    %cst_11 = arith.constant 0.000000e+00 : f32
    %14 = vector.broadcast %cst_10 : f32 to vector<128x1xf32>
    %15 = vector.broadcast %cst_11 : f32 to vector<128x1xf32>
    %16 = arith.select %10, %14, %15 : vector<128x1xi1>, vector<128x1xf32>
    %17 = tpu.iota {dimensions = array<i32: 0>} : vector<64x8xi32>
    %c0_i32 = arith.constant 0 : i32
    %c16_i32 = arith.constant 16 : i32
    %18 = arith.addi %c0_i32, %c16_i32 : i32
    %c1_i32 = arith.constant 1 : i32
    scf.for %arg10 = %c0_i32 to %18 step %c1_i32  : i32 {
      %c4_i32 = arith.constant 4 : i32
      %23 = arith.muli %arg10, %c4_i32 : i32
      %c0_i32_19 = arith.constant 0 : i32
      %24 = arith.addi %23, %c0_i32_19 : i32
      %c0_20 = arith.constant 0 : index
      %25 = arith.index_cast %24 : i32 to index
      %c0_21 = arith.constant 0 : index
      %26 = vector.load %arg1[%c0_20, %25, %c0_21] : memref<1x64x8xi32, #tpu.memory_space<vmem>>, vector<1x1x8xi32>
      %27 = vector.shape_cast %26 : vector<1x1x8xi32> to vector<1x8xi32>
      %28 = vector.broadcast %27 : vector<1x8xi32> to vector<64x8xi32>
      %29 = arith.cmpi eq, %17, %28 : vector<64x8xi32>
      %cst_22 = arith.constant 1.000000e+00 : f32
      %cst_23 = arith.constant 0.000000e+00 : f32
      %30 = vector.broadcast %cst_22 : f32 to vector<64x8xf32>
      %31 = vector.broadcast %cst_23 : f32 to vector<64x8xf32>
      %32 = arith.select %29, %30, %31 : vector<64x8xi1>, vector<64x8xf32>
      %33 = arith.truncf %32 : vector<64x8xf32> to vector<64x8xbf16>
      %cst_24 = arith.constant dense<0.000000e+00> : vector<128x8xf32>
      %34 = tpu.matmul %0, %33, %cst_24 {dimension_numbers = #tpu.dot_dimension_numbers<[1], [0], [0], [1], [0, 0, 1, 1], [], []>} : vector<128x64xbf16>, vector<64x8xbf16>, vector<128x8xf32> -> vector<128x8xf32>
      %35 = vector.broadcast %2 : vector<128x1xf32> to vector<128x8xf32>
      %36 = arith.addf %34, %35 : vector<128x8xf32>
      %37 = arith.index_cast %24 : i32 to index
      %c0_25 = arith.constant 0 : index
      %c0_26 = arith.constant 0 : index
      %38 = vector.load %arg9[%37, %c0_25, %c0_26] : memref<64x128x8xf32, #tpu.memory_space<vmem>>, vector<1x128x8xf32>
      %39 = vector.shape_cast %38 : vector<1x128x8xf32> to vector<128x8xf32>
      %40 = vector.shape_cast %36 : vector<128x8xf32> to vector<1x128x8xf32>
      tpu.vector_store %arg9[%37, %c0_25, %c0_26], %40 {strides = array<i32>} : memref<64x128x8xf32, #tpu.memory_space<vmem>>, vector<1x128x8xf32>,
      %c4_i32_27 = arith.constant 4 : i32
      %41 = arith.muli %arg10, %c4_i32_27 : i32
      %c1_i32_28 = arith.constant 1 : i32
      %42 = arith.addi %41, %c1_i32_28 : i32
      %c0_29 = arith.constant 0 : index
      %43 = arith.index_cast %42 : i32 to index
      %c0_30 = arith.constant 0 : index
      %44 = vector.load %arg1[%c0_29, %43, %c0_30] : memref<1x64x8xi32, #tpu.memory_space<vmem>>, vector<1x1x8xi32>
      %45 = vector.shape_cast %44 : vector<1x1x8xi32> to vector<1x8xi32>
      %46 = vector.broadcast %45 : vector<1x8xi32> to vector<64x8xi32>
      %47 = arith.cmpi eq, %17, %46 : vector<64x8xi32>
      %cst_31 = arith.constant 1.000000e+00 : f32
      %cst_32 = arith.constant 0.000000e+00 : f32
      %48 = vector.broadcast %cst_31 : f32 to vector<64x8xf32>
      %49 = vector.broadcast %cst_32 : f32 to vector<64x8xf32>
      %50 = arith.select %47, %48, %49 : vector<64x8xi1>, vector<64x8xf32>
      %51 = arith.truncf %50 : vector<64x8xf32> to vector<64x8xbf16>
      %cst_33 = arith.constant dense<0.000000e+00> : vector<128x8xf32>
      %52 = tpu.matmul %0, %51, %cst_33 {dimension_numbers = #tpu.dot_dimension_numbers<[1], [0], [0], [1], [0, 0, 1, 1], [], []>} : vector<128x64xbf16>, vector<64x8xbf16>, vector<128x8xf32> -> vector<128x8xf32>
      %53 = vector.broadcast %2 : vector<128x1xf32> to vector<128x8xf32>
      %54 = arith.addf %52, %53 : vector<128x8xf32>
      %55 = arith.index_cast %42 : i32 to index
      %c0_34 = arith.constant 0 : index
      %c0_35 = arith.constant 0 : index
      %56 = vector.load %arg9[%55, %c0_34, %c0_35] : memref<64x128x8xf32, #tpu.memory_space<vmem>>, vector<1x128x8xf32>
      %57 = vector.shape_cast %56 : vector<1x128x8xf32> to vector<128x8xf32>
      %58 = vector.shape_cast %54 : vector<128x8xf32> to vector<1x128x8xf32>
      tpu.vector_store %arg9[%55, %c0_34, %c0_35], %58 {strides = array<i32>} : memref<64x128x8xf32, #tpu.memory_space<vmem>>, vector<1x128x8xf32>,
      %c4_i32_36 = arith.constant 4 : i32
      %59 = arith.muli %arg10, %c4_i32_36 : i32
      %c2_i32 = arith.constant 2 : i32
      %60 = arith.addi %59, %c2_i32 : i32
      %c0_37 = arith.constant 0 : index
      %61 = arith.index_cast %60 : i32 to index
      %c0_38 = arith.constant 0 : index
      %62 = vector.load %arg1[%c0_37, %61, %c0_38] : memref<1x64x8xi32, #tpu.memory_space<vmem>>, vector<1x1x8xi32>
      %63 = vector.shape_cast %62 : vector<1x1x8xi32> to vector<1x8xi32>
      %64 = vector.broadcast %63 : vector<1x8xi32> to vector<64x8xi32>
      %65 = arith.cmpi eq, %17, %64 : vector<64x8xi32>
      %cst_39 = arith.constant 1.000000e+00 : f32
      %cst_40 = arith.constant 0.000000e+00 : f32
      %66 = vector.broadcast %cst_39 : f32 to vector<64x8xf32>
      %67 = vector.broadcast %cst_40 : f32 to vector<64x8xf32>
      %68 = arith.select %65, %66, %67 : vector<64x8xi1>, vector<64x8xf32>
      %69 = arith.truncf %68 : vector<64x8xf32> to vector<64x8xbf16>
      %cst_41 = arith.constant dense<0.000000e+00> : vector<128x8xf32>
      %70 = tpu.matmul %0, %69, %cst_41 {dimension_numbers = #tpu.dot_dimension_numbers<[1], [0], [0], [1], [0, 0, 1, 1], [], []>} : vector<128x64xbf16>, vector<64x8xbf16>, vector<128x8xf32> -> vector<128x8xf32>
      %71 = vector.broadcast %2 : vector<128x1xf32> to vector<128x8xf32>
      %72 = arith.addf %70, %71 : vector<128x8xf32>
      %73 = arith.index_cast %60 : i32 to index
      %c0_42 = arith.constant 0 : index
      %c0_43 = arith.constant 0 : index
      %74 = vector.load %arg9[%73, %c0_42, %c0_43] : memref<64x128x8xf32, #tpu.memory_space<vmem>>, vector<1x128x8xf32>
      %75 = vector.shape_cast %74 : vector<1x128x8xf32> to vector<128x8xf32>
      %76 = vector.shape_cast %72 : vector<128x8xf32> to vector<1x128x8xf32>
      tpu.vector_store %arg9[%73, %c0_42, %c0_43], %76 {strides = array<i32>} : memref<64x128x8xf32, #tpu.memory_space<vmem>>, vector<1x128x8xf32>,
      %c4_i32_44 = arith.constant 4 : i32
      %77 = arith.muli %arg10, %c4_i32_44 : i32
      %c3_i32 = arith.constant 3 : i32
      %78 = arith.addi %77, %c3_i32 : i32
      %c0_45 = arith.constant 0 : index
      %79 = arith.index_cast %78 : i32 to index
      %c0_46 = arith.constant 0 : index
      %80 = vector.load %arg1[%c0_45, %79, %c0_46] : memref<1x64x8xi32, #tpu.memory_space<vmem>>, vector<1x1x8xi32>
      %81 = vector.shape_cast %80 : vector<1x1x8xi32> to vector<1x8xi32>
      %82 = vector.broadcast %81 : vector<1x8xi32> to vector<64x8xi32>
      %83 = arith.cmpi eq, %17, %82 : vector<64x8xi32>
      %cst_47 = arith.constant 1.000000e+00 : f32
      %cst_48 = arith.constant 0.000000e+00 : f32
      %84 = vector.broadcast %cst_47 : f32 to vector<64x8xf32>
      %85 = vector.broadcast %cst_48 : f32 to vector<64x8xf32>
      %86 = arith.select %83, %84, %85 : vector<64x8xi1>, vector<64x8xf32>
      %87 = arith.truncf %86 : vector<64x8xf32> to vector<64x8xbf16>
      %cst_49 = arith.constant dense<0.000000e+00> : vector<128x8xf32>
      %88 = tpu.matmul %0, %87, %cst_49 {dimension_numbers = #tpu.dot_dimension_numbers<[1], [0], [0], [1], [0, 0, 1, 1], [], []>} : vector<128x64xbf16>, vector<64x8xbf16>, vector<128x8xf32> -> vector<128x8xf32>
      %89 = vector.broadcast %2 : vector<128x1xf32> to vector<128x8xf32>
      %90 = arith.addf %88, %89 : vector<128x8xf32>
      %91 = arith.index_cast %78 : i32 to index
      %c0_50 = arith.constant 0 : index
      %c0_51 = arith.constant 0 : index
      %92 = vector.load %arg9[%91, %c0_50, %c0_51] : memref<64x128x8xf32, #tpu.memory_space<vmem>>, vector<1x128x8xf32>
      %93 = vector.shape_cast %92 : vector<1x128x8xf32> to vector<128x8xf32>
      %94 = vector.shape_cast %90 : vector<128x8xf32> to vector<1x128x8xf32>
      tpu.vector_store %arg9[%91, %c0_50, %c0_51], %94 {strides = array<i32>} : memref<64x128x8xf32, #tpu.memory_space<vmem>>, vector<1x128x8xf32>,
    }
    %c16_i32_12 = arith.constant 16 : i32
    %cst_13 = arith.constant 0.000000e+00 : f32
    %19 = vector.broadcast %cst_13 : f32 to vector<32x8xf32>
    %c0_i32_14 = arith.constant 0 : i32
    %c8_i32 = arith.constant 8 : i32
    %20 = arith.addi %c0_i32_14, %c8_i32 : i32
    %c1_i32_15 = arith.constant 1 : i32
    %21:2 = scf.for %arg10 = %c0_i32_14 to %20 step %c1_i32_15 iter_args(%arg11 = %19, %arg12 = %19) -> (vector<32x8xf32>, vector<32x8xf32>)  : i32 {
      %c8_i32_19 = arith.constant 8 : i32
      %23 = arith.muli %arg10, %c8_i32_19 : i32
      %c0_i32_20 = arith.constant 0 : i32
      %24 = arith.addi %23, %c0_i32_20 : i32
      %25 = arith.index_cast %24 : i32 to index
      %c0_21 = arith.constant 0 : index
      %c0_22 = arith.constant 0 : index
      %26 = vector.load %arg9[%25, %c0_21, %c0_22] : memref<64x128x8xf32, #tpu.memory_space<vmem>>, vector<1x128x8xf32>
      %27 = vector.shape_cast %26 : vector<1x128x8xf32> to vector<128x8xf32>
      %28 = arith.truncf %arg11 : vector<32x8xf32> to vector<32x8xbf16>
      %cst_23 = arith.constant dense<0.000000e+00> : vector<128x8xf32>
      %29 = tpu.matmul %1, %28, %cst_23 {dimension_numbers = #tpu.dot_dimension_numbers<[1], [0], [0], [1], [0, 0, 1, 1], [], []>} : vector<128x32xbf16>, vector<32x8xbf16>, vector<128x8xf32> -> vector<128x8xf32>
      %30 = arith.addf %27, %29 : vector<128x8xf32>
      %31 = math.tanh %30 : vector<128x8xf32>
      %32 = vector.broadcast %13 : vector<128x1xf32> to vector<128x8xf32>
      %33 = arith.mulf %31, %32 : vector<128x8xf32>
      %34 = vector.broadcast %16 : vector<128x1xf32> to vector<128x8xf32>
      %35 = arith.addf %33, %34 : vector<128x8xf32>
      %36 = vector.extract_strided_slice %35 {offsets = [0, 0], sizes = [32, 8], strides = [1, 1]} : vector<128x8xf32> to vector<32x8xf32>
      %37 = vector.extract_strided_slice %35 {offsets = [32, 0], sizes = [32, 8], strides = [1, 1]} : vector<128x8xf32> to vector<32x8xf32>
      %38 = vector.extract_strided_slice %35 {offsets = [64, 0], sizes = [32, 8], strides = [1, 1]} : vector<128x8xf32> to vector<32x8xf32>
      %39 = vector.extract_strided_slice %35 {offsets = [96, 0], sizes = [32, 8], strides = [1, 1]} : vector<128x8xf32> to vector<32x8xf32>
      %40 = arith.mulf %37, %arg12 : vector<32x8xf32>
      %41 = arith.mulf %36, %38 : vector<32x8xf32>
      %42 = arith.addf %40, %41 : vector<32x8xf32>
      %43 = math.tanh %42 : vector<32x8xf32>
      %44 = arith.mulf %39, %43 : vector<32x8xf32>
      %45 = vector.broadcast %3 : vector<32x1xf32> to vector<32x8xf32>
      %46 = arith.mulf %44, %45 : vector<32x8xf32>
      %cst_24 = arith.constant dense<0.000000e+00> : vector<8xf32>
      %47 = vector.multi_reduction <add>, %46, %cst_24 [0] : vector<32x8xf32> to vector<8xf32>
      %48 = vector.shape_cast %47 : vector<8xf32> to vector<1x8xf32>
      %49 = vector.broadcast %4 : vector<1x1xf32> to vector<1x8xf32>
      %50 = arith.addf %48, %49 : vector<1x8xf32>
      %51 = arith.index_cast %24 : i32 to index
      %c0_25 = arith.constant 0 : index
      %52 = vector.load %arg7[%51, %c0_25] : memref<64x8xf32, #tpu.memory_space<vmem>>, vector<1x8xf32>
      tpu.vector_store %arg7[%51, %c0_25], %50 {strides = array<i32>} : memref<64x8xf32, #tpu.memory_space<vmem>>, vector<1x8xf32>,
      %c8_i32_26 = arith.constant 8 : i32
      %53 = arith.muli %arg10, %c8_i32_26 : i32
      %c1_i32_27 = arith.constant 1 : i32
      %54 = arith.addi %53, %c1_i32_27 : i32
      %55 = arith.index_cast %54 : i32 to index
      %c0_28 = arith.constant 0 : index
      %c0_29 = arith.constant 0 : index
      %56 = vector.load %arg9[%55, %c0_28, %c0_29] : memref<64x128x8xf32, #tpu.memory_space<vmem>>, vector<1x128x8xf32>
      %57 = vector.shape_cast %56 : vector<1x128x8xf32> to vector<128x8xf32>
      %58 = arith.truncf %44 : vector<32x8xf32> to vector<32x8xbf16>
      %cst_30 = arith.constant dense<0.000000e+00> : vector<128x8xf32>
      %59 = tpu.matmul %1, %58, %cst_30 {dimension_numbers = #tpu.dot_dimension_numbers<[1], [0], [0], [1], [0, 0, 1, 1], [], []>} : vector<128x32xbf16>, vector<32x8xbf16>, vector<128x8xf32> -> vector<128x8xf32>
      %60 = arith.addf %57, %59 : vector<128x8xf32>
      %61 = math.tanh %60 : vector<128x8xf32>
      %62 = vector.broadcast %13 : vector<128x1xf32> to vector<128x8xf32>
      %63 = arith.mulf %61, %62 : vector<128x8xf32>
      %64 = vector.broadcast %16 : vector<128x1xf32> to vector<128x8xf32>
      %65 = arith.addf %63, %64 : vector<128x8xf32>
      %66 = vector.extract_strided_slice %65 {offsets = [0, 0], sizes = [32, 8], strides = [1, 1]} : vector<128x8xf32> to vector<32x8xf32>
      %67 = vector.extract_strided_slice %65 {offsets = [32, 0], sizes = [32, 8], strides = [1, 1]} : vector<128x8xf32> to vector<32x8xf32>
      %68 = vector.extract_strided_slice %65 {offsets = [64, 0], sizes = [32, 8], strides = [1, 1]} : vector<128x8xf32> to vector<32x8xf32>
      %69 = vector.extract_strided_slice %65 {offsets = [96, 0], sizes = [32, 8], strides = [1, 1]} : vector<128x8xf32> to vector<32x8xf32>
      %70 = arith.mulf %67, %42 : vector<32x8xf32>
      %71 = arith.mulf %66, %68 : vector<32x8xf32>
      %72 = arith.addf %70, %71 : vector<32x8xf32>
      %73 = math.tanh %72 : vector<32x8xf32>
      %74 = arith.mulf %69, %73 : vector<32x8xf32>
      %75 = vector.broadcast %3 : vector<32x1xf32> to vector<32x8xf32>
      %76 = arith.mulf %74, %75 : vector<32x8xf32>
      %cst_31 = arith.constant dense<0.000000e+00> : vector<8xf32>
      %77 = vector.multi_reduction <add>, %76, %cst_31 [0] : vector<32x8xf32> to vector<8xf32>
      %78 = vector.shape_cast %77 : vector<8xf32> to vector<1x8xf32>
      %79 = vector.broadcast %4 : vector<1x1xf32> to vector<1x8xf32>
      %80 = arith.addf %78, %79 : vector<1x8xf32>
      %81 = arith.index_cast %54 : i32 to index
      %c0_32 = arith.constant 0 : index
      %82 = vector.load %arg7[%81, %c0_32] : memref<64x8xf32, #tpu.memory_space<vmem>>, vector<1x8xf32>
      tpu.vector_store %arg7[%81, %c0_32], %80 {strides = array<i32>} : memref<64x8xf32, #tpu.memory_space<vmem>>, vector<1x8xf32>,
      %c8_i32_33 = arith.constant 8 : i32
      %83 = arith.muli %arg10, %c8_i32_33 : i32
      %c2_i32 = arith.constant 2 : i32
      %84 = arith.addi %83, %c2_i32 : i32
      %85 = arith.index_cast %84 : i32 to index
      %c0_34 = arith.constant 0 : index
      %c0_35 = arith.constant 0 : index
      %86 = vector.load %arg9[%85, %c0_34, %c0_35] : memref<64x128x8xf32, #tpu.memory_space<vmem>>, vector<1x128x8xf32>
      %87 = vector.shape_cast %86 : vector<1x128x8xf32> to vector<128x8xf32>
      %88 = arith.truncf %74 : vector<32x8xf32> to vector<32x8xbf16>
      %cst_36 = arith.constant dense<0.000000e+00> : vector<128x8xf32>
      %89 = tpu.matmul %1, %88, %cst_36 {dimension_numbers = #tpu.dot_dimension_numbers<[1], [0], [0], [1], [0, 0, 1, 1], [], []>} : vector<128x32xbf16>, vector<32x8xbf16>, vector<128x8xf32> -> vector<128x8xf32>
      %90 = arith.addf %87, %89 : vector<128x8xf32>
      %91 = math.tanh %90 : vector<128x8xf32>
      %92 = vector.broadcast %13 : vector<128x1xf32> to vector<128x8xf32>
      %93 = arith.mulf %91, %92 : vector<128x8xf32>
      %94 = vector.broadcast %16 : vector<128x1xf32> to vector<128x8xf32>
      %95 = arith.addf %93, %94 : vector<128x8xf32>
      %96 = vector.extract_strided_slice %95 {offsets = [0, 0], sizes = [32, 8], strides = [1, 1]} : vector<128x8xf32> to vector<32x8xf32>
      %97 = vector.extract_strided_slice %95 {offsets = [32, 0], sizes = [32, 8], strides = [1, 1]} : vector<128x8xf32> to vector<32x8xf32>
      %98 = vector.extract_strided_slice %95 {offsets = [64, 0], sizes = [32, 8], strides = [1, 1]} : vector<128x8xf32> to vector<32x8xf32>
      %99 = vector.extract_strided_slice %95 {offsets = [96, 0], sizes = [32, 8], strides = [1, 1]} : vector<128x8xf32> to vector<32x8xf32>
      %100 = arith.mulf %97, %72 : vector<32x8xf32>
      %101 = arith.mulf %96, %98 : vector<32x8xf32>
      %102 = arith.addf %100, %101 : vector<32x8xf32>
      %103 = math.tanh %102 : vector<32x8xf32>
      %104 = arith.mulf %99, %103 : vector<32x8xf32>
      %105 = vector.broadcast %3 : vector<32x1xf32> to vector<32x8xf32>
      %106 = arith.mulf %104, %105 : vector<32x8xf32>
      %cst_37 = arith.constant dense<0.000000e+00> : vector<8xf32>
      %107 = vector.multi_reduction <add>, %106, %cst_37 [0] : vector<32x8xf32> to vector<8xf32>
      %108 = vector.shape_cast %107 : vector<8xf32> to vector<1x8xf32>
      %109 = vector.broadcast %4 : vector<1x1xf32> to vector<1x8xf32>
      %110 = arith.addf %108, %109 : vector<1x8xf32>
      %111 = arith.index_cast %84 : i32 to index
      %c0_38 = arith.constant 0 : index
      %112 = vector.load %arg7[%111, %c0_38] : memref<64x8xf32, #tpu.memory_space<vmem>>, vector<1x8xf32>
      tpu.vector_store %arg7[%111, %c0_38], %110 {strides = array<i32>} : memref<64x8xf32, #tpu.memory_space<vmem>>, vector<1x8xf32>,
      %c8_i32_39 = arith.constant 8 : i32
      %113 = arith.muli %arg10, %c8_i32_39 : i32
      %c3_i32 = arith.constant 3 : i32
      %114 = arith.addi %113, %c3_i32 : i32
      %115 = arith.index_cast %114 : i32 to index
      %c0_40 = arith.constant 0 : index
      %c0_41 = arith.constant 0 : index
      %116 = vector.load %arg9[%115, %c0_40, %c0_41] : memref<64x128x8xf32, #tpu.memory_space<vmem>>, vector<1x128x8xf32>
      %117 = vector.shape_cast %116 : vector<1x128x8xf32> to vector<128x8xf32>
      %118 = arith.truncf %104 : vector<32x8xf32> to vector<32x8xbf16>
      %cst_42 = arith.constant dense<0.000000e+00> : vector<128x8xf32>
      %119 = tpu.matmul %1, %118, %cst_42 {dimension_numbers = #tpu.dot_dimension_numbers<[1], [0], [0], [1], [0, 0, 1, 1], [], []>} : vector<128x32xbf16>, vector<32x8xbf16>, vector<128x8xf32> -> vector<128x8xf32>
      %120 = arith.addf %117, %119 : vector<128x8xf32>
      %121 = math.tanh %120 : vector<128x8xf32>
      %122 = vector.broadcast %13 : vector<128x1xf32> to vector<128x8xf32>
      %123 = arith.mulf %121, %122 : vector<128x8xf32>
      %124 = vector.broadcast %16 : vector<128x1xf32> to vector<128x8xf32>
      %125 = arith.addf %123, %124 : vector<128x8xf32>
      %126 = vector.extract_strided_slice %125 {offsets = [0, 0], sizes = [32, 8], strides = [1, 1]} : vector<128x8xf32> to vector<32x8xf32>
      %127 = vector.extract_strided_slice %125 {offsets = [32, 0], sizes = [32, 8], strides = [1, 1]} : vector<128x8xf32> to vector<32x8xf32>
      %128 = vector.extract_strided_slice %125 {offsets = [64, 0], sizes = [32, 8], strides = [1, 1]} : vector<128x8xf32> to vector<32x8xf32>
      %129 = vector.extract_strided_slice %125 {offsets = [96, 0], sizes = [32, 8], strides = [1, 1]} : vector<128x8xf32> to vector<32x8xf32>
      %130 = arith.mulf %127, %102 : vector<32x8xf32>
      %131 = arith.mulf %126, %128 : vector<32x8xf32>
      %132 = arith.addf %130, %131 : vector<32x8xf32>
      %133 = math.tanh %132 : vector<32x8xf32>
      %134 = arith.mulf %129, %133 : vector<32x8xf32>
      %135 = vector.broadcast %3 : vector<32x1xf32> to vector<32x8xf32>
      %136 = arith.mulf %134, %135 : vector<32x8xf32>
      %cst_43 = arith.constant dense<0.000000e+00> : vector<8xf32>
      %137 = vector.multi_reduction <add>, %136, %cst_43 [0] : vector<32x8xf32> to vector<8xf32>
      %138 = vector.shape_cast %137 : vector<8xf32> to vector<1x8xf32>
      %139 = vector.broadcast %4 : vector<1x1xf32> to vector<1x8xf32>
      %140 = arith.addf %138, %139 : vector<1x8xf32>
      %141 = arith.index_cast %114 : i32 to index
      %c0_44 = arith.constant 0 : index
      %142 = vector.load %arg7[%141, %c0_44] : memref<64x8xf32, #tpu.memory_space<vmem>>, vector<1x8xf32>
      tpu.vector_store %arg7[%141, %c0_44], %140 {strides = array<i32>} : memref<64x8xf32, #tpu.memory_space<vmem>>, vector<1x8xf32>,
      %c8_i32_45 = arith.constant 8 : i32
      %143 = arith.muli %arg10, %c8_i32_45 : i32
      %c4_i32 = arith.constant 4 : i32
      %144 = arith.addi %143, %c4_i32 : i32
      %145 = arith.index_cast %144 : i32 to index
      %c0_46 = arith.constant 0 : index
      %c0_47 = arith.constant 0 : index
      %146 = vector.load %arg9[%145, %c0_46, %c0_47] : memref<64x128x8xf32, #tpu.memory_space<vmem>>, vector<1x128x8xf32>
      %147 = vector.shape_cast %146 : vector<1x128x8xf32> to vector<128x8xf32>
      %148 = arith.truncf %134 : vector<32x8xf32> to vector<32x8xbf16>
      %cst_48 = arith.constant dense<0.000000e+00> : vector<128x8xf32>
      %149 = tpu.matmul %1, %148, %cst_48 {dimension_numbers = #tpu.dot_dimension_numbers<[1], [0], [0], [1], [0, 0, 1, 1], [], []>} : vector<128x32xbf16>, vector<32x8xbf16>, vector<128x8xf32> -> vector<128x8xf32>
      %150 = arith.addf %147, %149 : vector<128x8xf32>
      %151 = math.tanh %150 : vector<128x8xf32>
      %152 = vector.broadcast %13 : vector<128x1xf32> to vector<128x8xf32>
      %153 = arith.mulf %151, %152 : vector<128x8xf32>
      %154 = vector.broadcast %16 : vector<128x1xf32> to vector<128x8xf32>
      %155 = arith.addf %153, %154 : vector<128x8xf32>
      %156 = vector.extract_strided_slice %155 {offsets = [0, 0], sizes = [32, 8], strides = [1, 1]} : vector<128x8xf32> to vector<32x8xf32>
      %157 = vector.extract_strided_slice %155 {offsets = [32, 0], sizes = [32, 8], strides = [1, 1]} : vector<128x8xf32> to vector<32x8xf32>
      %158 = vector.extract_strided_slice %155 {offsets = [64, 0], sizes = [32, 8], strides = [1, 1]} : vector<128x8xf32> to vector<32x8xf32>
      %159 = vector.extract_strided_slice %155 {offsets = [96, 0], sizes = [32, 8], strides = [1, 1]} : vector<128x8xf32> to vector<32x8xf32>
      %160 = arith.mulf %157, %132 : vector<32x8xf32>
      %161 = arith.mulf %156, %158 : vector<32x8xf32>
      %162 = arith.addf %160, %161 : vector<32x8xf32>
      %163 = math.tanh %162 : vector<32x8xf32>
      %164 = arith.mulf %159, %163 : vector<32x8xf32>
      %165 = vector.broadcast %3 : vector<32x1xf32> to vector<32x8xf32>
      %166 = arith.mulf %164, %165 : vector<32x8xf32>
      %cst_49 = arith.constant dense<0.000000e+00> : vector<8xf32>
      %167 = vector.multi_reduction <add>, %166, %cst_49 [0] : vector<32x8xf32> to vector<8xf32>
      %168 = vector.shape_cast %167 : vector<8xf32> to vector<1x8xf32>
      %169 = vector.broadcast %4 : vector<1x1xf32> to vector<1x8xf32>
      %170 = arith.addf %168, %169 : vector<1x8xf32>
      %171 = arith.index_cast %144 : i32 to index
      %c0_50 = arith.constant 0 : index
      %172 = vector.load %arg7[%171, %c0_50] : memref<64x8xf32, #tpu.memory_space<vmem>>, vector<1x8xf32>
      tpu.vector_store %arg7[%171, %c0_50], %170 {strides = array<i32>} : memref<64x8xf32, #tpu.memory_space<vmem>>, vector<1x8xf32>,
      %c8_i32_51 = arith.constant 8 : i32
      %173 = arith.muli %arg10, %c8_i32_51 : i32
      %c5_i32 = arith.constant 5 : i32
      %174 = arith.addi %173, %c5_i32 : i32
      %175 = arith.index_cast %174 : i32 to index
      %c0_52 = arith.constant 0 : index
      %c0_53 = arith.constant 0 : index
      %176 = vector.load %arg9[%175, %c0_52, %c0_53] : memref<64x128x8xf32, #tpu.memory_space<vmem>>, vector<1x128x8xf32>
      %177 = vector.shape_cast %176 : vector<1x128x8xf32> to vector<128x8xf32>
      %178 = arith.truncf %164 : vector<32x8xf32> to vector<32x8xbf16>
      %cst_54 = arith.constant dense<0.000000e+00> : vector<128x8xf32>
      %179 = tpu.matmul %1, %178, %cst_54 {dimension_numbers = #tpu.dot_dimension_numbers<[1], [0], [0], [1], [0, 0, 1, 1], [], []>} : vector<128x32xbf16>, vector<32x8xbf16>, vector<128x8xf32> -> vector<128x8xf32>
      %180 = arith.addf %177, %179 : vector<128x8xf32>
      %181 = math.tanh %180 : vector<128x8xf32>
      %182 = vector.broadcast %13 : vector<128x1xf32> to vector<128x8xf32>
      %183 = arith.mulf %181, %182 : vector<128x8xf32>
      %184 = vector.broadcast %16 : vector<128x1xf32> to vector<128x8xf32>
      %185 = arith.addf %183, %184 : vector<128x8xf32>
      %186 = vector.extract_strided_slice %185 {offsets = [0, 0], sizes = [32, 8], strides = [1, 1]} : vector<128x8xf32> to vector<32x8xf32>
      %187 = vector.extract_strided_slice %185 {offsets = [32, 0], sizes = [32, 8], strides = [1, 1]} : vector<128x8xf32> to vector<32x8xf32>
      %188 = vector.extract_strided_slice %185 {offsets = [64, 0], sizes = [32, 8], strides = [1, 1]} : vector<128x8xf32> to vector<32x8xf32>
      %189 = vector.extract_strided_slice %185 {offsets = [96, 0], sizes = [32, 8], strides = [1, 1]} : vector<128x8xf32> to vector<32x8xf32>
      %190 = arith.mulf %187, %162 : vector<32x8xf32>
      %191 = arith.mulf %186, %188 : vector<32x8xf32>
      %192 = arith.addf %190, %191 : vector<32x8xf32>
      %193 = math.tanh %192 : vector<32x8xf32>
      %194 = arith.mulf %189, %193 : vector<32x8xf32>
      %195 = vector.broadcast %3 : vector<32x1xf32> to vector<32x8xf32>
      %196 = arith.mulf %194, %195 : vector<32x8xf32>
      %cst_55 = arith.constant dense<0.000000e+00> : vector<8xf32>
      %197 = vector.multi_reduction <add>, %196, %cst_55 [0] : vector<32x8xf32> to vector<8xf32>
      %198 = vector.shape_cast %197 : vector<8xf32> to vector<1x8xf32>
      %199 = vector.broadcast %4 : vector<1x1xf32> to vector<1x8xf32>
      %200 = arith.addf %198, %199 : vector<1x8xf32>
      %201 = arith.index_cast %174 : i32 to index
      %c0_56 = arith.constant 0 : index
      %202 = vector.load %arg7[%201, %c0_56] : memref<64x8xf32, #tpu.memory_space<vmem>>, vector<1x8xf32>
      tpu.vector_store %arg7[%201, %c0_56], %200 {strides = array<i32>} : memref<64x8xf32, #tpu.memory_space<vmem>>, vector<1x8xf32>,
      %c8_i32_57 = arith.constant 8 : i32
      %203 = arith.muli %arg10, %c8_i32_57 : i32
      %c6_i32 = arith.constant 6 : i32
      %204 = arith.addi %203, %c6_i32 : i32
      %205 = arith.index_cast %204 : i32 to index
      %c0_58 = arith.constant 0 : index
      %c0_59 = arith.constant 0 : index
      %206 = vector.load %arg9[%205, %c0_58, %c0_59] : memref<64x128x8xf32, #tpu.memory_space<vmem>>, vector<1x128x8xf32>
      %207 = vector.shape_cast %206 : vector<1x128x8xf32> to vector<128x8xf32>
      %208 = arith.truncf %194 : vector<32x8xf32> to vector<32x8xbf16>
      %cst_60 = arith.constant dense<0.000000e+00> : vector<128x8xf32>
      %209 = tpu.matmul %1, %208, %cst_60 {dimension_numbers = #tpu.dot_dimension_numbers<[1], [0], [0], [1], [0, 0, 1, 1], [], []>} : vector<128x32xbf16>, vector<32x8xbf16>, vector<128x8xf32> -> vector<128x8xf32>
      %210 = arith.addf %207, %209 : vector<128x8xf32>
      %211 = math.tanh %210 : vector<128x8xf32>
      %212 = vector.broadcast %13 : vector<128x1xf32> to vector<128x8xf32>
      %213 = arith.mulf %211, %212 : vector<128x8xf32>
      %214 = vector.broadcast %16 : vector<128x1xf32> to vector<128x8xf32>
      %215 = arith.addf %213, %214 : vector<128x8xf32>
      %216 = vector.extract_strided_slice %215 {offsets = [0, 0], sizes = [32, 8], strides = [1, 1]} : vector<128x8xf32> to vector<32x8xf32>
      %217 = vector.extract_strided_slice %215 {offsets = [32, 0], sizes = [32, 8], strides = [1, 1]} : vector<128x8xf32> to vector<32x8xf32>
      %218 = vector.extract_strided_slice %215 {offsets = [64, 0], sizes = [32, 8], strides = [1, 1]} : vector<128x8xf32> to vector<32x8xf32>
      %219 = vector.extract_strided_slice %215 {offsets = [96, 0], sizes = [32, 8], strides = [1, 1]} : vector<128x8xf32> to vector<32x8xf32>
      %220 = arith.mulf %217, %192 : vector<32x8xf32>
      %221 = arith.mulf %216, %218 : vector<32x8xf32>
      %222 = arith.addf %220, %221 : vector<32x8xf32>
      %223 = math.tanh %222 : vector<32x8xf32>
      %224 = arith.mulf %219, %223 : vector<32x8xf32>
      %225 = vector.broadcast %3 : vector<32x1xf32> to vector<32x8xf32>
      %226 = arith.mulf %224, %225 : vector<32x8xf32>
      %cst_61 = arith.constant dense<0.000000e+00> : vector<8xf32>
      %227 = vector.multi_reduction <add>, %226, %cst_61 [0] : vector<32x8xf32> to vector<8xf32>
      %228 = vector.shape_cast %227 : vector<8xf32> to vector<1x8xf32>
      %229 = vector.broadcast %4 : vector<1x1xf32> to vector<1x8xf32>
      %230 = arith.addf %228, %229 : vector<1x8xf32>
      %231 = arith.index_cast %204 : i32 to index
      %c0_62 = arith.constant 0 : index
      %232 = vector.load %arg7[%231, %c0_62] : memref<64x8xf32, #tpu.memory_space<vmem>>, vector<1x8xf32>
      tpu.vector_store %arg7[%231, %c0_62], %230 {strides = array<i32>} : memref<64x8xf32, #tpu.memory_space<vmem>>, vector<1x8xf32>,
      %c8_i32_63 = arith.constant 8 : i32
      %233 = arith.muli %arg10, %c8_i32_63 : i32
      %c7_i32 = arith.constant 7 : i32
      %234 = arith.addi %233, %c7_i32 : i32
      %235 = arith.index_cast %234 : i32 to index
      %c0_64 = arith.constant 0 : index
      %c0_65 = arith.constant 0 : index
      %236 = vector.load %arg9[%235, %c0_64, %c0_65] : memref<64x128x8xf32, #tpu.memory_space<vmem>>, vector<1x128x8xf32>
      %237 = vector.shape_cast %236 : vector<1x128x8xf32> to vector<128x8xf32>
      %238 = arith.truncf %224 : vector<32x8xf32> to vector<32x8xbf16>
      %cst_66 = arith.constant dense<0.000000e+00> : vector<128x8xf32>
      %239 = tpu.matmul %1, %238, %cst_66 {dimension_numbers = #tpu.dot_dimension_numbers<[1], [0], [0], [1], [0, 0, 1, 1], [], []>} : vector<128x32xbf16>, vector<32x8xbf16>, vector<128x8xf32> -> vector<128x8xf32>
      %240 = arith.addf %237, %239 : vector<128x8xf32>
      %241 = math.tanh %240 : vector<128x8xf32>
      %242 = vector.broadcast %13 : vector<128x1xf32> to vector<128x8xf32>
      %243 = arith.mulf %241, %242 : vector<128x8xf32>
      %244 = vector.broadcast %16 : vector<128x1xf32> to vector<128x8xf32>
      %245 = arith.addf %243, %244 : vector<128x8xf32>
      %246 = vector.extract_strided_slice %245 {offsets = [0, 0], sizes = [32, 8], strides = [1, 1]} : vector<128x8xf32> to vector<32x8xf32>
      %247 = vector.extract_strided_slice %245 {offsets = [32, 0], sizes = [32, 8], strides = [1, 1]} : vector<128x8xf32> to vector<32x8xf32>
      %248 = vector.extract_strided_slice %245 {offsets = [64, 0], sizes = [32, 8], strides = [1, 1]} : vector<128x8xf32> to vector<32x8xf32>
      %249 = vector.extract_strided_slice %245 {offsets = [96, 0], sizes = [32, 8], strides = [1, 1]} : vector<128x8xf32> to vector<32x8xf32>
      %250 = arith.mulf %247, %222 : vector<32x8xf32>
      %251 = arith.mulf %246, %248 : vector<32x8xf32>
      %252 = arith.addf %250, %251 : vector<32x8xf32>
      %253 = math.tanh %252 : vector<32x8xf32>
      %254 = arith.mulf %249, %253 : vector<32x8xf32>
      %255 = vector.broadcast %3 : vector<32x1xf32> to vector<32x8xf32>
      %256 = arith.mulf %254, %255 : vector<32x8xf32>
      %cst_67 = arith.constant dense<0.000000e+00> : vector<8xf32>
      %257 = vector.multi_reduction <add>, %256, %cst_67 [0] : vector<32x8xf32> to vector<8xf32>
      %258 = vector.shape_cast %257 : vector<8xf32> to vector<1x8xf32>
      %259 = vector.broadcast %4 : vector<1x1xf32> to vector<1x8xf32>
      %260 = arith.addf %258, %259 : vector<1x8xf32>
      %261 = arith.index_cast %234 : i32 to index
      %c0_68 = arith.constant 0 : index
      %262 = vector.load %arg7[%261, %c0_68] : memref<64x8xf32, #tpu.memory_space<vmem>>, vector<1x8xf32>
      tpu.vector_store %arg7[%261, %c0_68], %260 {strides = array<i32>} : memref<64x8xf32, #tpu.memory_space<vmem>>, vector<1x8xf32>,
      scf.yield %254, %252 : vector<32x8xf32>, vector<32x8xf32>
    }
    %c8_i32_16 = arith.constant 8 : i32
    %c0_17 = arith.constant 0 : index
    %c0_18 = arith.constant 0 : index
    %22 = vector.load %arg8[%c0_17, %c0_18] : memref<32x8xf32, #tpu.memory_space<vmem>>, vector<32x8xf32>
    tpu.vector_store %arg8[%c0_17, %c0_18], %21#0 {strides = array<i32>} : memref<32x8xf32, #tpu.memory_space<vmem>>, vector<32x8xf32>,
    return
  }
  func.func @transform_0(%arg0: i32) -> (i32, i32, i32) {
    %c0_i32 = arith.constant 0 : i32
    %c0_i32_0 = arith.constant 0 : i32
    %c0_i32_1 = arith.constant 0 : i32
    return %arg0, %c0_i32, %c0_i32_0 : i32, i32, i32
  }
  func.func @transform_1(%arg0: i32) -> (i32, i32) {
    %c0_i32 = arith.constant 0 : i32
    %c0_i32_0 = arith.constant 0 : i32
    %c0_i32_1 = arith.constant 0 : i32
    return %c0_i32, %c0_i32_0 : i32, i32
  }
  func.func @transform_2(%arg0: i32) -> (i32, i32) {
    %c0_i32 = arith.constant 0 : i32
    %c0_i32_0 = arith.constant 0 : i32
    %c0_i32_1 = arith.constant 0 : i32
    return %c0_i32, %c0_i32_0 : i32, i32
  }
  func.func @transform_3(%arg0: i32) -> (i32, i32) {
    %c0_i32 = arith.constant 0 : i32
    %c0_i32_0 = arith.constant 0 : i32
    %c0_i32_1 = arith.constant 0 : i32
    return %c0_i32, %c0_i32_0 : i32, i32
  }
  func.func @transform_4(%arg0: i32) -> (i32, i32) {
    %c0_i32 = arith.constant 0 : i32
    %c0_i32_0 = arith.constant 0 : i32
    %c0_i32_1 = arith.constant 0 : i32
    return %c0_i32, %c0_i32_0 : i32, i32
  }
  func.func @transform_5(%arg0: i32) -> (i32, i32) {
    %c0_i32 = arith.constant 0 : i32
    %c0_i32_0 = arith.constant 0 : i32
    %c0_i32_1 = arith.constant 0 : i32
    return %c0_i32, %c0_i32_0 : i32, i32
  }
  func.func @transform_6(%arg0: i32) -> (i32, i32) {
    %c0_i32 = arith.constant 0 : i32
    %c0_i32_0 = arith.constant 0 : i32
    return %c0_i32, %arg0 : i32, i32
  }
  func.func @transform_7(%arg0: i32) -> (i32, i32) {
    %c0_i32 = arith.constant 0 : i32
    %c0_i32_0 = arith.constant 0 : i32
    return %c0_i32, %arg0 : i32, i32
  }
}

</mosaic_0001>

<bundles_post_ra>
// kernel: tl_dynamic_ss_forward.1
= control target key start
LH: loop header
LB: loop body
LE: loop exit
PB: predicated region body
PF: predicated region fallthrough
CT: control target
= control target key end

     0   :  { %s5588_s0 = inlined_call_operand.vmem [shape: s32[1,64,8], index: 0, kind: input, shape index: {}]   ;;  %s5589_s1 = inlined_call_operand.vmem [shape: bf16[128,64], index: 1, kind: input, shape index: {}]   ;;  %s5590_s2 = inlined_call_operand.vmem [shape: bf16[128,32], index: 2, kind: input, shape index: {}]   ;;  %s5591_s3 = inlined_call_operand.vmem [shape: f32[128,1], index: 3, kind: input, shape index: {}]   ;;  %s5592_s4 = inlined_call_operand.vmem [shape: f32[32,1], index: 4, kind: input, shape index: {}]   ;;  %s5593_s5 = inlined_call_operand.<no memory space> [shape: f32[1,1], index: 5, kind: input, shape index: {}]   ;;  %s5594_s6 = inlined_call_operand.vmem [shape: f32[64,8], index: 6, kind: output, shape index: {0}]   ;;  %s5595_s7 = inlined_call_operand.hbm [shape: f32[32,8], index: 7, kind: output, shape index: {1}]  }
   0x1   :  { %v13_v0 = vstv %s5593_s5 }
   0x2   :  { %14 = vst [vmem:[#allocation3] sm:$0x1] %v13_v0 }
   0x3   :  { %15 = vsyncpa [#allocation5], 0  ;;  %v4236_v1 = vld [vmem:[%s5589_s1] sm:$0xf]  ;;  %v4241_v2 = vld [vmem:[%s5589_s1 + $0x4] sm:$0xf]  ;;  %v82_v24 = vlaneseq }
   0x4   :  { %5596 = vst [vmem:[#allocation7_spill] sm:$0xff] %v4236_v1  ;;  %5597 = vst [vmem:[#allocation8_spill] sm:$0xff] %v4241_v2  ;;  %v4246_v3 = vld [vmem:[%s5589_s1 + $0x8] sm:$0xf]  ;;  %v4251_v4 = vld [vmem:[%s5589_s1 + $0xc] sm:$0xf] }
   0x5   :  { %5598 = vst [vmem:[#allocation9_spill] sm:$0xff] %v4246_v3  ;;  %5599 = vst [vmem:[#allocation10_spill] sm:$0xff] %v4251_v4  ;;  %v4256_v5 = vld [vmem:[%s5589_s1 + $0x10] sm:$0xf]  ;;  %v4261_v6 = vld [vmem:[%s5589_s1 + $0x14] sm:$0xf] }
   0x6   :  { %5600 = vst [vmem:[#allocation11_spill] sm:$0xff] %v4256_v5  ;;  %5601 = vst [vmem:[#allocation12_spill] sm:$0xff] %v4261_v6  ;;  %v4266_v7 = vld [vmem:[%s5589_s1 + $0x18] sm:$0xf]  ;;  %v4271_v8 = vld [vmem:[%s5589_s1 + $0x1c] sm:$0xf] }
   0x7   :  { %5602 = vst [vmem:[#allocation13_spill] sm:$0xff] %v4266_v7  ;;  %5603 = vst [vmem:[#allocation14_spill] sm:$0xff] %v4271_v8  ;;  %v4276_v9 = vld [vmem:[%s5589_s1 + $0x20] sm:$0xf]  ;;  %v4281_v10 = vld [vmem:[%s5589_s1 + $0x24] sm:$0xf] }
   0x8   :  { %5604 = vst [vmem:[#allocation15_spill] sm:$0xff] %v4276_v9  ;;  %5605 = vst [vmem:[#allocation16_spill] sm:$0xff] %v4281_v10  ;;  %v4286_v11 = vld [vmem:[%s5589_s1 + $0x28] sm:$0xf]  ;;  %v4291_v12 = vld [vmem:[%s5589_s1 + $0x2c] sm:$0xf] }
   0x9   :  { %5606 = vst [vmem:[#allocation17_spill] sm:$0xff] %v4286_v11  ;;  %5607 = vst [vmem:[#allocation18_spill] sm:$0xff] %v4291_v12  ;;  %v4296_v13 = vld [vmem:[%s5589_s1 + $0x30] sm:$0xf]  ;;  %v4301_v14 = vld [vmem:[%s5589_s1 + $0x34] sm:$0xf] }
   0xa   :  { %5608 = vst [vmem:[#allocation19_spill] sm:$0xff] %v4296_v13  ;;  %5609 = vst [vmem:[#allocation20_spill] sm:$0xff] %v4301_v14  ;;  %v4306_v15 = vld [vmem:[%s5589_s1 + $0x38] sm:$0xf]  ;;  %v4311_v16 = vld [vmem:[%s5589_s1 + $0x3c] sm:$0xf] }
   0xb   :  { %5610 = vst [vmem:[#allocation21_spill] sm:$0xff] %v4306_v15  ;;  %5611 = vst [vmem:[#allocation22_spill] sm:$0xff] %v4311_v16  ;;  %v4316_v17 = vld [vmem:[%s5590_s2] sm:$0xf]  ;;  %v4321_v18 = vld [vmem:[%s5590_s2 + $0x4] sm:$0xf] }
   0xc   :  { %5612 = vst [vmem:[#allocation23_spill] sm:$0xff] %v4316_v17  ;;  %5613 = vst [vmem:[#allocation24_spill] sm:$0xff] %v4321_v18  ;;  %v4326_v19 = vld [vmem:[%s5590_s2 + $0x8] sm:$0xf]  ;;  %v4331_v20 = vld [vmem:[%s5590_s2 + $0xc] sm:$0xf] }
   0xd   :  { %5614 = vst [vmem:[#allocation25_spill] sm:$0xff] %v4326_v19  ;;  %5615 = vst [vmem:[#allocation26_spill] sm:$0xff] %v4331_v20  ;;  %v4336_v21 = vld [vmem:[%s5590_s2 + $0x10] sm:$0xf]  ;;  %v4341_v22 = vld [vmem:[%s5590_s2 + $0x14] sm:$0xf] }
   0xe   :  { %v4346_v23 = vld [vmem:[%s5590_s2 + $0x18] sm:$0xf]  ;;  %v4351_v25 = vld [vmem:[%s5590_s2 + $0x1c] sm:$0xf]  ;;  %v4356_v26 = vld [vmem:[%s5590_s2 + $0x20] sm:$0xf] }
   0xf   :  { %v4361_v27 = vld [vmem:[%s5590_s2 + $0x24] sm:$0xf]  ;;  %v4366_v28 = vld [vmem:[%s5590_s2 + $0x28] sm:$0xf]  ;;  %v4371_v29 = vld [vmem:[%s5590_s2 + $0x2c] sm:$0xf] }
  0x10   :  { %v4376_v30 = vld [vmem:[%s5590_s2 + $0x30] sm:$0xf]  ;;  %v4381_v31 = vld [vmem:[%s5590_s2 + $0x34] sm:$0xf]  ;;  %v4386_v32 = vld [vmem:[%s5590_s2 + $0x38] sm:$0xf] }
  0x11   :  { %5616 = vst [vmem:[#allocation27_spill] sm:$0xff] %v4386_v32  ;;  %v4391_v33 = vld [vmem:[%s5590_s2 + $0x3c] sm:$0xf]  ;;  %v4396_v34 = vld [vmem:[%s5591_s3] sm:$0xff]  ;;  %v4401_v35 = vld [vmem:[%s5591_s3 + $0x8] sm:$0xff]  ;;  %v4408_v37 = vshrl.u32 %v82_v24, 7 }
  0x12   :  { %5617 = vst [vmem:[#allocation28_spill] sm:$0xff] %v4396_v34  ;;  %5618 = vst [vmem:[#allocation29_spill] sm:$0xff] %v4401_v35  ;;  %v4406_v36 = vld [vmem:[%s5591_s3 + $0x10] sm:$0xff]  ;;  %v4413_v38 = vld [vmem:[%s5591_s3 + $0x18] sm:$0xff] }
  0x13   :  { %5619 = vst [vmem:[#allocation30_spill] sm:$0xff] %v4406_v36  ;;  %5620 = vst [vmem:[#allocation31_spill] sm:$0xff] %v4413_v38  ;;  %v4418_v39 = vld [vmem:[%s5591_s3 + $0x20] sm:$0xff]  ;;  %v4423_v40 = vld [vmem:[%s5591_s3 + $0x28] sm:$0xff]  ;;  %v4441_v44 = vadd.s32 8, %v4408_v37  ;;  %v4444_v45 = vadd.s32 16, %v4408_v37 }
  0x14   :  { %5621 = vst [vmem:[#allocation32_spill] sm:$0xff] %v4418_v39  ;;  %5622 = vst [vmem:[#allocation33_spill] sm:$0xff] %v4423_v40  ;;  %v4428_v41 = vld [vmem:[%s5591_s3 + $0x30] sm:$0xff]  ;;  %v4433_v42 = vld [vmem:[%s5591_s3 + $0x38] sm:$0xff]  ;;  %v4447_v46 = vadd.s32 24, %v4408_v37  ;;  %v4465_v50 = vadd.s32 32, %v4408_v37 }
  0x15   :  { %5623 = vst [vmem:[#allocation34_spill] sm:$0xff] %v4428_v41  ;;  %5624 = vst [vmem:[#allocation35_spill] sm:$0xff] %v4433_v42  ;;  %v4438_v43 = vld [vmem:[%s5591_s3 + $0x40] sm:$0xff]  ;;  %v4452_v47 = vld [vmem:[%s5591_s3 + $0x48] sm:$0xff]  ;;  %v4468_v51 = vadd.s32 40, %v4408_v37  ;;  %v4471_v52 = vadd.s32 48, %v4408_v37 }
  0x16   :  { %v4457_v48 = vld [vmem:[%s5591_s3 + $0x50] sm:$0xff]  ;;  %v4462_v49 = vld [vmem:[%s5591_s3 + $0x58] sm:$0xff]  ;;  %v4476_v53 = vld [vmem:[%s5591_s3 + $0x60] sm:$0xff]  ;;  %v4489_v56 = vadd.s32 56, %v4408_v37 }
  0x17   :  { %v4481_v54 = vld [vmem:[%s5591_s3 + $0x68] sm:$0xff]  ;;  %v4486_v55 = vld [vmem:[%s5591_s3 + $0x70] sm:$0xff]  ;;  %v4494_v57 = vld [vmem:[%s5591_s3 + $0x78] sm:$0xff]  ;;  %s4518_s3 = smov 0  }
  0x18   :  { %v4499_v58 = vld [vmem:[%s5592_s4] sm:$0xff]  ;;  %v4504_v59 = vld [vmem:[%s5592_s4 + $0x8] sm:$0xff]  ;;  %v4509_v60 = vld [vmem:[%s5592_s4 + $0x10] sm:$0xff] }
  0x19   :  { %v4514_v61 = vld [vmem:[%s5592_s4 + $0x18] sm:$0xff]  ;;  %v4516_v62 = vld [vmem:[#allocation3] sm:$0x1] }
  0x1a LB: > { %v5625_v2 = vld [vmem:[#allocation8_spill] sm:$0xff]  ;;  %v5626_v1 = vld [vmem:[#allocation7_spill] sm:$0xff]  ;;  %vm332_vm0 = vcmask 523264   ;;  %s2922_s29 = sshll.u32 %s4146_s3, 2  ;;  %v4184_v0 = vmov 0   ;;  %v5628_v36 = vld [vmem:[#allocation30_spill] sm:$0xff]  ;;  %s4146_s3 = sphi %s4518_s3, %s184_s3  }
  0x1b   : > { %v4525_v63 = vcombine.low %v5626_v1, %v5625_v2  ;;  %s4535_s8 = scalar_lea.vmem %s5588_s0, %s2922_s29  ;;  %3756 = vset.pattern.permute.xlu0 %v4184_v0  ;;  %3757 = vset.pattern.permute.xlu1 %v4184_v0  ;;  %v5627_v34 = vld [vmem:[#allocation28_spill] sm:$0xff]  ;;  %v4185_v0 = vmov 1.0|1.0   ;;  %v5633_v35 = vld [vmem:[#allocation29_spill] sm:$0xff]  ;;  %v5636_v38 = vld [vmem:[#allocation31_spill] sm:$0xff]  ;;  %s3274_s9 = sshll.u32 %s4146_s3, 9 }
  0x1c   : > { %v2923_v24 = vld [vmem:[%s4535_s8] ss:$0 sm:$0xff]  ;;  %v2951_v1 = vld [vmem:[%s4535_s8 + $0x1] ss:$0 sm:$0xff]  ;;  %214 = vperm.xlu0 %3756, %v5627_v34   ;;  %224 = vperm.xlu1 %3757, %v5628_v36   ;;  %v2988_v36 = vld [vmem:[%s4535_s8 + $0x2] ss:$0 sm:$0xff] }
  0x1d   : > { %3422 = vmatprep.mubr.msk.bf16.mxu0 %vm332_vm0, %v4525_v63  ;;  %3446 = vmatprep.mubr.msk.bf16.mxu1 %vm332_vm0, %v4525_v63  ;;  %vm192_vm1 = vcmp.eq.s32.totalorder %v4408_v37, %v2923_v24  ;;  %vm193_vm2 = vcmp.eq.s32.totalorder %v4441_v44, %v2923_v24  ;;  %vm480_vm3 = vcmp.eq.s32.totalorder %v4408_v37, %v2951_v1  ;;  %v4579_v32 = vld [vmem:[%s4535_s8 + $0x3] ss:$0 sm:$0xff]  ;;  %v5639_v39 = vld [vmem:[#allocation32_spill] sm:$0xff]  ;;  %v5642_v40 = vld [vmem:[#allocation33_spill] sm:$0xff]  ;;  %s4793_s10 = scalar_lea.vmem [#allocation2], %s3274_s9  ;;  %s184_s3 = sadd.s32 1, %s4146_s3  }
  0x1e   : > { %vm481_vm4 = vcmp.eq.s32.totalorder %v4441_v44, %v2951_v1  ;;  %vm2932_vm5 = vmpackc.low %vm193_vm2, %vm192_vm1  ;;  %vm194_vm6 = vcmp.eq.s32.totalorder %v4444_v45, %v2923_v24  ;;  %vm195_vm7 = vcmp.eq.s32.totalorder %v4447_v46, %v2923_v24  ;;  %vm482_vm8 = vcmp.eq.s32.totalorder %v4444_v45, %v2951_v1  ;;  %v5643_v4 = vld [vmem:[#allocation10_spill] sm:$0xff]  ;;  %v5644_v3 = vld [vmem:[#allocation9_spill] sm:$0xff]  ;;  %p181_p0 = scmp.ge.s32.totalorder %s184_s3, 16  }
  0x1f   : > { %vm483_vm9 = vcmp.eq.s32.totalorder %v4447_v46, %v2951_v1  ;;  %3414 = vmatprep.subr.msk.bf16.mxu0 %vm2932_vm5, %v4185_v0  ;;  %vm2952_vm10 = vmpackc.low %vm481_vm4, %vm480_vm3  ;;  %vm196_vm11 = vcmp.eq.s32.totalorder %v4465_v50, %v2923_v24  ;;  %vm197_vm12 = vcmp.eq.s32.totalorder %v4468_v51, %v2923_v24  ;;  %vm484_vm14 = vcmp.eq.s32.totalorder %v4465_v50, %v2951_v1  ;;  %v5647_v41 = vld [vmem:[#allocation34_spill] sm:$0xff]  ;;  %v5648_v6 = vld [vmem:[#allocation12_spill] sm:$0xff]  ;;  %s5015_s5 = smov (%p181_p0), 0  }
  0x20   : > { %3438 = vmatprep.subr.msk.bf16.mxu1 %vm2952_vm10, %v4185_v0  ;;  %3415 = vmatpush3.bf16.msk.msra.mxu0 %vm2932_vm5, %v4185_v0  ;;  %vm2934_vm13 = vmpackc.low %vm195_vm7, %vm194_vm6  ;;  %vm485_vm15 = vcmp.eq.s32.totalorder %v4468_v51, %v2951_v1  ;;  %vm198_vm4 = vcmp.eq.s32.totalorder %v4471_v52, %v2923_v24  ;;  %vm199_vm5 = vcmp.eq.s32.totalorder %v4489_v56, %v2923_v24  ;;  %v5649_v5 = vld [vmem:[#allocation11_spill] sm:$0xff]  ;;  %v5657_v8 = vld [vmem:[#allocation14_spill] sm:$0xff] }
  0x21   : > { %3439 = vmatpush3.bf16.msk.msra.mxu1 %vm2952_vm10, %v4185_v0  ;;  %3416 = vmatprep.subr.msk.bf16.mxu0 %vm2934_vm13, %v4185_v0  ;;  %vm2954_vm1 = vmpackc.low %vm483_vm9, %vm482_vm8  ;;  %vm486_vm6 = vcmp.eq.s32.totalorder %v4471_v52, %v2951_v1  ;;  %vm487_vm7 = vcmp.eq.s32.totalorder %v4489_v56, %v2951_v1  ;;  %vm622_vm10 = vcmp.eq.s32.totalorder %v4408_v37, %v2988_v36  ;;  %v5650_v42 = vld [vmem:[#allocation35_spill] sm:$0xff]  ;;  %v5658_v7 = vld [vmem:[#allocation13_spill] sm:$0xff] }
  0x22   : > { %3440 = vmatprep.subr.msk.bf16.mxu1 %vm2954_vm1, %v4185_v0  ;;  %vm4559_vm2 = vmpackc.low %vm197_vm12, %vm196_vm11  ;;  %219 = vperm.xlu0 %3756, %v5633_v35   ;;  %vm623_vm11 = vcmp.eq.s32.totalorder %v4441_v44, %v2988_v36  ;;  %vm764_vm12 = vcmp.eq.s32.totalorder %v4408_v37, %v4579_v32  ;;  %v4619_v35 = vcombine.low %v5644_v3, %v5643_v4  ;;  %v5661_v10 = vld [vmem:[#allocation16_spill] sm:$0xff]  ;;  %v5662_v9 = vld [vmem:[#allocation15_spill] sm:$0xff] }
  0x23   : > { %vm4563_vm3 = vmpackc.low %vm485_vm15, %vm484_vm14  ;;  %229 = vperm.xlu1 %3757, %v5636_v38   ;;  %v4639_v3 = vcombine.low %v5649_v5, %v5648_v6  ;;  %v2927_v4 = vcombine.low %v5658_v7, %v5657_v8  ;;  %v2928_v5 = vcombine.low %v5662_v9, %v5661_v10  ;;  %v5663_v12 = vld [vmem:[#allocation18_spill] sm:$0xff]  ;;  %v5664_v11 = vld [vmem:[#allocation17_spill] sm:$0xff] }
  0x24   : > { %3417 = vmatpush3.bf16.msk.msra.mxu0 %vm2934_vm13, %v4185_v0  ;;  %vm4584_vm8 = vmpackc.low %vm199_vm5, %vm198_vm4  ;;  %vm765_vm13 = vcmp.eq.s32.totalorder %v4441_v44, %v4579_v32  ;;  %vm767_vm4 = vcmp.eq.s32.totalorder %v4447_v46, %v4579_v32  ;;  %v5665_v14 = vld [vmem:[#allocation20_spill] sm:$0xff]  ;;  %v5666_v13 = vld [vmem:[#allocation19_spill] sm:$0xff] }
  0x25   : > { %3441 = vmatpush3.bf16.msk.msra.mxu1 %vm2954_vm1, %v4185_v0  ;;  %3418 = vmatprep.subr.msk.bf16.mxu0 %vm4559_vm2, %v4185_v0  ;;  %vm4589_vm9 = vmpackc.low %vm487_vm7, %vm486_vm6  ;;  %vm624_vm1 = vcmp.eq.s32.totalorder %v4444_v45, %v2988_v36  ;;  %vm626_vm6 = vcmp.eq.s32.totalorder %v4465_v50, %v2988_v36  ;;  %vm627_vm7 = vcmp.eq.s32.totalorder %v4468_v51, %v2988_v36  ;;  %v5667_v16 = vld [vmem:[#allocation22_spill] sm:$0xff]  ;;  %v5668_v15 = vld [vmem:[#allocation21_spill] sm:$0xff] }
  0x26   : > { %3442 = vmatprep.subr.msk.bf16.mxu1 %vm4563_vm3, %v4185_v0  ;;  %234 = vperm.xlu0 %3756, %v5639_v39   ;;  %vm4612_vm14 = vmpackc.low %vm623_vm11, %vm622_vm10  ;;  %vm769_vm10 = vcmp.eq.s32.totalorder %v4468_v51, %v4579_v32  ;;  %v2931_v24 = vcombine.low %v5668_v15, %v5667_v16 }
  0x27   : > { %239 = vperm.xlu1 %3757, %v5642_v40   ;;  %vm4621_vm15 = vmpackc.low %vm765_vm13, %vm764_vm12  ;;  %vm628_vm13 = vcmp.eq.s32.totalorder %v4471_v52, %v2988_v36 }
  0x28   : > { %3419 = vmatpush3.bf16.msk.msra.mxu0 %vm4559_vm2, %v4185_v0  ;;  %vm625_vm2 = vcmp.eq.s32.totalorder %v4447_v46, %v2988_v36  ;;  %vm4681_vm11 = vmpackc.low %vm627_vm7, %vm626_vm6 }
  0x29   : > { %3443 = vmatpush3.bf16.msk.msra.mxu1 %vm4563_vm3, %v4185_v0  ;;  %3420 = vmatprep.subr.msk.bf16.mxu0 %vm4584_vm8, %v4185_v0  ;;  %vm766_vm3 = vcmp.eq.s32.totalorder %v4444_v45, %v4579_v32  ;;  %vm4651_vm5 = vmpackc.low %vm625_vm2, %vm624_vm1  ;;  %vm771_vm1 = vcmp.eq.s32.totalorder %v4489_v56, %v4579_v32 }
  0x2a   : > { %3444 = vmatprep.subr.msk.bf16.mxu1 %vm4589_vm9, %v4185_v0  ;;  %244 = vperm.xlu0 %3756, %v5647_v41  }
  0x2b   : > { %249 = vperm.xlu1 %3757, %v5650_v42  }
  0x2c   : > { %3421 = vmatpush3.bf16.msk.msra.mxu0 %vm4584_vm8, %v4185_v0  ;;  %vm4663_vm8 = vmpackc.low %vm767_vm4, %vm766_vm3 }
  0x2d   : > { %3445 = vmatpush3.bf16.msk.msra.mxu1 %vm4589_vm9, %v4185_v0  ;;  %3462 = vmatprep.subr.msk.bf16.mxu0 %vm4612_vm14, %v4185_v0  ;;  %vm768_vm9 = vcmp.eq.s32.totalorder %v4465_v50, %v4579_v32 }
  0x2e   : > { %3486 = vmatprep.subr.msk.bf16.mxu1 %vm4621_vm15, %v4185_v0  ;;  %254 = vperm.xlu0 %3756, %v4438_v43   ;;  %vm4690_vm12 = vmpackc.low %vm769_vm10, %vm768_vm9 }
  0x2f   : > { %3423 = vmatmul.mubr.msk.bf16.vlgmr.msra.gmra.mrb[0].mxu0 %vm332_vm0, %v4619_v35  ;;  %259 = vperm.xlu1 %3757, %v4452_v47  }
  0x30   : > { %3447 = vmatmul.mubr.msk.bf16.vlgmr.msra.gmra.mrb[0].mxu1 %vm332_vm0, %v4619_v35  ;;  %3463 = vmatpush3.bf16.msk.msra.mxu0 %vm4612_vm14, %v4185_v0  ;;  %vm629_vm14 = vcmp.eq.s32.totalorder %v4489_v56, %v2988_v36  ;;  %v2930_v36 = vcombine.low %v5666_v13, %v5665_v14 }
  0x31   : > { %3487 = vmatpush3.bf16.msk.msra.mxu1 %vm4621_vm15, %v4185_v0  ;;  %3426 = vmatprep.mubr.msk.bf16.mxu0 %vm332_vm0, %v4639_v3  ;;  %vm770_vm15 = vcmp.eq.s32.totalorder %v4471_v52, %v4579_v32  ;;  %vm2995_vm2 = vmpackc.low %vm629_vm14, %vm628_vm13  ;;  %v2929_v32 = vcombine.low %v5664_v11, %v5663_v12 }
  0x32   : > { %3450 = vmatprep.mubr.msk.bf16.mxu1 %vm332_vm0, %v4639_v3  ;;  %3464 = vmatprep.subr.msk.bf16.mxu0 %vm4651_vm5, %v4185_v0  ;;  %vm3032_vm3 = vmpackc.low %vm771_vm1, %vm770_vm15 }
  0x33   : > { %3488 = vmatprep.subr.msk.bf16.mxu1 %vm4663_vm8, %v4185_v0  ;;  %264 = vperm.xlu0 %3756, %v4457_v48  }
  0x34   : > { %3465 = vmatpush3.bf16.msk.msra.mxu0 %vm4651_vm5, %v4185_v0  ;;  %269 = vperm.xlu1 %3757, %v4462_v49  }
  0x35   : > { %3489 = vmatpush3.bf16.msk.msra.mxu1 %vm4663_vm8, %v4185_v0  ;;  %3466 = vmatprep.subr.msk.bf16.mxu0 %vm4681_vm11, %v4185_v0 }
  0x36   : > { %3490 = vmatprep.subr.msk.bf16.mxu1 %vm4690_vm12, %v4185_v0 }
  0x37   : > { %3427 = vmatmul.mubr.msk.bf16.gmra.mrb[4].mxu0 %vm332_vm0, %v2927_v4  ;;  %274 = vperm.xlu0 %3756, %v4476_v53  }
  0x38   : > { %3451 = vmatmul.mubr.msk.bf16.gmra.mrb[4].mxu1 %vm332_vm0, %v2927_v4  ;;  %3430 = vmatprep.mubr.msk.bf16.mxu0 %vm332_vm0, %v2928_v5 }
  0x39   : > { %3454 = vmatprep.mubr.msk.bf16.mxu1 %vm332_vm0, %v2928_v5  ;;  %3467 = vmatpush3.bf16.msk.msra.mxu0 %vm4681_vm11, %v4185_v0 }
  0x3a   : > { %3491 = vmatpush3.bf16.msk.msra.mxu1 %vm4690_vm12, %v4185_v0  ;;  %3468 = vmatprep.subr.msk.bf16.mxu0 %vm2995_vm2, %v4185_v0 }
  0x3b   : > { %3492 = vmatprep.subr.msk.bf16.mxu1 %vm3032_vm3, %v4185_v0  ;;  %279 = vperm.xlu1 %3757, %v4481_v54  }
  0x3c   : > { %284 = vperm.xlu0 %3756, %v4486_v55  }
  0x3d   : > { %3469 = vmatpush3.bf16.msk.msra.mxu0 %vm2995_vm2, %v4185_v0 }
  0x3e   : > { %3493 = vmatpush3.bf16.msk.msra.mxu1 %vm3032_vm3, %v4185_v0 }
  0x3f   : > { %3431 = vmatmul.mubr.msk.bf16.gmra.mrb[8].mxu0 %vm332_vm0, %v2929_v32  ;;  %289 = vperm.xlu1 %3757, %v4494_v57  }
  0x40   : > { %3455 = vmatmul.mubr.msk.bf16.gmra.mrb[8].mxu1 %vm332_vm0, %v2929_v32  ;;  %3434 = vmatprep.mubr.msk.bf16.mxu0 %vm332_vm0, %v2930_v36 }
  0x41   : > { %3458 = vmatprep.mubr.msk.bf16.mxu1 %vm332_vm0, %v2930_v36 }
  0x47   : > { %3435 = vmatmul.mubr.msk.bf16.gmra.mrb[12].mxu0 %vm332_vm0, %v2931_v24 }
  0x48   : > { %3459 = vmatmul.mubr.msk.bf16.gmra.mrb[12].mxu1 %vm332_vm0, %v2931_v24  ;;  %3470 = vmatprep.mubr.msk.bf16.mxu0 %vm332_vm0, %v4525_v63 }
  0x49   : > { %3494 = vmatprep.mubr.msk.bf16.mxu1 %vm332_vm0, %v4525_v63 }
  0x4f   : > { %3471 = vmatmul.mubr.msk.bf16.vlgmr.msra.gmra.mrb[16].mxu0 %vm332_vm0, %v4619_v35 }
  0x50   : > { %3495 = vmatmul.mubr.msk.bf16.vlgmr.msra.gmra.mrb[16].mxu1 %vm332_vm0, %v4619_v35  ;;  %3474 = vmatprep.mubr.msk.bf16.mxu0 %vm332_vm0, %v4639_v3 }
  0x51   : > { %3498 = vmatprep.mubr.msk.bf16.mxu1 %vm332_vm0, %v4639_v3 }
  0x57   : > { %3475 = vmatmul.mubr.msk.bf16.gmra.mrb[20].mxu0 %vm332_vm0, %v2927_v4 }
  0x58   : > { %3499 = vmatmul.mubr.msk.bf16.gmra.mrb[20].mxu1 %vm332_vm0, %v2927_v4  ;;  %3478 = vmatprep.mubr.msk.bf16.mxu0 %vm332_vm0, %v2928_v5 }
  0x59   : > { %3502 = vmatprep.mubr.msk.bf16.mxu1 %vm332_vm0, %v2928_v5 }
  0x5f   : > { %3479 = vmatmul.mubr.msk.bf16.gmra.mrb[24].mxu0 %vm332_vm0, %v2929_v32 }
  0x60   : > { %3503 = vmatmul.mubr.msk.bf16.gmra.mrb[24].mxu1 %vm332_vm0, %v2929_v32  ;;  %3482 = vmatprep.mubr.msk.bf16.mxu0 %vm332_vm0, %v2930_v36 }
  0x61   : > { %3506 = vmatprep.mubr.msk.bf16.mxu1 %vm332_vm0, %v2930_v36 }
  0x67   : > { %3483 = vmatmul.mubr.msk.bf16.gmra.mrb[28].mxu0 %vm332_vm0, %v2931_v24 }
  0x68   : > { %3507 = vmatmul.mubr.msk.bf16.gmra.mrb[28].mxu1 %vm332_vm0, %v2931_v24  ;;  %vm456_vm0 = vcmask 64512  }
  0x9b   : > { %v4769_v3 = vpop.permute.xlu0 %214  ;;  %v4771_v4 = vpop.permute.xlu1 %224 }
  0xa1   : > { %v4773_v35 = vpop.permute.xlu0 %219 }
  0xa2   : > { %v4775_v63 = vpop.permute.xlu1 %229 }
  0xa5   : > { %v4777_v5 = vpop.permute.xlu0 %234 }
  0xa6   : > { %v4779_v0 = vpop.permute.xlu1 %239 }
  0xa9   : > { %v4781_v1 = vpop.permute.xlu0 %244 }
  0xaa   : > { %v4783_v2 = vpop.permute.xlu1 %249 }
  0xad   : > { %v4786_v34 = vpop.permute.xlu0 %254 }
  0xae   : > { %v4788_v36 = vpop.permute.xlu1 %259 }
 0x102   : > { %v3424_v32 = vpop.f32.mrb[0].mxu0 }
 0x103   : > { %v400_v24 = vadd.f32 %v3424_v32, %v4771_v4  ;;  %v3448_v6 = vpop.f32.mrb[0].mxu1  ;;  %v391_v7 = vpop.f32.mrb[1].mxu0 }
 0x104   : > { %v543_v8 = vadd.f32 %v3448_v6, %v4771_v4  ;;  %v392_v9 = vadd.f32 %v391_v7, %v4769_v3  ;;  %v534_v10 = vpop.f32.mrb[1].mxu1  ;;  %v3425_v11 = vpop.f32.mrb[2].mxu0 }
 0x105   : > { %459 = vst.msk [vmem:[%s4793_s10 + $0x10] sm:$0xff] %vm456_vm0, %v400_v24  ;;  %v535_v32 = vadd.f32 %v534_v10, %v4769_v3  ;;  %v403_v6 = vadd.f32 %v3425_v11, %v4775_v63  ;;  %v3449_v12 = vpop.f32.mrb[2].mxu1  ;;  %v394_v7 = vpop.f32.mrb[3].mxu0 }
 0x106   : > { %2972 = vst.msk [vmem:[%s4793_s10 + $0x90] sm:$0xff] %vm456_vm0, %v543_v8  ;;  %457 = vst.msk [vmem:[%s4793_s10] sm:$0xff] %vm456_vm0, %v392_v9  ;;  %v546_v13 = vadd.f32 %v3449_v12, %v4775_v63  ;;  %v395_v14 = vadd.f32 %v394_v7, %v4773_v35  ;;  %v537_v15 = vpop.f32.mrb[3].mxu1  ;;  %v4816_v8 = vpop.permute.xlu0 %264 }
 0x107   : > { %2970 = vst.msk [vmem:[%s4793_s10 + $0x80] sm:$0xff] %vm456_vm0, %v535_v32  ;;  %460 = vst.msk [vmem:[%s4793_s10 + $0x18] sm:$0xff] %vm456_vm0, %v403_v6  ;;  %v538_v10 = vadd.f32 %v537_v15, %v4773_v35  ;;  %v4818_v11 = vpop.permute.xlu1 %269 }
 0x108   : > { %2973 = vst.msk [vmem:[%s4793_s10 + $0x98] sm:$0xff] %vm456_vm0, %v546_v13  ;;  %458 = vst.msk [vmem:[%s4793_s10 + $0x8] sm:$0xff] %vm456_vm0, %v395_v14 }
 0x109   : > { %2971 = vst.msk [vmem:[%s4793_s10 + $0x88] sm:$0xff] %vm456_vm0, %v538_v10 }
 0x10a   : > { %v3428_v9 = vpop.f32.mrb[4].mxu0 }
 0x10b   : > { %v3452_v12 = vpop.f32.mrb[4].mxu1  ;;  %v416_v24 = vadd.f32 %v3428_v9, %v4781_v1  ;;  %v407_v32 = vpop.f32.mrb[5].mxu0 }
 0x10c   : > { %v559_v15 = vadd.f32 %v3452_v12, %v4781_v1  ;;  %v408_v13 = vadd.f32 %v407_v32, %v4777_v5  ;;  %v550_v14 = vpop.f32.mrb[5].mxu1  ;;  %v3429_v6 = vpop.f32.mrb[6].mxu0 }
 0x10d   : > { %463 = vst.msk [vmem:[%s4793_s10 + $0x30] sm:$0xff] %vm456_vm0, %v416_v24  ;;  %v551_v7 = vadd.f32 %v550_v14, %v4777_v5  ;;  %v419_v10 = vadd.f32 %v3429_v6, %v4783_v2  ;;  %v3453_v16 = vpop.f32.mrb[6].mxu1  ;;  %v410_v9 = vpop.f32.mrb[7].mxu0 }
 0x10e   : > { %2976 = vst.msk [vmem:[%s4793_s10 + $0xb0] sm:$0xff] %vm456_vm0, %v559_v15  ;;  %461 = vst.msk [vmem:[%s4793_s10 + $0x20] sm:$0xff] %vm456_vm0, %v408_v13  ;;  %v562_v12 = vadd.f32 %v3453_v16, %v4783_v2  ;;  %v411_v32 = vadd.f32 %v410_v9, %v4779_v0  ;;  %v553_v38 = vpop.f32.mrb[7].mxu1  ;;  %v4844_v15 = vpop.permute.xlu0 %274 }
 0x10f   : > { %2974 = vst.msk [vmem:[%s4793_s10 + $0xa0] sm:$0xff] %vm456_vm0, %v551_v7  ;;  %464 = vst.msk [vmem:[%s4793_s10 + $0x38] sm:$0xff] %vm456_vm0, %v419_v10  ;;  %v554_v24 = vadd.f32 %v553_v38, %v4779_v0  ;;  %v4846_v13 = vpop.permute.xlu1 %279 }
 0x110   : > { %2977 = vst.msk [vmem:[%s4793_s10 + $0xb8] sm:$0xff] %vm456_vm0, %v562_v12  ;;  %462 = vst.msk [vmem:[%s4793_s10 + $0x28] sm:$0xff] %vm456_vm0, %v411_v32 }
 0x111   : > { %2975 = vst.msk [vmem:[%s4793_s10 + $0xa8] sm:$0xff] %vm456_vm0, %v554_v24 }
 0x112   : > { %v3432_v16 = vpop.f32.mrb[8].mxu0 }
 0x113   : > { %v3456_v14 = vpop.f32.mrb[8].mxu1  ;;  %v432_v6 = vadd.f32 %v3432_v16, %v4816_v8  ;;  %v423_v7 = vpop.f32.mrb[9].mxu0 }
 0x114   : > { %v575_v38 = vadd.f32 %v3456_v14, %v4816_v8  ;;  %v424_v10 = vadd.f32 %v423_v7, %v4786_v34  ;;  %v566_v9 = vpop.f32.mrb[9].mxu1  ;;  %v3433_v12 = vpop.f32.mrb[10].mxu0 }
 0x115   : > { %467 = vst.msk [vmem:[%s4793_s10 + $0x50] sm:$0xff] %vm456_vm0, %v432_v6  ;;  %v567_v32 = vadd.f32 %v566_v9, %v4786_v34  ;;  %v435_v24 = vadd.f32 %v3433_v12, %v4818_v11  ;;  %v3457_v39 = vpop.f32.mrb[10].mxu1  ;;  %v426_v16 = vpop.f32.mrb[11].mxu0 }
 0x116   : > { %2980 = vst.msk [vmem:[%s4793_s10 + $0xd0] sm:$0xff] %vm456_vm0, %v575_v38  ;;  %465 = vst.msk [vmem:[%s4793_s10 + $0x40] sm:$0xff] %vm456_vm0, %v424_v10  ;;  %v578_v14 = vadd.f32 %v3457_v39, %v4818_v11  ;;  %v427_v7 = vadd.f32 %v426_v16, %v4788_v36  ;;  %v569_v40 = vpop.f32.mrb[11].mxu1  ;;  %v4870_v9 = vpop.permute.xlu0 %284 }
 0x117   : > { %2978 = vst.msk [vmem:[%s4793_s10 + $0xc0] sm:$0xff] %vm456_vm0, %v567_v32  ;;  %468 = vst.msk [vmem:[%s4793_s10 + $0x58] sm:$0xff] %vm456_vm0, %v435_v24  ;;  %v570_v6 = vadd.f32 %v569_v40, %v4788_v36  ;;  %v4874_v38 = vpop.permute.xlu1 %289 }
 0x118   : > { %2981 = vst.msk [vmem:[%s4793_s10 + $0xd8] sm:$0xff] %vm456_vm0, %v578_v14  ;;  %466 = vst.msk [vmem:[%s4793_s10 + $0x48] sm:$0xff] %vm456_vm0, %v427_v7 }
 0x119   : > { %2979 = vst.msk [vmem:[%s4793_s10 + $0xc8] sm:$0xff] %vm456_vm0, %v570_v6 }
 0x11a   : > { %v3436_v39 = vpop.f32.mrb[12].mxu0 }
 0x11b   : > { %v3460_v10 = vpop.f32.mrb[12].mxu1  ;;  %v448_v12 = vadd.f32 %v3436_v39, %v4870_v9  ;;  %v439_v32 = vpop.f32.mrb[13].mxu0 }
 0x11c   : > { %v591_v40 = vadd.f32 %v3460_v10, %v4870_v9  ;;  %v440_v24 = vadd.f32 %v439_v32, %v4844_v15  ;;  %v582_v16 = vpop.f32.mrb[13].mxu1  ;;  %v3437_v14 = vpop.f32.mrb[14].mxu0 }
 0x11d   : > { %471 = vst.msk [vmem:[%s4793_s10 + $0x70] sm:$0xff] %vm456_vm0, %v448_v12  ;;  %v583_v7 = vadd.f32 %v582_v16, %v4844_v15  ;;  %v451_v6 = vadd.f32 %v3437_v14, %v4874_v38  ;;  %v3461_v41 = vpop.f32.mrb[14].mxu1  ;;  %v442_v39 = vpop.f32.mrb[15].mxu0 }
 0x11e   : > { %2984 = vst.msk [vmem:[%s4793_s10 + $0xf0] sm:$0xff] %vm456_vm0, %v591_v40  ;;  %469 = vst.msk [vmem:[%s4793_s10 + $0x60] sm:$0xff] %vm456_vm0, %v440_v24  ;;  %v594_v10 = vadd.f32 %v3461_v41, %v4874_v38  ;;  %v443_v32 = vadd.f32 %v442_v39, %v4846_v13  ;;  %v585_v42 = vpop.f32.mrb[15].mxu1 }
 0x11f   : > { %2982 = vst.msk [vmem:[%s4793_s10 + $0xe0] sm:$0xff] %vm456_vm0, %v583_v7  ;;  %472 = vst.msk [vmem:[%s4793_s10 + $0x78] sm:$0xff] %vm456_vm0, %v451_v6  ;;  %v586_v12 = vadd.f32 %v585_v42, %v4846_v13 }
 0x120   : > { %2985 = vst.msk [vmem:[%s4793_s10 + $0xf8] sm:$0xff] %vm456_vm0, %v594_v10  ;;  %470 = vst.msk [vmem:[%s4793_s10 + $0x68] sm:$0xff] %vm456_vm0, %v443_v32 }
 0x121   : > { %2983 = vst.msk [vmem:[%s4793_s10 + $0xe8] sm:$0xff] %vm456_vm0, %v586_v12 }
 0x122   : > { %v3472_v40 = vpop.f32.mrb[16].mxu0 }
 0x123   : > { %v685_v41 = vadd.f32 %v3472_v40, %v4771_v4  ;;  %v3496_v24 = vpop.f32.mrb[16].mxu1  ;;  %v676_v16 = vpop.f32.mrb[17].mxu0 }
 0x124   : > { %v827_v14 = vadd.f32 %v3496_v24, %v4771_v4  ;;  %v677_v7 = vadd.f32 %v676_v16, %v4769_v3  ;;  %v818_v42 = vpop.f32.mrb[17].mxu1  ;;  %v3473_v6 = vpop.f32.mrb[18].mxu0 }
 0x125   : > { %3009 = vst.msk [vmem:[%s4793_s10 + $0x110] sm:$0xff] %vm456_vm0, %v685_v41  ;;  %v819_v39 = vadd.f32 %v818_v42, %v4769_v3  ;;  %v688_v10 = vadd.f32 %v3473_v6, %v4775_v63  ;;  %v3497_v32 = vpop.f32.mrb[18].mxu1  ;;  %v679_v12 = vpop.f32.mrb[19].mxu0 }
 0x126   : > { %3046 = vst.msk [vmem:[%s4793_s10 + $0x190] sm:$0xff] %vm456_vm0, %v827_v14  ;;  %3007 = vst.msk [vmem:[%s4793_s10 + $0x100] sm:$0xff] %vm456_vm0, %v677_v7  ;;  %v830_v4 = vadd.f32 %v3497_v32, %v4775_v63  ;;  %v680_v40 = vadd.f32 %v679_v12, %v4773_v35  ;;  %v821_v24 = vpop.f32.mrb[19].mxu1 }
 0x127   : > { %3044 = vst.msk [vmem:[%s4793_s10 + $0x180] sm:$0xff] %vm456_vm0, %v819_v39  ;;  %3010 = vst.msk [vmem:[%s4793_s10 + $0x118] sm:$0xff] %vm456_vm0, %v688_v10  ;;  %v822_v3 = vadd.f32 %v821_v24, %v4773_v35 }
 0x128   : > { %3047 = vst.msk [vmem:[%s4793_s10 + $0x198] sm:$0xff] %vm456_vm0, %v830_v4  ;;  %3008 = vst.msk [vmem:[%s4793_s10 + $0x108] sm:$0xff] %vm456_vm0, %v680_v40 }
 0x129   : > { %3045 = vst.msk [vmem:[%s4793_s10 + $0x188] sm:$0xff] %vm456_vm0, %v822_v3 }
 0x12a   : > { %v3476_v41 = vpop.f32.mrb[20].mxu0 }
 0x12b   : > { %v701_v63 = vadd.f32 %v3476_v41, %v4781_v1  ;;  %v3500_v16 = vpop.f32.mrb[20].mxu1  ;;  %v692_v14 = vpop.f32.mrb[21].mxu0 }
 0x12c   : > { %v843_v7 = vadd.f32 %v3500_v16, %v4781_v1  ;;  %v693_v42 = vadd.f32 %v692_v14, %v4777_v5  ;;  %v834_v35 = vpop.f32.mrb[21].mxu1  ;;  %v3477_v6 = vpop.f32.mrb[22].mxu0 }
 0x12d   : > { %3013 = vst.msk [vmem:[%s4793_s10 + $0x130] sm:$0xff] %vm456_vm0, %v701_v63  ;;  %v835_v39 = vadd.f32 %v834_v35, %v4777_v5  ;;  %v704_v10 = vadd.f32 %v3477_v6, %v4783_v2  ;;  %v3501_v32 = vpop.f32.mrb[22].mxu1  ;;  %v695_v12 = vpop.f32.mrb[23].mxu0 }
 0x12e   : > { %3050 = vst.msk [vmem:[%s4793_s10 + $0x1b0] sm:$0xff] %vm456_vm0, %v843_v7  ;;  %3011 = vst.msk [vmem:[%s4793_s10 + $0x120] sm:$0xff] %vm456_vm0, %v693_v42  ;;  %v846_v1 = vadd.f32 %v3501_v32, %v4783_v2  ;;  %v696_v4 = vadd.f32 %v695_v12, %v4779_v0  ;;  %v837_v40 = vpop.f32.mrb[23].mxu1 }
 0x12f   : > { %3048 = vst.msk [vmem:[%s4793_s10 + $0x1a0] sm:$0xff] %vm456_vm0, %v835_v39  ;;  %3014 = vst.msk [vmem:[%s4793_s10 + $0x138] sm:$0xff] %vm456_vm0, %v704_v10  ;;  %v838_v5 = vadd.f32 %v837_v40, %v4779_v0 }
 0x130   : > { %3051 = vst.msk [vmem:[%s4793_s10 + $0x1b8] sm:$0xff] %vm456_vm0, %v846_v1  ;;  %3012 = vst.msk [vmem:[%s4793_s10 + $0x128] sm:$0xff] %vm456_vm0, %v696_v4 }
 0x131   : > { %3049 = vst.msk [vmem:[%s4793_s10 + $0x1a8] sm:$0xff] %vm456_vm0, %v838_v5 }
 0x132   : > { %v3480_v24 = vpop.f32.mrb[24].mxu0 }
 0x133   : > { %v717_v2 = vadd.f32 %v3480_v24, %v4816_v8  ;;  %v3504_v3 = vpop.f32.mrb[24].mxu1  ;;  %v708_v41 = vpop.f32.mrb[25].mxu0 }
 0x134   : > { %v859_v63 = vadd.f32 %v3504_v3, %v4816_v8  ;;  %v709_v16 = vadd.f32 %v708_v41, %v4786_v34  ;;  %v850_v0 = vpop.f32.mrb[25].mxu1  ;;  %v3481_v14 = vpop.f32.mrb[26].mxu0 }
 0x135   : > { %3017 = vst.msk [vmem:[%s4793_s10 + $0x150] sm:$0xff] %vm456_vm0, %v717_v2  ;;  %v851_v7 = vadd.f32 %v850_v0, %v4786_v34  ;;  %v720_v42 = vadd.f32 %v3481_v14, %v4818_v11  ;;  %v3505_v35 = vpop.f32.mrb[26].mxu1  ;;  %v711_v6 = vpop.f32.mrb[27].mxu0  ;;  %v5003_v14 = vmov (%p181_p0), 0.0  }
 0x136   : > { %3054 = vst.msk [vmem:[%s4793_s10 + $0x1d0] sm:$0xff] %vm456_vm0, %v859_v63  ;;  %3015 = vst.msk [vmem:[%s4793_s10 + $0x140] sm:$0xff] %vm456_vm0, %v709_v16  ;;  %v862_v8 = vadd.f32 %v3505_v35, %v4818_v11  ;;  %v712_v39 = vadd.f32 %v711_v6, %v4788_v36  ;;  %v853_v10 = vpop.f32.mrb[27].mxu1  ;;  %v5011_v35 = vmov (%p181_p0), 0.0   ;;  %v5013_v6 = vmov (%p181_p0), 0.0  }
 0x137   : > { %3052 = vst.msk [vmem:[%s4793_s10 + $0x1c0] sm:$0xff] %vm456_vm0, %v851_v7  ;;  %3018 = vst.msk [vmem:[%s4793_s10 + $0x158] sm:$0xff] %vm456_vm0, %v720_v42  ;;  %v854_v34 = vadd.f32 %v853_v10, %v4788_v36  ;;  %v5005_v7 = vmov (%p181_p0), 0.0   ;;  %v5009_v42 = vmov (%p181_p0), 0.0  }
 0x138   : > { %3055 = vst.msk [vmem:[%s4793_s10 + $0x1d8] sm:$0xff] %vm456_vm0, %v862_v8  ;;  %3016 = vst.msk [vmem:[%s4793_s10 + $0x148] sm:$0xff] %vm456_vm0, %v712_v39 }
 0x139   : > { %3053 = vst.msk [vmem:[%s4793_s10 + $0x1c8] sm:$0xff] %vm456_vm0, %v854_v34 }
 0x13a   : > { %v3484_v32 = vpop.f32.mrb[28].mxu0 }
 0x13b   : > { %v733_v11 = vadd.f32 %v3484_v32, %v4870_v9  ;;  %v3508_v12 = vpop.f32.mrb[28].mxu1  ;;  %v724_v1 = vpop.f32.mrb[29].mxu0  ;;  %183 = sbr.rel (!%p181_p0) target bundleno = 26 (0x1a), region = 90 }
 0x13c   : > { %v875_v4 = vadd.f32 %v3508_v12, %v4870_v9  ;;  %v725_v40 = vadd.f32 %v724_v1, %v4844_v15  ;;  %v866_v36 = vpop.f32.mrb[29].mxu1  ;;  %v3485_v5 = vpop.f32.mrb[30].mxu0 }
 0x13d   : > { %3021 = vst.msk [vmem:[%s4793_s10 + $0x170] sm:$0xff] %vm456_vm0, %v733_v11  ;;  %v867_v24 = vadd.f32 %v866_v36, %v4844_v15  ;;  %v736_v2 = vadd.f32 %v3485_v5, %v4874_v38  ;;  %v3509_v3 = vpop.f32.mrb[30].mxu1  ;;  %v727_v41 = vpop.f32.mrb[31].mxu0  ;;  %v4999_v15 = vmov (%p181_p0), 0.0  }
 0x13e   : > { %3058 = vst.msk [vmem:[%s4793_s10 + $0x1f0] sm:$0xff] %vm456_vm0, %v875_v4  ;;  %3019 = vst.msk [vmem:[%s4793_s10 + $0x160] sm:$0xff] %vm456_vm0, %v725_v40  ;;  %v878_v9 = vadd.f32 %v3509_v3, %v4874_v38  ;;  %v728_v63 = vadd.f32 %v727_v41, %v4846_v13  ;;  %v869_v16 = vpop.f32.mrb[31].mxu1  ;;  %v5001_v38 = vmov (%p181_p0), 0.0  }
 0x13f   : > { %3056 = vst.msk [vmem:[%s4793_s10 + $0x1e0] sm:$0xff] %vm456_vm0, %v867_v24  ;;  %3022 = vst.msk [vmem:[%s4793_s10 + $0x178] sm:$0xff] %vm456_vm0, %v736_v2  ;;  %v870_v0 = vadd.f32 %v869_v16, %v4846_v13  ;;  %v5007_v13 = vmov (%p181_p0), 0.0  }
 0x140   : > { %3059 = vst.msk [vmem:[%s4793_s10 + $0x1f8] sm:$0xff] %vm456_vm0, %v878_v9  ;;  %3020 = vst.msk [vmem:[%s4793_s10 + $0x168] sm:$0xff] %vm456_vm0, %v728_v63 }
 0x141   : > { %3057 = vst.msk [vmem:[%s4793_s10 + $0x1e8] sm:$0xff] %vm456_vm0, %v870_v0 }
 0x142 LB: > { %v932_v43 = vpack.c.bf16 %v4174_v35, %v4178_v6  ;;  %v933_v44 = vpack.c.bf16 %v4166_v13, %v4170_v42  ;;  %v5669_v18 = vld [vmem:[#allocation24_spill] sm:$0xff]  ;;  %v5670_v17 = vld [vmem:[#allocation23_spill] sm:$0xff]  ;;  %vm974_vm4 = vcmask 261120   ;;  %v4186_v46 = vmov 0   ;;  %v5671_v20 = vld [vmem:[#allocation26_spill] sm:$0xff]  ;;  %s3278_s0 = sshll.u32 %s4182_s5, 10  ;;  %s4182_s5 = sphi %s5015_s5, %s904_s5   ;;  %v4178_v6 = vphi %v5013_v6, %v5677_v6   ;;  %v4174_v35 = vphi %v5011_v35, %v5676_v35   ;;  %v4170_v42 = vphi %v5009_v42, %v5675_v42   ;;  %v4166_v13 = vphi %v5007_v13, %v5674_v13   ;;  %v4162_v7 = vphi %v5005_v7, %v2753_v7   ;;  %v4158_v14 = vphi %v5003_v14, %v2754_v14   ;;  %v4154_v38 = vphi %v5001_v38, %v2755_v38   ;;  %v4150_v15 = vphi %v4999_v15, %v2756_v15  }
 0x143   : > { %v5038_v45 = vcombine.low %v5670_v17, %v5669_v18  ;;  %3759 = vset.pattern.permute.xlu1 %v4186_v46  ;;  %3758 = vset.pattern.permute.xlu0 %v4186_v46  ;;  %v5672_v19 = vld [vmem:[#allocation25_spill] sm:$0xff]  ;;  %v5052_v48 = vcombine.low %v4336_v21, %v4341_v22  ;;  %v5062_v49 = vcombine.low %v4346_v23, %v4351_v25  ;;  %v5673_v53 = vld [vmem:[#allocation27_spill] sm:$0xff]  ;;  %s5094_s11 = scalar_lea.vmem [#allocation2], %s3278_s0  ;;  %s3060_s12 = sshll.u32 %s4182_s5, 3  ;;  %vm1229_vm5 = vcmask 57344  }
 0x144   : > { %3510 = vmatprep.subr.bf16.mxu0 %v932_v43  ;;  %1192 = vperm.xlu1 %3759, %v4509_v60   ;;  %v5047_v47 = vcombine.low %v5672_v19, %v5671_v20  ;;  %v5067_v50 = vcombine.low %v4356_v26, %v4361_v27  ;;  %v5075_v51 = vcombine.low %v4366_v28, %v4371_v29  ;;  %s5159_s15 = scalar_lea.vmem %s5594_s6, %s3060_s12  ;;  %s904_s5 = sadd.s32 1, %s4182_s5  }
 0x145   : > { %3514 = vmatprep.mubr.msk.bf16.mxu0 %vm974_vm4, %v5038_v45  ;;  %3511 = vmatpush3.bf16.msra.mxu0 %v932_v43  ;;  %v5079_v52 = vcombine.low %v4376_v30, %v4381_v31  ;;  %v5087_v54 = vcombine.low %v5673_v53, %v4391_v33  ;;  %p901_p1 = scmp.ge.s32.totalorder %s904_s5, 8  }
 0x146   : > { %3512 = vmatprep.subr.bf16.mxu0 %v933_v44  ;;  %3534 = vmatprep.mubr.msk.bf16.mxu1 %vm974_vm4, %v5038_v45  ;;  %s4187_s16 = smov (%p901_p1), [#allocation4]  }
 0x147   : > { %1182 = vperm.xlu0 %3758, %v4499_v58   ;;  %s2797_s17 = sshll.u32 (%p901_p1), %s4187_s16, 4  ;;  %s2798_s17 = int_to_ptr.vmem [resolvable:$true] %s2797_s17 }
 0x148   : > { %1197 = vperm.xlu1 %3759, %v4514_v61   ;;  %v918_v55 = vld [vmem:[%s5094_s11 + $0x10] sm:$0xff]  ;;  %v916_v57 = vld [vmem:[%s5094_s11] sm:$0xff]  ;;  %v919_v39 = vld [vmem:[%s5094_s11 + $0x18] sm:$0xff]  ;;  %s4080_s1 = scalar_lea.vmem (%p901_p1), %s2798_s17, 512  ;;  %p4085_p3 = scmp.lt.s32.totalorder (%p901_p1), %s2798_s17, %s2798_s17 }
 0x149   : > { %3513 = vmatpush3.bf16.msra.mxu0 %v933_v44  ;;  %v917_v32 = vld [vmem:[%s5094_s11 + $0x8] sm:$0xff]  ;;  %v922_v40 = vld [vmem:[%s5094_s11 + $0x30] sm:$0xff]  ;;  %v920_v36 = vld [vmem:[%s5094_s11 + $0x20] sm:$0xff]  ;;  %p4081_p2 = scmp.ne.s32.totalorder (%p901_p1), %s2798_s17, %s4080_s1  ;;  %p4086_p4 = scmp.lt.s32.totalorder (%p901_p1), %s4080_s1, %s4080_s1 }
 0x14a   : > { %v923_v24 = vld [vmem:[%s5094_s11 + $0x38] sm:$0xff]  ;;  %v921_v41 = vld [vmem:[%s5094_s11 + $0x28] sm:$0xff]  ;;  %v926_v42 = vld [vmem:[%s5094_s11 + $0x50] sm:$0xff] }
 0x14b   : > { %1187 = vperm.xlu0 %3758, %v4504_v59   ;;  %v924_v35 = vld [vmem:[%s5094_s11 + $0x40] sm:$0xff]  ;;  %v927_v43 = vld [vmem:[%s5094_s11 + $0x58] sm:$0xff]  ;;  %p4087_p5 = por (%p901_p1), %p4086_p4, %p4085_p3 }
 0x14c   : > { %3515 = vmatmul.mubr.msk.bf16.vlgmr.msra.gmra.mrb[0].mxu0 %vm974_vm4, %v5047_v47 }
 0x14d   : > { %3518 = vmatprep.mubr.msk.bf16.mxu0 %vm974_vm4, %v5052_v48  ;;  %p4088_p6 = pnand (%p901_p1), %p4087_p5, %p4081_p2 }
 0x14f   : > { %1220 = vperm.xlu0 %3758, %v4516_v62  }
 0x154   : > { %3519 = vmatmul.mubr.msk.bf16.gmra.mrb[4].mxu0 %vm974_vm4, %v5062_v49 }
 0x155   : > { %3522 = vmatprep.mubr.msk.bf16.mxu0 %vm974_vm4, %v5067_v50 }
 0x15c   : > { %3523 = vmatmul.mubr.msk.bf16.gmra.mrb[8].mxu0 %vm974_vm4, %v5075_v51 }
 0x15d   : > { %3526 = vmatprep.mubr.msk.bf16.mxu0 %vm974_vm4, %v5079_v52 }
 0x164   : > { %3527 = vmatmul.mubr.msk.bf16.gmra.mrb[12].mxu0 %vm974_vm4, %v5087_v54 }
 0x165   : > { %3554 = vmatprep.mubr.msk.bf16.mxu0 %vm974_vm4, %v5038_v45 }
 0x21f   : > { %v3516_v56 = vpop.f32.mrb[0].mxu0 }
 0x220   : > { %v1033_v8 = vpop.f32.mrb[1].mxu0  ;;  %v1098_v34 = vadd.f32 %v3516_v56, %v918_v55  ;;  %v925_v55 = vld [vmem:[%s5094_s11 + $0x48] sm:$0xff] }
 0x221   : > { %v3517_v10 = vpop.f32.mrb[2].mxu0  ;;  %v1096_v12 = vadd.f32 %v1033_v8, %v916_v57 }
 0x222   : > { %v1036_v11 = vpop.f32.mrb[3].mxu0  ;;  %v1099_v1 = vadd.f32 %v3517_v10, %v919_v39  ;;  %3760 = vtanh.f32 %v1098_v34 }
 0x223   : > { %v1097_v4 = vadd.f32 %v1036_v11, %v917_v32  ;;  %3762 = vtanh.f32 %v1096_v12 }
 0x224   : > { %3764 = vtanh.f32 %v1099_v1 }
 0x225   : > { %3766 = vtanh.f32 %v1097_v4 }
 0x227   : > { %v3520_v5 = vpop.f32.mrb[4].mxu0 }
 0x228   : > { %v1102_v2 = vadd.f32 %v3520_v5, %v922_v40  ;;  %v1049_v3 = vpop.f32.mrb[5].mxu0  ;;  %v930_v40 = vld [vmem:[%s5094_s11 + $0x70] sm:$0xff] }
 0x229   : > { %v1100_v9 = vadd.f32 %v1049_v3, %v920_v36  ;;  %v3521_v63 = vpop.f32.mrb[6].mxu0 }
 0x22a   : > { %3768 = vtanh.f32 %v1102_v2  ;;  %v1103_v16 = vadd.f32 %v3521_v63, %v923_v24  ;;  %v1052_v0 = vpop.f32.mrb[7].mxu0  ;;  %v928_v24 = vld [vmem:[%s5094_s11 + $0x60] sm:$0xff]  ;;  %v931_v63 = vld [vmem:[%s5094_s11 + $0x78] sm:$0xff] }
 0x22b   : > { %3770 = vtanh.f32 %v1100_v9  ;;  %v1101_v13 = vadd.f32 %v1052_v0, %v921_v41 }
 0x22c   : > { %3772 = vtanh.f32 %v1103_v16  ;;  %v3761_v44 = vpop.eup %3760 }
 0x22d   : > { %3774 = vtanh.f32 %v1101_v13  ;;  %v3763_v56 = vpop.eup %3762  ;;  %v1130_v3 = vmul.f32 0.5, %v3761_v44 }
 0x22e   : > { %v3765_v39 = vpop.eup %3764  ;;  %v1128_v16 = vmul.f32 0.5, %v3763_v56 }
 0x22f   : > { %v3524_v6 = vpop.f32.mrb[8].mxu0  ;;  %v3767_v32 = vpop.eup %3766 }
 0x230   : > { %v1106_v46 = vadd.f32 %v3524_v6, %v926_v42  ;;  %v1065_v53 = vpop.f32.mrb[9].mxu0  ;;  %v1131_v6 = vmul.f32 0.5, %v3765_v39 }
 0x231   : > { %v1104_v57 = vadd.f32 %v1065_v53, %v924_v35  ;;  %v3525_v8 = vpop.f32.mrb[10].mxu0  ;;  %v929_v35 = vld [vmem:[%s5094_s11 + $0x68] sm:$0xff] }
 0x232   : > { %3776 = vtanh.f32 %v1106_v46  ;;  %v1107_v10 = vadd.f32 %v3525_v8, %v927_v43  ;;  %v1068_v34 = vpop.f32.mrb[11].mxu0 }
 0x233   : > { %3778 = vtanh.f32 %v1104_v57  ;;  %v1105_v11 = vadd.f32 %v1068_v34, %v925_v55  ;;  %v1129_v55 = vmul.f32 0.5, %v3767_v32  ;;  %v1146_v34 = vadd.f32 0.5, %v1130_v3 }
 0x234   : > { %v3769_v12 = vpop.eup %3768  ;;  %3780 = vtanh.f32 %v1107_v10 }
 0x235   : > { %v3771_v1 = vpop.eup %3770  ;;  %v1134_v4 = vmul.f32 0.5, %v3769_v12  ;;  %3782 = vtanh.f32 %v1105_v11  ;;  %v1145_v32 = vadd.f32 0.5, %v1129_v55 }
 0x236   : > { %v3773_v36 = vpop.eup %3772  ;;  %v1132_v5 = vmul.f32 0.5, %v3771_v1  ;;  %v1144_v1 = vadd.f32 0.5, %v1128_v16 }
 0x237   : > { %v3775_v2 = vpop.eup %3774  ;;  %v1135_v41 = vmul.f32 0.5, %v3773_v36  ;;  %v3528_v9 = vpop.f32.mrb[12].mxu0  ;;  %v1150_v43 = vadd.f32 0.5, %v1134_v4  ;;  %v1147_v36 = vadd.f32 0.5, %v1131_v6 }
 0x238   : > { %v1133_v0 = vmul.f32 0.5, %v3775_v2  ;;  %v1110_v13 = vadd.f32 %v3528_v9, %v930_v40  ;;  %v1081_v42 = vpop.f32.mrb[13].mxu0  ;;  %v1148_v57 = vadd.f32 0.5, %v1132_v5 }
 0x239   : > { %v1108_v46 = vadd.f32 %v1081_v42, %v928_v24  ;;  %v3529_v53 = vpop.f32.mrb[14].mxu0  ;;  %v1151_v11 = vadd.f32 0.5, %v1135_v41  ;;  %v1162_v39 = vmul.f32 %v4154_v38, %v1150_v43 }
 0x23a   : > { %3784 = vtanh.f32 %v1110_v13  ;;  %v1111_v8 = vadd.f32 %v3529_v53, %v931_v63  ;;  %v1084_v10 = vpop.f32.mrb[15].mxu0  ;;  %v1149_v56 = vadd.f32 0.5, %v1133_v0  ;;  %v1160_v5 = vmul.f32 %v4162_v7, %v1148_v57  ;;  %v5128_v53 = vpop.permute.xlu0 %1182 }
 0x23b   : > { %3786 = vtanh.f32 %v1108_v46  ;;  %v1109_v44 = vadd.f32 %v1084_v10, %v929_v35  ;;  %v1163_v3 = vmul.f32 %v4150_v15, %v1151_v11  ;;  %v5130_v10 = vpop.permute.xlu1 %1192 }
 0x23c   : > { %v3777_v12 = vpop.eup %3776  ;;  %3788 = vtanh.f32 %v1111_v8  ;;  %v1161_v16 = vmul.f32 %v4158_v14, %v1149_v56 }
 0x23d   : > { %v3779_v40 = vpop.eup %3778  ;;  %v1166_v4 = vmul.f32 %v3777_v12, %v1146_v34  ;;  %3790 = vtanh.f32 %v1109_v44 }
 0x23e   : > { %v3781_v24 = vpop.eup %3780  ;;  %v1164_v2 = vmul.f32 %v3779_v40, %v1144_v1 }
 0x23f   : > { %v3783_v9 = vpop.eup %3782  ;;  %v5115_v41 = vadd.f32 %v1166_v4, %v1162_v39  ;;  %v1167_v63 = vmul.f32 %v3781_v24, %v1147_v36  ;;  %v5132_v39 = vpop.permute.xlu0 %1187 }
 0x240   : > { %v5118_v0 = vadd.f32 %v1164_v2, %v1160_v5  ;;  %v1165_v13 = vmul.f32 %v3783_v9, %v1145_v32  ;;  %v5135_v5 = vpop.permute.xlu1 %1197 }
 0x241   : > { %3792 = vtanh.f32 %v5115_v41  ;;  %v5121_v38 = vadd.f32 %v1167_v63, %v1163_v3 }
 0x242   : > { %v5123_v42 = vadd.f32 %v1165_v13, %v1161_v16  ;;  %3794 = vtanh.f32 %v5118_v0 }
 0x243   : > { %3796 = vtanh.f32 %v5121_v38 }
 0x244   : > { %v3785_v7 = vpop.eup %3784  ;;  %3798 = vtanh.f32 %v5123_v42 }
 0x245   : > { %v3787_v15 = vpop.eup %3786  ;;  %v1142_v35 = vmul.f32 0.5, %v3785_v7 }
 0x246   : > { %v3789_v6 = vpop.eup %3788  ;;  %v1140_v14 = vmul.f32 0.5, %v3787_v15 }
 0x247   : > { %v3791_v43 = vpop.eup %3790  ;;  %v1143_v46 = vmul.f32 0.5, %v3789_v6  ;;  %v1158_v55 = vadd.f32 0.5, %v1142_v35 }
 0x248   : > { %v1156_v57 = vadd.f32 0.5, %v1140_v14  ;;  %v1141_v8 = vmul.f32 0.5, %v3791_v43 }
 0x249   : > { %v1159_v44 = vadd.f32 0.5, %v1143_v46 }
 0x24a   : > { %v1157_v1 = vadd.f32 0.5, %v1141_v8  ;;  %v1225_v8 = vsub.s32 0, %v4408_v37 }
 0x24b   : > { %v3793_v34 = vpop.eup %3792 }
 0x24c   : > { %v3795_v11 = vpop.eup %3794  ;;  %v1178_v40 = vmul.f32 %v3793_v34, %v1158_v55  ;;  %v1221_v34 = vpop.permute.xlu0 %1220 }
 0x24d   : > { %v3797_v12 = vpop.eup %3796  ;;  %v1176_v56 = vmul.f32 %v3795_v11, %v1156_v57 }
 0x24e   : > { %v3799_v36 = vpop.eup %3798  ;;  %v1179_v4 = vmul.f32 %v3797_v12, %v1159_v44  ;;  %v1202_v63 = vmul.f32 %v5130_v10, %v1178_v40  ;;  %v5150_v12 = vrot.slane %v1221_v34, %v1225_v8 }
 0x24f   : > { %v1177_v24 = vmul.f32 %v3799_v36, %v1157_v1  ;;  %v1200_v32 = vmul.f32 %v5128_v53, %v1176_v56 }
 0x250   : > { %v1251_v2 = vpack.c.bf16 %v1179_v4, %v1178_v40  ;;  %v1203_v7 = vmul.f32 %v5135_v5, %v1179_v4  ;;  %v1208_v35 = vsel %vm456_vm0, %v1202_v63, 0.0  ;;  %v3082_v40 = vld [vmem:[%s5094_s11 + $0x90] sm:$0xff]  ;;  %v3080_v4 = vld [vmem:[%s5094_s11 + $0x80] sm:$0xff] }
 0x251   : > { %v1201_v9 = vmul.f32 %v5132_v39, %v1177_v24  ;;  %v1250_v3 = vpack.c.bf16 %v1177_v24, %v1176_v56  ;;  %v1205_v16 = vsel %vm456_vm0, %v1200_v32, 0.0  ;;  %v3083_v32 = vld [vmem:[%s5094_s11 + $0x98] sm:$0xff] }
 0x252   : > { %v1210_v14 = vsel %vm456_vm0, %v1203_v7, 0.0 }
 0x253   : > { %v1206_v13 = vsel %vm456_vm0, %v1201_v9, 0.0  ;;  %3530 = vmatprep.subr.bf16.mxu1 %v1250_v3 }
 0x254   : > { %v1207_v15 = vadd.f32 %v1206_v13, %v1205_v16  ;;  %3531 = vmatpush3.bf16.msra.mxu1 %v1250_v3  ;;  %v3081_v3 = vld [vmem:[%s5094_s11 + $0x88] sm:$0xff] }
 0x255   : > { %3532 = vmatprep.subr.bf16.mxu1 %v1251_v2 }
 0x256   : > { %v1209_v6 = vadd.f32 %v1208_v35, %v1207_v15  ;;  %v3086_v15 = vld [vmem:[%s5094_s11 + $0xb0] sm:$0xff]  ;;  %v3084_v35 = vld [vmem:[%s5094_s11 + $0xa0] sm:$0xff] }
 0x258   : > { %v1211_v43 = vadd.f32 %v1210_v14, %v1209_v6  ;;  %3533 = vmatpush3.bf16.msra.mxu1 %v1251_v2  ;;  %v3087_v14 = vld [vmem:[%s5094_s11 + $0xb8] sm:$0xff] }
 0x25a   : > { %v1212_v46 = vrot.slane %v1211_v43, 4 }
 0x25b   : > { %3535 = vmatmul.mubr.msk.bf16.vlgmr.msra.gmra.mrb[0].mxu1 %vm974_vm4, %v5047_v47 }
 0x25c   : > { %v1213_v55 = vadd.f32 %v1212_v46, %v1211_v43  ;;  %3538 = vmatprep.mubr.msk.bf16.mxu1 %vm974_vm4, %v5052_v48 }
 0x25e   : > { %v1214_v57 = vrot.slane %v1213_v55, 2 }
 0x260   : > { %v1215_v11 = vadd.f32 %v1214_v57, %v1213_v55  ;;  %v3085_v55 = vld [vmem:[%s5094_s11 + $0xa8] sm:$0xff] }
 0x262   : > { %v1216_v44 = vrot.slane %v1215_v11, 1 }
 0x263   : > { %3539 = vmatmul.mubr.msk.bf16.gmra.mrb[4].mxu1 %vm974_vm4, %v5062_v49 }
 0x264   : > { %v1217_v1 = vadd.f32 %v1216_v44, %v1215_v11  ;;  %3542 = vmatprep.mubr.msk.bf16.mxu1 %vm974_vm4, %v5067_v50 }
 0x266   : > { %v1227_v56 = vadd.f32 %v5150_v12, %v1217_v1  ;;  %v3090_v1 = vld [vmem:[%s5094_s11 + $0xd0] sm:$0xff] }
 0x268   : > { %1230 = vst.msk [vmem:[%s5159_s15] sm:$0x1] %vm1229_vm5, %v1227_v56  ;;  %v3088_v56 = vld [vmem:[%s5094_s11 + $0xc0] sm:$0xff] }
 0x26b   : > { %3543 = vmatmul.mubr.msk.bf16.gmra.mrb[8].mxu1 %vm974_vm4, %v5075_v51 }
 0x26c   : > { %3546 = vmatprep.mubr.msk.bf16.mxu1 %vm974_vm4, %v5079_v52 }
 0x273   : > { %3547 = vmatmul.mubr.msk.bf16.gmra.mrb[12].mxu1 %vm974_vm4, %v5087_v54 }
 0x274   : > { %3574 = vmatprep.mubr.msk.bf16.mxu1 %vm974_vm4, %v5038_v45 }
 0x32e   : > { %v3536_v36 = vpop.f32.mrb[0].mxu1 }
 0x32f   : > { %v1286_v24 = vpop.f32.mrb[1].mxu1  ;;  %v1351_v9 = vadd.f32 %v3536_v36, %v3082_v40  ;;  %v3091_v36 = vld [vmem:[%s5094_s11 + $0xd8] sm:$0xff] }
 0x330   : > { %v3537_v2 = vpop.f32.mrb[2].mxu1  ;;  %v1349_v16 = vadd.f32 %v3080_v4, %v1286_v24 }
 0x331   : > { %v1289_v63 = vpop.f32.mrb[3].mxu1  ;;  %v1352_v13 = vadd.f32 %v3537_v2, %v3083_v32  ;;  %3800 = vtanh.f32 %v1351_v9  ;;  %v3089_v2 = vld [vmem:[%s5094_s11 + $0xc8] sm:$0xff] }
 0x332   : > { %v1350_v7 = vadd.f32 %v3081_v3, %v1289_v63  ;;  %3802 = vtanh.f32 %v1349_v16 }
 0x333   : > { %3804 = vtanh.f32 %v1352_v13 }
 0x334   : > { %3806 = vtanh.f32 %v1350_v7 }
 0x336   : > { %v3540_v6 = vpop.f32.mrb[4].mxu1 }
 0x337   : > { %v1355_v43 = vadd.f32 %v3540_v6, %v3086_v15  ;;  %v1302_v46 = vpop.f32.mrb[5].mxu1 }
 0x338   : > { %v1353_v57 = vadd.f32 %v3084_v35, %v1302_v46  ;;  %v3541_v8 = vpop.f32.mrb[6].mxu1  ;;  %v3094_v46 = vld [vmem:[%s5094_s11 + $0xf0] sm:$0xff] }
 0x339   : > { %3808 = vtanh.f32 %v1355_v43  ;;  %v1356_v34 = vadd.f32 %v3541_v8, %v3087_v14  ;;  %v1305_v11 = vpop.f32.mrb[7].mxu1  ;;  %v3092_v8 = vld [vmem:[%s5094_s11 + $0xe0] sm:$0xff] }
 0x33a   : > { %3810 = vtanh.f32 %v1353_v57  ;;  %v1354_v44 = vadd.f32 %v3085_v55, %v1305_v11 }
 0x33b   : > { %3812 = vtanh.f32 %v1356_v34  ;;  %v3801_v4 = vpop.eup %3800 }
 0x33c   : > { %3814 = vtanh.f32 %v1354_v44  ;;  %v3803_v9 = vpop.eup %3802  ;;  %v1383_v11 = vmul.f32 0.5, %v3801_v4 }
 0x33d   : > { %v3805_v16 = vpop.eup %3804 }
 0x33e   : > { %v3544_v40 = vpop.f32.mrb[8].mxu1  ;;  %v3807_v15 = vpop.eup %3806  ;;  %v1399_v18 = vadd.f32 0.5, %v1383_v11 }
 0x33f   : > { %v1359_v24 = vadd.f32 %v3544_v40, %v3090_v1  ;;  %v1318_v32 = vpop.f32.mrb[9].mxu1  ;;  %v1381_v40 = vmul.f32 0.5, %v3803_v9 }
 0x340   : > { %v1357_v3 = vadd.f32 %v3088_v56, %v1318_v32  ;;  %v3545_v63 = vpop.f32.mrb[10].mxu1  ;;  %v3095_v56 = vld [vmem:[%s5094_s11 + $0xf8] sm:$0xff] }
 0x341   : > { %3816 = vtanh.f32 %v1359_v24  ;;  %v1360_v13 = vadd.f32 %v3545_v63, %v3091_v36  ;;  %v1321_v7 = vpop.f32.mrb[11].mxu1  ;;  %v1397_v20 = vadd.f32 0.5, %v1381_v40 }
 0x342   : > { %3818 = vtanh.f32 %v1357_v3  ;;  %v1358_v35 = vadd.f32 %v3089_v2, %v1321_v7  ;;  %v3093_v2 = vld [vmem:[%s5094_s11 + $0xe8] sm:$0xff]  ;;  %v1384_v3 = vmul.f32 0.5, %v3805_v16 }
 0x343   : > { %v3809_v6 = vpop.eup %3808  ;;  %3820 = vtanh.f32 %v1360_v13 }
 0x344   : > { %v3811_v14 = vpop.eup %3810  ;;  %v1387_v43 = vmul.f32 0.5, %v3809_v6  ;;  %3822 = vtanh.f32 %v1358_v35  ;;  %v1382_v6 = vmul.f32 0.5, %v3807_v15 }
 0x345   : > { %v3813_v55 = vpop.eup %3812  ;;  %v1385_v57 = vmul.f32 0.5, %v3811_v14 }
 0x346   : > { %v3815_v34 = vpop.eup %3814  ;;  %v1388_v44 = vmul.f32 0.5, %v3813_v55  ;;  %v3548_v1 = vpop.f32.mrb[12].mxu1  ;;  %v1403_v63 = vadd.f32 0.5, %v1387_v43  ;;  %v1398_v15 = vadd.f32 0.5, %v1382_v6 }
 0x347   : > { %v1386_v36 = vmul.f32 0.5, %v3815_v34  ;;  %v1363_v24 = vadd.f32 %v3548_v1, %v3094_v46  ;;  %v1334_v32 = vpop.f32.mrb[13].mxu1  ;;  %v1401_v35 = vadd.f32 0.5, %v1385_v57  ;;  %v1400_v34 = vadd.f32 0.5, %v1384_v3 }
 0x348   : > { %v1361_v13 = vadd.f32 %v3092_v8, %v1334_v32  ;;  %v3549_v7 = vpop.f32.mrb[14].mxu1  ;;  %v1404_v19 = vadd.f32 0.5, %v1388_v44  ;;  %v1415_v16 = vmul.f32 %v1403_v63, %v5115_v41 }
 0x349   : > { %3824 = vtanh.f32 %v1363_v24  ;;  %v1364_v17 = vadd.f32 %v3549_v7, %v3095_v56  ;;  %v1337_v14 = vpop.f32.mrb[15].mxu1  ;;  %v1402_v9 = vadd.f32 0.5, %v1386_v36  ;;  %v1413_v57 = vmul.f32 %v1401_v35, %v5118_v0 }
 0x34a   : > { %3826 = vtanh.f32 %v1361_v13  ;;  %v1362_v4 = vadd.f32 %v3093_v2, %v1337_v14  ;;  %v1416_v11 = vmul.f32 %v1404_v19, %v5121_v38 }
 0x34b   : > { %v3817_v55 = vpop.eup %3816  ;;  %3828 = vtanh.f32 %v1364_v17  ;;  %v1414_v40 = vmul.f32 %v1402_v9, %v5123_v42 }
 0x34c   : > { %v3819_v46 = vpop.eup %3818  ;;  %v1419_v43 = vmul.f32 %v3817_v55, %v1399_v18  ;;  %3830 = vtanh.f32 %v1362_v4 }
 0x34d   : > { %v3821_v8 = vpop.eup %3820  ;;  %v1417_v1 = vmul.f32 %v3819_v46, %v1397_v20 }
 0x34e   : > { %v3823_v56 = vpop.eup %3822  ;;  %v5191_v44 = vadd.f32 %v1419_v43, %v1415_v16  ;;  %v1420_v24 = vmul.f32 %v3821_v8, %v1400_v34 }
 0x34f   : > { %v5194_v17 = vadd.f32 %v1417_v1, %v1413_v57  ;;  %v1418_v36 = vmul.f32 %v3823_v56, %v1398_v15 }
 0x350   : > { %3832 = vtanh.f32 %v5191_v44  ;;  %v5197_v18 = vadd.f32 %v1420_v24, %v1416_v11 }
 0x351   : > { %3834 = vtanh.f32 %v5194_v17  ;;  %v5200_v41 = vadd.f32 %v1418_v36, %v1414_v40 }
 0x352   : > { %3836 = vtanh.f32 %v5197_v18 }
 0x353   : > { %v3825_v20 = vpop.eup %3824  ;;  %3838 = vtanh.f32 %v5200_v41 }
 0x354   : > { %v3827_v19 = vpop.eup %3826  ;;  %v1395_v0 = vmul.f32 0.5, %v3825_v20 }
 0x355   : > { %v3829_v38 = vpop.eup %3828  ;;  %v1393_v42 = vmul.f32 0.5, %v3827_v19 }
 0x356   : > { %v3831_v32 = vpop.eup %3830  ;;  %v1396_v2 = vmul.f32 0.5, %v3829_v38  ;;  %v1411_v3 = vadd.f32 0.5, %v1395_v0 }
 0x357   : > { %v1409_v63 = vadd.f32 0.5, %v1393_v42  ;;  %v1394_v13 = vmul.f32 0.5, %v3831_v32 }
 0x358   : > { %v1412_v35 = vadd.f32 0.5, %v1396_v2 }
 0x359   : > { %v1410_v4 = vadd.f32 0.5, %v1394_v13 }
 0x35a   : > { %v3833_v7 = vpop.eup %3832 }
 0x35b   : > { %v3835_v6 = vpop.eup %3834  ;;  %v1431_v9 = vmul.f32 %v3833_v7, %v1411_v3  ;;  %v3110_v7 = vld [vmem:[%s5094_s11 + $0x110] sm:$0xff] }
 0x35c   : > { %v3837_v14 = vpop.eup %3836  ;;  %v1429_v55 = vmul.f32 %v3835_v6, %v1409_v63 }
 0x35d   : > { %v3839_v46 = vpop.eup %3838  ;;  %v1432_v34 = vmul.f32 %v3837_v14, %v1412_v35  ;;  %v1435_v1 = vmul.f32 %v1431_v9, %v5130_v10  ;;  %v3108_v35 = vld [vmem:[%s5094_s11 + $0x100] sm:$0xff] }
 0x35e   : > { %v1430_v16 = vmul.f32 %v3839_v46, %v1410_v4  ;;  %v1433_v43 = vmul.f32 %v1429_v55, %v5128_v53  ;;  %v3111_v4 = vld [vmem:[%s5094_s11 + $0x118] sm:$0xff]  ;;  %v3109_v46 = vld [vmem:[%s5094_s11 + $0x108] sm:$0xff] }
 0x35f   : > { %v1473_v8 = vpack.c.bf16 %v1432_v34, %v1431_v9  ;;  %v1436_v24 = vmul.f32 %v1432_v34, %v5135_v5  ;;  %v1440_v36 = vsel %vm456_vm0, %v1435_v1, 0.0 }
 0x360   : > { %v1434_v15 = vmul.f32 %v1430_v16, %v5132_v39  ;;  %v1472_v57 = vpack.c.bf16 %v1430_v16, %v1429_v55  ;;  %v1437_v56 = vsel %vm456_vm0, %v1433_v43, 0.0 }
 0x361   : > { %v1442_v19 = vsel %vm456_vm0, %v1436_v24, 0.0 }
 0x362   : > { %v1438_v11 = vsel %vm456_vm0, %v1434_v15, 0.0  ;;  %3550 = vmatprep.subr.bf16.mxu0 %v1472_v57  ;;  %v3114_v15 = vld [vmem:[%s5094_s11 + $0x130] sm:$0xff] }
 0x363   : > { %v1439_v40 = vadd.f32 %v1438_v11, %v1437_v56  ;;  %3551 = vmatpush3.bf16.msra.mxu0 %v1472_v57  ;;  %v3112_v57 = vld [vmem:[%s5094_s11 + $0x120] sm:$0xff]  ;;  %v3115_v56 = vld [vmem:[%s5094_s11 + $0x138] sm:$0xff] }
 0x364   : > { %3552 = vmatprep.subr.bf16.mxu0 %v1473_v8 }
 0x365   : > { %v1441_v20 = vadd.f32 %v1440_v36, %v1439_v40  ;;  %v3113_v40 = vld [vmem:[%s5094_s11 + $0x128] sm:$0xff] }
 0x367   : > { %v1443_v0 = vadd.f32 %v1442_v19, %v1441_v20  ;;  %3553 = vmatpush3.bf16.msra.mxu0 %v1473_v8 }
 0x369   : > { %v1444_v38 = vrot.slane %v1443_v0, 4 }
 0x36a   : > { %3555 = vmatmul.mubr.msk.bf16.vlgmr.msra.gmra.mrb[16].mxu0 %vm974_vm4, %v5047_v47 }
 0x36b   : > { %v1445_v42 = vadd.f32 %v1444_v38, %v1443_v0  ;;  %3558 = vmatprep.mubr.msk.bf16.mxu0 %vm974_vm4, %v5052_v48 }
 0x36d   : > { %v1446_v32 = vrot.slane %v1445_v42, 2 }
 0x36f   : > { %v1447_v2 = vadd.f32 %v1446_v32, %v1445_v42  ;;  %v3118_v42 = vld [vmem:[%s5094_s11 + $0x150] sm:$0xff]  ;;  %v3116_v32 = vld [vmem:[%s5094_s11 + $0x140] sm:$0xff] }
 0x371   : > { %v1448_v3 = vrot.slane %v1447_v2, 1 }
 0x372   : > { %3559 = vmatmul.mubr.msk.bf16.gmra.mrb[20].mxu0 %vm974_vm4, %v5062_v49 }
 0x373   : > { %v1449_v63 = vadd.f32 %v1448_v3, %v1447_v2  ;;  %3562 = vmatprep.mubr.msk.bf16.mxu0 %vm974_vm4, %v5067_v50  ;;  %v3119_v3 = vld [vmem:[%s5094_s11 + $0x158] sm:$0xff] }
 0x375   : > { %v1450_v13 = vadd.f32 %v1449_v63, %v5150_v12 }
 0x377   : > { %3105 = vst.msk [vmem:[%s5159_s15 + $0x1] sm:$0x1] %vm1229_vm5, %v1450_v13 }
 0x37a   : > { %3563 = vmatmul.mubr.msk.bf16.gmra.mrb[24].mxu0 %vm974_vm4, %v5075_v51 }
 0x37b   : > { %3566 = vmatprep.mubr.msk.bf16.mxu0 %vm974_vm4, %v5079_v52 }
 0x382   : > { %3567 = vmatmul.mubr.msk.bf16.gmra.mrb[28].mxu0 %vm974_vm4, %v5087_v54 }
 0x383   : > { %3594 = vmatprep.mubr.msk.bf16.mxu0 %vm974_vm4, %v5038_v45 }
 0x43d   : > { %v3556_v6 = vpop.f32.mrb[16].mxu0 }
 0x43e   : > { %v1508_v14 = vpop.f32.mrb[17].mxu0  ;;  %v1573_v9 = vadd.f32 %v3556_v6, %v3110_v7  ;;  %v3117_v6 = vld [vmem:[%s5094_s11 + $0x148] sm:$0xff] }
 0x43f   : > { %v3557_v55 = vpop.f32.mrb[18].mxu0  ;;  %v1571_v16 = vadd.f32 %v3108_v35, %v1508_v14 }
 0x440   : > { %v1511_v34 = vpop.f32.mrb[19].mxu0  ;;  %v1574_v43 = vadd.f32 %v3557_v55, %v3111_v4  ;;  %3840 = vtanh.f32 %v1573_v9 }
 0x441   : > { %v1572_v8 = vadd.f32 %v3109_v46, %v1511_v34  ;;  %3842 = vtanh.f32 %v1571_v16 }
 0x442   : > { %3844 = vtanh.f32 %v1574_v43 }
 0x443   : > { %3846 = vtanh.f32 %v1572_v8 }
 0x445   : > { %v3560_v1 = vpop.f32.mrb[20].mxu0 }
 0x446   : > { %v1577_v11 = vadd.f32 %v3560_v1, %v3114_v15  ;;  %v1524_v24 = vpop.f32.mrb[21].mxu0 }
 0x447   : > { %v1575_v36 = vadd.f32 %v3112_v57, %v1524_v24  ;;  %v3561_v20 = vpop.f32.mrb[22].mxu0  ;;  %v3122_v57 = vld [vmem:[%s5094_s11 + $0x170] sm:$0xff] }
 0x448   : > { %3848 = vtanh.f32 %v1577_v11  ;;  %v1578_v19 = vadd.f32 %v3561_v20, %v3115_v56  ;;  %v1527_v0 = vpop.f32.mrb[23].mxu0  ;;  %v3120_v11 = vld [vmem:[%s5094_s11 + $0x160] sm:$0xff] }
 0x449   : > { %3850 = vtanh.f32 %v1575_v36  ;;  %v1576_v38 = vadd.f32 %v3113_v40, %v1527_v0 }
 0x44a   : > { %3852 = vtanh.f32 %v1578_v19  ;;  %v3841_v63 = vpop.eup %3840  ;;  %v3123_v19 = vld [vmem:[%s5094_s11 + $0x178] sm:$0xff] }
 0x44b   : > { %3854 = vtanh.f32 %v1576_v38  ;;  %v3843_v35 = vpop.eup %3842  ;;  %v1605_v40 = vmul.f32 0.5, %v3841_v63 }
 0x44c   : > { %v3845_v55 = vpop.eup %3844  ;;  %v1603_v0 = vmul.f32 0.5, %v3843_v35 }
 0x44d   : > { %v3564_v2 = vpop.f32.mrb[24].mxu0  ;;  %v3847_v34 = vpop.eup %3846 }
 0x44e   : > { %v1581_v13 = vadd.f32 %v3564_v2, %v3118_v42  ;;  %v1540_v7 = vpop.f32.mrb[25].mxu0  ;;  %v3121_v2 = vld [vmem:[%s5094_s11 + $0x168] sm:$0xff] }
 0x44f   : > { %v1579_v14 = vadd.f32 %v3116_v32, %v1540_v7  ;;  %v3565_v4 = vpop.f32.mrb[26].mxu0 }
 0x450   : > { %3856 = vtanh.f32 %v1581_v13  ;;  %v1582_v9 = vadd.f32 %v3565_v4, %v3119_v3  ;;  %v1543_v46 = vpop.f32.mrb[27].mxu0  ;;  %v1606_v3 = vmul.f32 0.5, %v3845_v55 }
 0x451   : > { %3858 = vtanh.f32 %v1579_v14  ;;  %v1580_v16 = vadd.f32 %v3117_v6, %v1543_v46  ;;  %v1604_v14 = vmul.f32 0.5, %v3847_v34 }
 0x452   : > { %v3849_v43 = vpop.eup %3848  ;;  %3860 = vtanh.f32 %v1582_v9 }
 0x453   : > { %v3851_v8 = vpop.eup %3850  ;;  %v1609_v15 = vmul.f32 0.5, %v3849_v43  ;;  %3862 = vtanh.f32 %v1580_v16  ;;  %v1621_v16 = vadd.f32 0.5, %v1605_v40  ;;  %v1620_v34 = vadd.f32 0.5, %v1604_v14 }
 0x454   : > { %v3853_v1 = vpop.eup %3852  ;;  %v1607_v56 = vmul.f32 0.5, %v3851_v8 }
 0x455   : > { %v3855_v24 = vpop.eup %3854  ;;  %v1610_v36 = vmul.f32 0.5, %v3853_v1  ;;  %v3568_v20 = vpop.f32.mrb[28].mxu0  ;;  %v1625_v13 = vadd.f32 0.5, %v1609_v15  ;;  %v1619_v1 = vadd.f32 0.5, %v1603_v0 }
 0x456   : > { %v1608_v38 = vmul.f32 0.5, %v3855_v24  ;;  %v1585_v42 = vadd.f32 %v3568_v20, %v3122_v57  ;;  %v1556_v32 = vpop.f32.mrb[29].mxu0  ;;  %v1623_v4 = vadd.f32 0.5, %v1607_v56  ;;  %v1622_v24 = vadd.f32 0.5, %v1606_v3 }
 0x457   : > { %v1583_v7 = vadd.f32 %v3120_v11, %v1556_v32  ;;  %v3569_v6 = vpop.f32.mrb[30].mxu0  ;;  %v1626_v43 = vadd.f32 0.5, %v1610_v36  ;;  %v1637_v55 = vmul.f32 %v1625_v13, %v5191_v44 }
 0x458   : > { %3864 = vtanh.f32 %v1585_v42  ;;  %v1586_v9 = vadd.f32 %v3569_v6, %v3123_v19  ;;  %v1559_v46 = vpop.f32.mrb[31].mxu0  ;;  %v1624_v35 = vadd.f32 0.5, %v1608_v38  ;;  %v1635_v56 = vmul.f32 %v1623_v4, %v5194_v17 }
 0x459   : > { %3866 = vtanh.f32 %v1583_v7  ;;  %v1584_v63 = vadd.f32 %v3121_v2, %v1559_v46  ;;  %v1638_v40 = vmul.f32 %v1626_v43, %v5197_v18 }
 0x45a   : > { %v3857_v8 = vpop.eup %3856  ;;  %3868 = vtanh.f32 %v1586_v9  ;;  %v1636_v0 = vmul.f32 %v1624_v35, %v5200_v41 }
 0x45b   : > { %v3859_v57 = vpop.eup %3858  ;;  %v1641_v15 = vmul.f32 %v3857_v8, %v1621_v16  ;;  %3870 = vtanh.f32 %v1584_v63 }
 0x45c   : > { %v3861_v11 = vpop.eup %3860  ;;  %v1639_v20 = vmul.f32 %v3859_v57, %v1619_v1 }
 0x45d   : > { %v3863_v19 = vpop.eup %3862  ;;  %v5250_v36 = vadd.f32 %v1641_v15, %v1637_v55  ;;  %v1642_v42 = vmul.f32 %v3861_v11, %v1622_v24 }
 0x45e   : > { %v5253_v38 = vadd.f32 %v1639_v20, %v1635_v56  ;;  %v1640_v32 = vmul.f32 %v3863_v19, %v1620_v34 }
 0x45f   : > { %3872 = vtanh.f32 %v5250_v36  ;;  %v5256_v44 = vadd.f32 %v1642_v42, %v1638_v40 }
 0x460   : > { %3874 = vtanh.f32 %v5253_v38  ;;  %v5259_v2 = vadd.f32 %v1640_v32, %v1636_v0 }
 0x461   : > { %3876 = vtanh.f32 %v5256_v44 }
 0x462   : > { %v3865_v17 = vpop.eup %3864  ;;  %3878 = vtanh.f32 %v5259_v2 }
 0x463   : > { %v3867_v18 = vpop.eup %3866  ;;  %v1617_v3 = vmul.f32 0.5, %v3865_v17 }
 0x464   : > { %v3869_v13 = vpop.eup %3868  ;;  %v1615_v41 = vmul.f32 0.5, %v3867_v18 }
 0x465   : > { %v3871_v7 = vpop.eup %3870  ;;  %v1618_v6 = vmul.f32 0.5, %v3869_v13  ;;  %v1633_v14 = vadd.f32 0.5, %v1617_v3 }
 0x466   : > { %v1631_v4 = vadd.f32 0.5, %v1615_v41  ;;  %v1616_v9 = vmul.f32 0.5, %v3871_v7 }
 0x467   : > { %v1634_v43 = vadd.f32 0.5, %v1618_v6 }
 0x468   : > { %v1632_v8 = vadd.f32 0.5, %v1616_v9 }
 0x469   : > { %v3873_v46 = vpop.eup %3872 }
 0x46a   : > { %v3875_v16 = vpop.eup %3874  ;;  %v1653_v35 = vmul.f32 %v3873_v46, %v1633_v14  ;;  %v3138_v46 = vld [vmem:[%s5094_s11 + $0x190] sm:$0xff] }
 0x46b   : > { %v3877_v63 = vpop.eup %3876  ;;  %v1651_v1 = vmul.f32 %v3875_v16, %v1631_v4 }
 0x46c   : > { %v3879_v57 = vpop.eup %3878  ;;  %v1654_v24 = vmul.f32 %v3877_v63, %v1634_v43  ;;  %v1657_v20 = vmul.f32 %v1653_v35, %v5130_v10  ;;  %v3136_v43 = vld [vmem:[%s5094_s11 + $0x180] sm:$0xff] }
 0x46d   : > { %v1652_v55 = vmul.f32 %v3879_v57, %v1632_v8  ;;  %v1655_v15 = vmul.f32 %v1651_v1, %v5128_v53  ;;  %v3139_v8 = vld [vmem:[%s5094_s11 + $0x198] sm:$0xff]  ;;  %v3137_v57 = vld [vmem:[%s5094_s11 + $0x188] sm:$0xff] }
 0x46e   : > { %v1695_v11 = vpack.c.bf16 %v1654_v24, %v1653_v35  ;;  %v1658_v42 = vmul.f32 %v1654_v24, %v5135_v5  ;;  %v1662_v32 = vsel %vm456_vm0, %v1657_v20, 0.0 }
 0x46f   : > { %v1656_v34 = vmul.f32 %v1652_v55, %v5132_v39  ;;  %v1694_v56 = vpack.c.bf16 %v1652_v55, %v1651_v1  ;;  %v1659_v19 = vsel %vm456_vm0, %v1655_v15, 0.0 }
 0x470   : > { %v1664_v18 = vsel %vm456_vm0, %v1658_v42, 0.0 }
 0x471   : > { %v1660_v40 = vsel %vm456_vm0, %v1656_v34, 0.0  ;;  %3570 = vmatprep.subr.bf16.mxu1 %v1694_v56  ;;  %v3142_v34 = vld [vmem:[%s5094_s11 + $0x1b0] sm:$0xff] }
 0x472   : > { %v1661_v0 = vadd.f32 %v1660_v40, %v1659_v19  ;;  %3571 = vmatpush3.bf16.msra.mxu1 %v1694_v56  ;;  %v3140_v56 = vld [vmem:[%s5094_s11 + $0x1a0] sm:$0xff]  ;;  %v3143_v19 = vld [vmem:[%s5094_s11 + $0x1b8] sm:$0xff] }
 0x473   : > { %3572 = vmatprep.subr.bf16.mxu1 %v1695_v11 }
 0x474   : > { %v1663_v17 = vadd.f32 %v1662_v32, %v1661_v0  ;;  %v3141_v0 = vld [vmem:[%s5094_s11 + $0x1a8] sm:$0xff] }
 0x476   : > { %v1665_v3 = vadd.f32 %v1664_v18, %v1663_v17  ;;  %3573 = vmatpush3.bf16.msra.mxu1 %v1695_v11 }
 0x478   : > { %v1666_v13 = vrot.slane %v1665_v3, 4 }
 0x479   : > { %3575 = vmatmul.mubr.msk.bf16.vlgmr.msra.gmra.mrb[16].mxu1 %vm974_vm4, %v5047_v47 }
 0x47a   : > { %v1667_v41 = vadd.f32 %v1666_v13, %v1665_v3  ;;  %3578 = vmatprep.mubr.msk.bf16.mxu1 %vm974_vm4, %v5052_v48 }
 0x47c   : > { %v1668_v7 = vrot.slane %v1667_v41, 2 }
 0x47e   : > { %v1669_v6 = vadd.f32 %v1668_v7, %v1667_v41  ;;  %v3146_v41 = vld [vmem:[%s5094_s11 + $0x1d0] sm:$0xff]  ;;  %v3144_v7 = vld [vmem:[%s5094_s11 + $0x1c0] sm:$0xff] }
 0x480   : > { %v1670_v14 = vrot.slane %v1669_v6, 1 }
 0x481   : > { %3579 = vmatmul.mubr.msk.bf16.gmra.mrb[20].mxu1 %vm974_vm4, %v5062_v49 }
 0x482   : > { %v1671_v4 = vadd.f32 %v1670_v14, %v1669_v6  ;;  %3582 = vmatprep.mubr.msk.bf16.mxu1 %vm974_vm4, %v5067_v50  ;;  %v3147_v14 = vld [vmem:[%s5094_s11 + $0x1d8] sm:$0xff] }
 0x484   : > { %v1672_v9 = vadd.f32 %v1671_v4, %v5150_v12 }
 0x486   : > { %3133 = vst.msk [vmem:[%s5159_s15 + $0x2] sm:$0x1] %vm1229_vm5, %v1672_v9 }
 0x489   : > { %3583 = vmatmul.mubr.msk.bf16.gmra.mrb[24].mxu1 %vm974_vm4, %v5075_v51 }
 0x48a   : > { %3586 = vmatprep.mubr.msk.bf16.mxu1 %vm974_vm4, %v5079_v52 }
 0x491   : > { %3587 = vmatmul.mubr.msk.bf16.gmra.mrb[28].mxu1 %vm974_vm4, %v5087_v54 }
 0x492   : > { %3614 = vmatprep.mubr.msk.bf16.mxu1 %vm974_vm4, %v5038_v45 }
 0x54c   : > { %v3576_v16 = vpop.f32.mrb[16].mxu1 }
 0x54d   : > { %v1730_v63 = vpop.f32.mrb[17].mxu1  ;;  %v1795_v35 = vadd.f32 %v3576_v16, %v3138_v46  ;;  %v3145_v16 = vld [vmem:[%s5094_s11 + $0x1c8] sm:$0xff] }
 0x54e   : > { %v3577_v1 = vpop.f32.mrb[18].mxu1  ;;  %v1793_v55 = vadd.f32 %v3136_v43, %v1730_v63 }
 0x54f   : > { %v1733_v24 = vpop.f32.mrb[19].mxu1  ;;  %v1796_v15 = vadd.f32 %v3577_v1, %v3139_v8  ;;  %3880 = vtanh.f32 %v1795_v35 }
 0x550   : > { %v1794_v11 = vadd.f32 %v3137_v57, %v1733_v24  ;;  %3882 = vtanh.f32 %v1793_v55 }
 0x551   : > { %3884 = vtanh.f32 %v1796_v15 }
 0x552   : > { %3886 = vtanh.f32 %v1794_v11 }
 0x554   : > { %v3580_v20 = vpop.f32.mrb[20].mxu1 }
 0x555   : > { %v1799_v40 = vadd.f32 %v3580_v20, %v3142_v34  ;;  %v1746_v42 = vpop.f32.mrb[21].mxu1 }
 0x556   : > { %v1797_v32 = vadd.f32 %v3140_v56, %v1746_v42  ;;  %v3581_v17 = vpop.f32.mrb[22].mxu1  ;;  %v3150_v56 = vld [vmem:[%s5094_s11 + $0x1f0] sm:$0xff] }
 0x557   : > { %3888 = vtanh.f32 %v1799_v40  ;;  %v1800_v18 = vadd.f32 %v3581_v17, %v3143_v19  ;;  %v1749_v3 = vpop.f32.mrb[23].mxu1  ;;  %v3148_v40 = vld [vmem:[%s5094_s11 + $0x1e0] sm:$0xff] }
 0x558   : > { %3890 = vtanh.f32 %v1797_v32  ;;  %v1798_v13 = vadd.f32 %v3141_v0, %v1749_v3 }
 0x559   : > { %3892 = vtanh.f32 %v1800_v18  ;;  %v3881_v4 = vpop.eup %3880  ;;  %v3151_v18 = vld [vmem:[%s5094_s11 + $0x1f8] sm:$0xff] }
 0x55a   : > { %3894 = vtanh.f32 %v1798_v13  ;;  %v3883_v43 = vpop.eup %3882  ;;  %v1827_v0 = vmul.f32 0.5, %v3881_v4 }
 0x55b   : > { %v3885_v1 = vpop.eup %3884  ;;  %v1825_v3 = vmul.f32 0.5, %v3883_v43 }
 0x55c   : > { %v3584_v6 = vpop.f32.mrb[24].mxu1  ;;  %v3887_v24 = vpop.eup %3886 }
 0x55d   : > { %v1803_v9 = vadd.f32 %v3584_v6, %v3146_v41  ;;  %v1762_v46 = vpop.f32.mrb[25].mxu1  ;;  %v3149_v6 = vld [vmem:[%s5094_s11 + $0x1e8] sm:$0xff] }
 0x55e   : > { %v1801_v63 = vadd.f32 %v3144_v7, %v1762_v46  ;;  %v3585_v8 = vpop.f32.mrb[26].mxu1 }
 0x55f   : > { %3896 = vtanh.f32 %v1803_v9  ;;  %v1804_v35 = vadd.f32 %v3585_v8, %v3147_v14  ;;  %v1765_v57 = vpop.f32.mrb[27].mxu1  ;;  %v1828_v14 = vmul.f32 0.5, %v3885_v1 }
 0x560   : > { %3898 = vtanh.f32 %v1801_v63  ;;  %v1802_v55 = vadd.f32 %v3145_v16, %v1765_v57  ;;  %v1826_v63 = vmul.f32 0.5, %v3887_v24 }
 0x561   : > { %v3889_v15 = vpop.eup %3888  ;;  %3900 = vtanh.f32 %v1804_v35 }
 0x562   : > { %v3891_v11 = vpop.eup %3890  ;;  %v1831_v34 = vmul.f32 0.5, %v3889_v15  ;;  %3902 = vtanh.f32 %v1802_v55  ;;  %v1843_v55 = vadd.f32 0.5, %v1827_v0  ;;  %v1842_v24 = vadd.f32 0.5, %v1826_v63 }
 0x563   : > { %v3893_v20 = vpop.eup %3892  ;;  %v1829_v19 = vmul.f32 0.5, %v3891_v11 }
 0x564   : > { %v3895_v42 = vpop.eup %3894  ;;  %v1832_v32 = vmul.f32 0.5, %v3893_v20  ;;  %v3588_v17 = vpop.f32.mrb[28].mxu1  ;;  %v1847_v9 = vadd.f32 0.5, %v1831_v34  ;;  %v1841_v20 = vadd.f32 0.5, %v1825_v3 }
 0x565   : > { %v1830_v13 = vmul.f32 0.5, %v3895_v42  ;;  %v1807_v41 = vadd.f32 %v3588_v17, %v3150_v56  ;;  %v1778_v7 = vpop.f32.mrb[29].mxu1  ;;  %v1845_v8 = vadd.f32 0.5, %v1829_v19  ;;  %v1844_v42 = vadd.f32 0.5, %v1828_v14 }
 0x566   : > { %v1805_v46 = vadd.f32 %v3148_v40, %v1778_v7  ;;  %v3589_v16 = vpop.f32.mrb[30].mxu1  ;;  %v1848_v15 = vadd.f32 0.5, %v1832_v32  ;;  %v1859_v1 = vmul.f32 %v1847_v9, %v5250_v36 }
 0x567   : > { %3904 = vtanh.f32 %v1807_v41  ;;  %v1808_v35 = vadd.f32 %v3589_v16, %v3151_v18  ;;  %v1781_v57 = vpop.f32.mrb[31].mxu1  ;;  %v1846_v43 = vadd.f32 0.5, %v1830_v13  ;;  %v1857_v19 = vmul.f32 %v1845_v8, %v5253_v38 }
 0x568   : > { %3906 = vtanh.f32 %v1805_v46  ;;  %v1806_v4 = vadd.f32 %v3149_v6, %v1781_v57  ;;  %v1860_v0 = vmul.f32 %v1848_v15, %v5256_v44 }
 0x569   : > { %v3897_v11 = vpop.eup %3896  ;;  %3908 = vtanh.f32 %v1808_v35  ;;  %v1858_v3 = vmul.f32 %v1846_v43, %v5259_v2 }
 0x56a   : > { %v3899_v56 = vpop.eup %3898  ;;  %v1863_v34 = vmul.f32 %v3897_v11, %v1843_v55  ;;  %3910 = vtanh.f32 %v1806_v4 }
 0x56b   : > { %v3901_v40 = vpop.eup %3900  ;;  %v1861_v17 = vmul.f32 %v3899_v56, %v1841_v20 }
 0x56c   : > { %v3903_v18 = vpop.eup %3902  ;;  %v5309_v32 = vadd.f32 %v1863_v34, %v1859_v1  ;;  %v1864_v41 = vmul.f32 %v3901_v40, %v1844_v42 }
 0x56d   : > { %v5312_v13 = vadd.f32 %v1861_v17, %v1857_v19  ;;  %v1862_v7 = vmul.f32 %v3903_v18, %v1842_v24 }
 0x56e   : > { %3912 = vtanh.f32 %v5309_v32  ;;  %v5315_v36 = vadd.f32 %v1864_v41, %v1860_v0 }
 0x56f   : > { %3914 = vtanh.f32 %v5312_v13  ;;  %v5318_v6 = vadd.f32 %v1862_v7, %v1858_v3 }
 0x570   : > { %3916 = vtanh.f32 %v5315_v36 }
 0x571   : > { %v3905_v38 = vpop.eup %3904  ;;  %3918 = vtanh.f32 %v5318_v6 }
 0x572   : > { %v3907_v44 = vpop.eup %3906  ;;  %v1839_v14 = vmul.f32 0.5, %v3905_v38 }
 0x573   : > { %v3909_v9 = vpop.eup %3908  ;;  %v1837_v2 = vmul.f32 0.5, %v3907_v44 }
 0x574   : > { %v3911_v46 = vpop.eup %3910  ;;  %v1840_v16 = vmul.f32 0.5, %v3909_v9  ;;  %v1855_v63 = vadd.f32 0.5, %v1839_v14 }
 0x575   : > { %v1853_v8 = vadd.f32 0.5, %v1837_v2  ;;  %v1838_v35 = vmul.f32 0.5, %v3911_v46 }
 0x576   : > { %v1856_v15 = vadd.f32 0.5, %v1840_v16 }
 0x577   : > { %v1854_v11 = vadd.f32 0.5, %v1838_v35 }
 0x578   : > { %v3913_v57 = vpop.eup %3912 }
 0x579   : > { %v3915_v55 = vpop.eup %3914  ;;  %v1875_v43 = vmul.f32 %v3913_v57, %v1855_v63  ;;  %v3166_v57 = vld [vmem:[%s5094_s11 + $0x210] sm:$0xff] }
 0x57a   : > { %v3917_v4 = vpop.eup %3916  ;;  %v1873_v20 = vmul.f32 %v3915_v55, %v1853_v8 }
 0x57b   : > { %v3919_v56 = vpop.eup %3918  ;;  %v1876_v42 = vmul.f32 %v3917_v4, %v1856_v15  ;;  %v1879_v17 = vmul.f32 %v1875_v43, %v5130_v10  ;;  %v3164_v15 = vld [vmem:[%s5094_s11 + $0x200] sm:$0xff] }
 0x57c   : > { %v1874_v1 = vmul.f32 %v3919_v56, %v1854_v11  ;;  %v1877_v34 = vmul.f32 %v1873_v20, %v5128_v53  ;;  %v3167_v11 = vld [vmem:[%s5094_s11 + $0x218] sm:$0xff]  ;;  %v3165_v56 = vld [vmem:[%s5094_s11 + $0x208] sm:$0xff] }
 0x57d   : > { %v1917_v40 = vpack.c.bf16 %v1876_v42, %v1875_v43  ;;  %v1880_v41 = vmul.f32 %v1876_v42, %v5135_v5  ;;  %v1884_v7 = vsel %vm456_vm0, %v1879_v17, 0.0 }
 0x57e   : > { %v1878_v24 = vmul.f32 %v1874_v1, %v5132_v39  ;;  %v1916_v19 = vpack.c.bf16 %v1874_v1, %v1873_v20  ;;  %v1881_v18 = vsel %vm456_vm0, %v1877_v34, 0.0 }
 0x57f   : > { %v1886_v44 = vsel %vm456_vm0, %v1880_v41, 0.0 }
 0x580   : > { %v1882_v0 = vsel %vm456_vm0, %v1878_v24, 0.0  ;;  %3590 = vmatprep.subr.bf16.mxu0 %v1916_v19  ;;  %v3170_v24 = vld [vmem:[%s5094_s11 + $0x230] sm:$0xff] }
 0x581   : > { %v1883_v3 = vadd.f32 %v1882_v0, %v1881_v18  ;;  %3591 = vmatpush3.bf16.msra.mxu0 %v1916_v19  ;;  %v3168_v19 = vld [vmem:[%s5094_s11 + $0x220] sm:$0xff]  ;;  %v3171_v18 = vld [vmem:[%s5094_s11 + $0x238] sm:$0xff] }
 0x582   : > { %3592 = vmatprep.subr.bf16.mxu0 %v1917_v40 }
 0x583   : > { %v1885_v38 = vadd.f32 %v1884_v7, %v1883_v3  ;;  %v3169_v3 = vld [vmem:[%s5094_s11 + $0x228] sm:$0xff] }
 0x585   : > { %v1887_v14 = vadd.f32 %v1886_v44, %v1885_v38  ;;  %3593 = vmatpush3.bf16.msra.mxu0 %v1917_v40 }
 0x587   : > { %v1888_v9 = vrot.slane %v1887_v14, 4 }
 0x588   : > { %3595 = vmatmul.mubr.msk.bf16.vlgmr.msra.gmra.mrb[32].mxu0 %vm974_vm4, %v5047_v47 }
 0x589   : > { %v1889_v2 = vadd.f32 %v1888_v9, %v1887_v14  ;;  %3598 = vmatprep.mubr.msk.bf16.mxu0 %vm974_vm4, %v5052_v48 }
 0x58b   : > { %v1890_v46 = vrot.slane %v1889_v2, 2 }
 0x58d   : > { %v1891_v16 = vadd.f32 %v1890_v46, %v1889_v2  ;;  %v3174_v2 = vld [vmem:[%s5094_s11 + $0x250] sm:$0xff]  ;;  %v3172_v46 = vld [vmem:[%s5094_s11 + $0x240] sm:$0xff] }
 0x58f   : > { %v1892_v63 = vrot.slane %v1891_v16, 1 }
 0x590   : > { %3599 = vmatmul.mubr.msk.bf16.gmra.mrb[36].mxu0 %vm974_vm4, %v5062_v49 }
 0x591   : > { %v1893_v8 = vadd.f32 %v1892_v63, %v1891_v16  ;;  %3602 = vmatprep.mubr.msk.bf16.mxu0 %vm974_vm4, %v5067_v50  ;;  %v3175_v63 = vld [vmem:[%s5094_s11 + $0x258] sm:$0xff] }
 0x593   : > { %v1894_v35 = vadd.f32 %v1893_v8, %v5150_v12 }
 0x595   : > { %3161 = vst.msk [vmem:[%s5159_s15 + $0x3] sm:$0x1] %vm1229_vm5, %v1894_v35 }
 0x598   : > { %3603 = vmatmul.mubr.msk.bf16.gmra.mrb[40].mxu0 %vm974_vm4, %v5075_v51 }
 0x599   : > { %3606 = vmatprep.mubr.msk.bf16.mxu0 %vm974_vm4, %v5079_v52 }
 0x5a0   : > { %3607 = vmatmul.mubr.msk.bf16.gmra.mrb[44].mxu0 %vm974_vm4, %v5087_v54 }
 0x5a1   : > { %3634 = vmatprep.mubr.msk.bf16.mxu0 %vm974_vm4, %v5038_v45 }
 0x65b   : > { %v3596_v55 = vpop.f32.mrb[32].mxu0 }
 0x65c   : > { %v1952_v4 = vpop.f32.mrb[33].mxu0  ;;  %v2017_v43 = vadd.f32 %v3596_v55, %v3166_v57  ;;  %v3173_v55 = vld [vmem:[%s5094_s11 + $0x248] sm:$0xff] }
 0x65d   : > { %v3597_v20 = vpop.f32.mrb[34].mxu0  ;;  %v2015_v1 = vadd.f32 %v3164_v15, %v1952_v4 }
 0x65e   : > { %v1955_v42 = vpop.f32.mrb[35].mxu0  ;;  %v2018_v34 = vadd.f32 %v3597_v20, %v3167_v11  ;;  %3920 = vtanh.f32 %v2017_v43 }
 0x65f   : > { %v2016_v40 = vadd.f32 %v3165_v56, %v1955_v42  ;;  %3922 = vtanh.f32 %v2015_v1 }
 0x660   : > { %3924 = vtanh.f32 %v2018_v34 }
 0x661   : > { %3926 = vtanh.f32 %v2016_v40 }
 0x663   : > { %v3600_v17 = vpop.f32.mrb[36].mxu0 }
 0x664   : > { %v2021_v0 = vadd.f32 %v3600_v17, %v3170_v24  ;;  %v1968_v41 = vpop.f32.mrb[37].mxu0 }
 0x665   : > { %v2019_v7 = vadd.f32 %v3168_v19, %v1968_v41  ;;  %v3601_v38 = vpop.f32.mrb[38].mxu0  ;;  %v3178_v19 = vld [vmem:[%s5094_s11 + $0x270] sm:$0xff] }
 0x666   : > { %3928 = vtanh.f32 %v2021_v0  ;;  %v2022_v44 = vadd.f32 %v3601_v38, %v3171_v18  ;;  %v1971_v14 = vpop.f32.mrb[39].mxu0  ;;  %v3176_v0 = vld [vmem:[%s5094_s11 + $0x260] sm:$0xff] }
 0x667   : > { %3930 = vtanh.f32 %v2019_v7  ;;  %v2020_v9 = vadd.f32 %v3169_v3, %v1971_v14 }
 0x668   : > { %3932 = vtanh.f32 %v2022_v44  ;;  %v3921_v8 = vpop.eup %3920  ;;  %v3179_v44 = vld [vmem:[%s5094_s11 + $0x278] sm:$0xff] }
 0x669   : > { %3934 = vtanh.f32 %v2020_v9  ;;  %v3923_v15 = vpop.eup %3922  ;;  %v2049_v3 = vmul.f32 0.5, %v3921_v8 }
 0x66a   : > { %v3925_v20 = vpop.eup %3924  ;;  %v2047_v14 = vmul.f32 0.5, %v3923_v15 }
 0x66b   : > { %v3604_v16 = vpop.f32.mrb[40].mxu0  ;;  %v3927_v42 = vpop.eup %3926 }
 0x66c   : > { %v2025_v35 = vadd.f32 %v3604_v16, %v3174_v2  ;;  %v1984_v57 = vpop.f32.mrb[41].mxu0  ;;  %v3177_v16 = vld [vmem:[%s5094_s11 + $0x268] sm:$0xff] }
 0x66d   : > { %v2023_v4 = vadd.f32 %v3172_v46, %v1984_v57  ;;  %v3605_v11 = vpop.f32.mrb[42].mxu0 }
 0x66e   : > { %3936 = vtanh.f32 %v2025_v35  ;;  %v2026_v43 = vadd.f32 %v3605_v11, %v3175_v63  ;;  %v1987_v56 = vpop.f32.mrb[43].mxu0  ;;  %v2050_v63 = vmul.f32 0.5, %v3925_v20 }
 0x66f   : > { %3938 = vtanh.f32 %v2023_v4  ;;  %v2024_v1 = vadd.f32 %v3173_v55, %v1987_v56  ;;  %v2048_v4 = vmul.f32 0.5, %v3927_v42 }
 0x670   : > { %v3929_v34 = vpop.eup %3928  ;;  %3940 = vtanh.f32 %v2026_v43 }
 0x671   : > { %v3931_v40 = vpop.eup %3930  ;;  %v2053_v24 = vmul.f32 0.5, %v3929_v34  ;;  %3942 = vtanh.f32 %v2024_v1  ;;  %v2065_v1 = vadd.f32 0.5, %v2049_v3  ;;  %v2064_v42 = vadd.f32 0.5, %v2048_v4 }
 0x672   : > { %v3933_v17 = vpop.eup %3932  ;;  %v2051_v18 = vmul.f32 0.5, %v3931_v40 }
 0x673   : > { %v3935_v41 = vpop.eup %3934  ;;  %v2054_v7 = vmul.f32 0.5, %v3933_v17  ;;  %v3608_v38 = vpop.f32.mrb[44].mxu0  ;;  %v2069_v35 = vadd.f32 0.5, %v2053_v24  ;;  %v2063_v17 = vadd.f32 0.5, %v2047_v14 }
 0x674   : > { %v2052_v9 = vmul.f32 0.5, %v3935_v41  ;;  %v2029_v2 = vadd.f32 %v3608_v38, %v3178_v19  ;;  %v2000_v46 = vpop.f32.mrb[45].mxu0  ;;  %v2067_v11 = vadd.f32 0.5, %v2051_v18  ;;  %v2066_v41 = vadd.f32 0.5, %v2050_v63 }
 0x675   : > { %v2027_v57 = vadd.f32 %v3176_v0, %v2000_v46  ;;  %v3609_v55 = vpop.f32.mrb[46].mxu0  ;;  %v2070_v34 = vadd.f32 0.5, %v2054_v7  ;;  %v2081_v20 = vmul.f32 %v2069_v35, %v5309_v32 }
 0x676   : > { %3944 = vtanh.f32 %v2029_v2  ;;  %v2030_v43 = vadd.f32 %v3609_v55, %v3179_v44  ;;  %v2003_v56 = vpop.f32.mrb[47].mxu0  ;;  %v2068_v15 = vadd.f32 0.5, %v2052_v9  ;;  %v2079_v18 = vmul.f32 %v2067_v11, %v5312_v13 }
 0x677   : > { %3946 = vtanh.f32 %v2027_v57  ;;  %v2028_v8 = vadd.f32 %v3177_v16, %v2003_v56  ;;  %v2082_v3 = vmul.f32 %v2070_v34, %v5315_v36 }
 0x678   : > { %v3937_v40 = vpop.eup %3936  ;;  %3948 = vtanh.f32 %v2030_v43  ;;  %v2080_v14 = vmul.f32 %v2068_v15, %v5318_v6 }
 0x679   : > { %v3939_v19 = vpop.eup %3938  ;;  %v2085_v24 = vmul.f32 %v3937_v40, %v2065_v1  ;;  %3950 = vtanh.f32 %v2028_v8 }
 0x67a   : > { %v3941_v0 = vpop.eup %3940  ;;  %v2083_v38 = vmul.f32 %v3939_v19, %v2063_v17 }
 0x67b   : > { %v3943_v44 = vpop.eup %3942  ;;  %v5368_v7 = vadd.f32 %v2085_v24, %v2081_v20  ;;  %v2086_v2 = vmul.f32 %v3941_v0, %v2066_v41 }
 0x67c   : > { %v5371_v9 = vadd.f32 %v2083_v38, %v2079_v18  ;;  %v2084_v46 = vmul.f32 %v3943_v44, %v2064_v42 }
 0x67d   : > { %3952 = vtanh.f32 %v5368_v7  ;;  %v5374_v32 = vadd.f32 %v2086_v2, %v2082_v3 }
 0x67e   : > { %3954 = vtanh.f32 %v5371_v9  ;;  %v5377_v16 = vadd.f32 %v2084_v46, %v2080_v14 }
 0x67f   : > { %3956 = vtanh.f32 %v5374_v32 }
 0x680   : > { %v3945_v13 = vpop.eup %3944  ;;  %3958 = vtanh.f32 %v5377_v16 }
 0x681   : > { %v3947_v36 = vpop.eup %3946  ;;  %v2061_v63 = vmul.f32 0.5, %v3945_v13 }
 0x682   : > { %v3949_v35 = vpop.eup %3948  ;;  %v2059_v6 = vmul.f32 0.5, %v3947_v36 }
 0x683   : > { %v3951_v57 = vpop.eup %3950  ;;  %v2062_v55 = vmul.f32 0.5, %v3949_v35  ;;  %v2077_v4 = vadd.f32 0.5, %v2061_v63 }
 0x684   : > { %v2075_v11 = vadd.f32 0.5, %v2059_v6  ;;  %v2060_v43 = vmul.f32 0.5, %v3951_v57 }
 0x685   : > { %v2078_v34 = vadd.f32 0.5, %v2062_v55 }
 0x686   : > { %v2076_v40 = vadd.f32 0.5, %v2060_v43 }
 0x687   : > { %v3953_v56 = vpop.eup %3952 }
 0x688   : > { %v3955_v1 = vpop.eup %3954  ;;  %v2097_v15 = vmul.f32 %v3953_v56, %v2077_v4  ;;  %v3194_v56 = vld [vmem:[%s5094_s11 + $0x290] sm:$0xff] }
 0x689   : > { %v3957_v8 = vpop.eup %3956  ;;  %v2095_v17 = vmul.f32 %v3955_v1, %v2075_v11 }
 0x68a   : > { %v3959_v19 = vpop.eup %3958  ;;  %v2098_v41 = vmul.f32 %v3957_v8, %v2078_v34  ;;  %v2101_v38 = vmul.f32 %v2097_v15, %v5130_v10  ;;  %v3192_v34 = vld [vmem:[%s5094_s11 + $0x280] sm:$0xff] }
 0x68b   : > { %v2096_v20 = vmul.f32 %v3959_v19, %v2076_v40  ;;  %v2099_v24 = vmul.f32 %v2095_v17, %v5128_v53  ;;  %v3195_v40 = vld [vmem:[%s5094_s11 + $0x298] sm:$0xff]  ;;  %v3193_v19 = vld [vmem:[%s5094_s11 + $0x288] sm:$0xff] }
 0x68c   : > { %v2139_v0 = vpack.c.bf16 %v2098_v41, %v2097_v15  ;;  %v2102_v2 = vmul.f32 %v2098_v41, %v5135_v5  ;;  %v2106_v46 = vsel %vm456_vm0, %v2101_v38, 0.0 }
 0x68d   : > { %v2100_v42 = vmul.f32 %v2096_v20, %v5132_v39  ;;  %v2138_v18 = vpack.c.bf16 %v2096_v20, %v2095_v17  ;;  %v2103_v44 = vsel %vm456_vm0, %v2099_v24, 0.0 }
 0x68e   : > { %v2108_v36 = vsel %vm456_vm0, %v2102_v2, 0.0  ;;  %v3197_v2 = vld [vmem:[%s5094_s11 + $0x2a8] sm:$0xff] }
 0x68f   : > { %v2104_v3 = vsel %vm456_vm0, %v2100_v42, 0.0  ;;  %3610 = vmatprep.subr.bf16.mxu1 %v2138_v18  ;;  %v3198_v42 = vld [vmem:[%s5094_s11 + $0x2b0] sm:$0xff] }
 0x690   : > { %v2105_v14 = vadd.f32 %v2104_v3, %v2103_v44  ;;  %3611 = vmatpush3.bf16.msra.mxu1 %v2138_v18  ;;  %v3196_v18 = vld [vmem:[%s5094_s11 + $0x2a0] sm:$0xff] }
 0x691   : > { %3612 = vmatprep.subr.bf16.mxu1 %v2139_v0 }
 0x692   : > { %v2107_v13 = vadd.f32 %v2106_v46, %v2105_v14 }
 0x694   : > { %v2109_v63 = vadd.f32 %v2108_v36, %v2107_v13  ;;  %3613 = vmatpush3.bf16.msra.mxu1 %v2139_v0 }
 0x696   : > { %v2110_v35 = vrot.slane %v2109_v63, 4 }
 0x697   : > { %3615 = vmatmul.mubr.msk.bf16.vlgmr.msra.gmra.mrb[32].mxu1 %vm974_vm4, %v5047_v47 }
 0x698   : > { %v2111_v6 = vadd.f32 %v2110_v35, %v2109_v63  ;;  %3618 = vmatprep.mubr.msk.bf16.mxu1 %vm974_vm4, %v5052_v48  ;;  %v3202_v35 = vld [vmem:[%s5094_s11 + $0x2d0] sm:$0xff] }
 0x69a   : > { %v2112_v57 = vrot.slane %v2111_v6, 2 }
 0x69c   : > { %v2113_v55 = vadd.f32 %v2112_v57, %v2111_v6  ;;  %v3200_v6 = vld [vmem:[%s5094_s11 + $0x2c0] sm:$0xff] }
 0x69e   : > { %v2114_v4 = vrot.slane %v2113_v55, 1 }
 0x69f   : > { %3619 = vmatmul.mubr.msk.bf16.gmra.mrb[36].mxu1 %vm974_vm4, %v5062_v49 }
 0x6a0   : > { %v2115_v11 = vadd.f32 %v2114_v4, %v2113_v55  ;;  %3622 = vmatprep.mubr.msk.bf16.mxu1 %vm974_vm4, %v5067_v50  ;;  %v3203_v55 = vld [vmem:[%s5094_s11 + $0x2d8] sm:$0xff] }
 0x6a2   : > { %v2116_v43 = vadd.f32 %v2115_v11, %v5150_v12 }
 0x6a4   : > { %3189 = vst.msk [vmem:[%s5159_s15 + $0x4] sm:$0x1] %vm1229_vm5, %v2116_v43 }
 0x6a7   : > { %3623 = vmatmul.mubr.msk.bf16.gmra.mrb[40].mxu1 %vm974_vm4, %v5075_v51 }
 0x6a8   : > { %3626 = vmatprep.mubr.msk.bf16.mxu1 %vm974_vm4, %v5079_v52 }
 0x6af   : > { %3627 = vmatmul.mubr.msk.bf16.gmra.mrb[44].mxu1 %vm974_vm4, %v5087_v54 }
 0x6b0   : > { %3654 = vmatprep.mubr.msk.bf16.mxu1 %vm974_vm4, %v5038_v45  ;;  %v3199_v45 = vld [vmem:[%s5094_s11 + $0x2b8] sm:$0xff] }
 0x76a   : > { %v3616_v1 = vpop.f32.mrb[32].mxu1 }
 0x76b   : > { %v2174_v8 = vpop.f32.mrb[33].mxu1  ;;  %v2239_v15 = vadd.f32 %v3616_v1, %v3194_v56  ;;  %v3201_v56 = vld [vmem:[%s5094_s11 + $0x2c8] sm:$0xff] }
 0x76c   : > { %v3617_v17 = vpop.f32.mrb[34].mxu1  ;;  %v2237_v20 = vadd.f32 %v3192_v34, %v2174_v8 }
 0x76d   : > { %v2177_v41 = vpop.f32.mrb[35].mxu1  ;;  %v2240_v24 = vadd.f32 %v3617_v17, %v3195_v40  ;;  %3960 = vtanh.f32 %v2239_v15 }
 0x76e   : > { %v2238_v0 = vadd.f32 %v3193_v19, %v2177_v41  ;;  %3962 = vtanh.f32 %v2237_v20 }
 0x76f   : > { %3964 = vtanh.f32 %v2240_v24 }
 0x770   : > { %3966 = vtanh.f32 %v2238_v0 }
 0x772   : > { %v3620_v38 = vpop.f32.mrb[36].mxu1 }
 0x773   : > { %v2243_v44 = vadd.f32 %v3620_v38, %v3198_v42  ;;  %v2190_v3 = vpop.f32.mrb[37].mxu1  ;;  %v3206_v42 = vld [vmem:[%s5094_s11 + $0x2f0] sm:$0xff] }
 0x774   : > { %v2241_v14 = vadd.f32 %v3196_v18, %v2190_v3  ;;  %v3621_v46 = vpop.f32.mrb[38].mxu1 }
 0x775   : > { %3968 = vtanh.f32 %v2243_v44  ;;  %v2244_v13 = vadd.f32 %v3621_v46, %v3199_v45  ;;  %v2193_v36 = vpop.f32.mrb[39].mxu1  ;;  %v3204_v45 = vld [vmem:[%s5094_s11 + $0x2e0] sm:$0xff]  ;;  %v3207_v46 = vld [vmem:[%s5094_s11 + $0x2f8] sm:$0xff] }
 0x776   : > { %3970 = vtanh.f32 %v2241_v14  ;;  %v2242_v63 = vadd.f32 %v3197_v2, %v2193_v36 }
 0x777   : > { %3972 = vtanh.f32 %v2244_v13  ;;  %v3961_v4 = vpop.eup %3960 }
 0x778   : > { %3974 = vtanh.f32 %v2242_v63  ;;  %v3963_v1 = vpop.eup %3962  ;;  %v2271_v3 = vmul.f32 0.5, %v3961_v4 }
 0x779   : > { %v3965_v40 = vpop.eup %3964  ;;  %v2269_v13 = vmul.f32 0.5, %v3963_v1 }
 0x77a   : > { %v3624_v57 = vpop.f32.mrb[40].mxu1  ;;  %v3967_v19 = vpop.eup %3966 }
 0x77b   : > { %v2247_v11 = vadd.f32 %v3624_v57, %v3202_v35  ;;  %v2206_v43 = vpop.f32.mrb[41].mxu1  ;;  %v2272_v57 = vmul.f32 0.5, %v3965_v40 }
 0x77c   : > { %v2245_v34 = vadd.f32 %v3200_v6, %v2206_v43  ;;  %v3625_v8 = vpop.f32.mrb[42].mxu1  ;;  %v3205_v6 = vld [vmem:[%s5094_s11 + $0x2e8] sm:$0xff] }
 0x77d   : > { %3976 = vtanh.f32 %v2247_v11  ;;  %v2248_v17 = vadd.f32 %v3625_v8, %v3203_v55  ;;  %v2209_v15 = vpop.f32.mrb[43].mxu1 }
 0x77e   : > { %3978 = vtanh.f32 %v2245_v34  ;;  %v2246_v41 = vadd.f32 %v3201_v56, %v2209_v15  ;;  %v2270_v56 = vmul.f32 0.5, %v3967_v19  ;;  %v2287_v15 = vadd.f32 0.5, %v2271_v3 }
 0x77f   : > { %v3969_v20 = vpop.eup %3968  ;;  %3980 = vtanh.f32 %v2248_v17 }
 0x780   : > { %v3971_v24 = vpop.eup %3970  ;;  %v2275_v0 = vmul.f32 0.5, %v3969_v20  ;;  %3982 = vtanh.f32 %v2246_v41  ;;  %v2286_v19 = vadd.f32 0.5, %v2270_v56 }
 0x781   : > { %v3973_v18 = vpop.eup %3972  ;;  %v2273_v38 = vmul.f32 0.5, %v3971_v24  ;;  %v2285_v24 = vadd.f32 0.5, %v2269_v13 }
 0x782   : > { %v3975_v44 = vpop.eup %3974  ;;  %v2276_v2 = vmul.f32 0.5, %v3973_v18  ;;  %v3628_v14 = vpop.f32.mrb[44].mxu1  ;;  %v2291_v55 = vadd.f32 0.5, %v2275_v0  ;;  %v2288_v18 = vadd.f32 0.5, %v2272_v57 }
 0x783   : > { %v2274_v36 = vmul.f32 0.5, %v3975_v44  ;;  %v2251_v63 = vadd.f32 %v3628_v14, %v3206_v42  ;;  %v2222_v35 = vpop.f32.mrb[45].mxu1  ;;  %v2289_v34 = vadd.f32 0.5, %v2273_v38 }
 0x784   : > { %v2249_v11 = vadd.f32 %v3204_v45, %v2222_v35  ;;  %v3629_v43 = vpop.f32.mrb[46].mxu1  ;;  %v2292_v41 = vadd.f32 0.5, %v2276_v2  ;;  %v2303_v40 = vmul.f32 %v2291_v55, %v5368_v7 }
 0x785   : > { %3984 = vtanh.f32 %v2251_v63  ;;  %v2252_v8 = vadd.f32 %v3629_v43, %v3207_v46  ;;  %v2225_v17 = vpop.f32.mrb[47].mxu1  ;;  %v2290_v1 = vadd.f32 0.5, %v2274_v36  ;;  %v2301_v38 = vmul.f32 %v2289_v34, %v5371_v9 }
 0x786   : > { %3986 = vtanh.f32 %v2249_v11  ;;  %v2250_v4 = vadd.f32 %v3205_v6, %v2225_v17  ;;  %v2304_v3 = vmul.f32 %v2292_v41, %v5374_v32 }
 0x787   : > { %v3977_v20 = vpop.eup %3976  ;;  %3988 = vtanh.f32 %v2252_v8  ;;  %v2302_v13 = vmul.f32 %v2290_v1, %v5377_v16 }
 0x788   : > { %v3979_v42 = vpop.eup %3978  ;;  %v2307_v0 = vmul.f32 %v3977_v20, %v2287_v15  ;;  %3990 = vtanh.f32 %v2250_v4 }
 0x789   : > { %v3981_v45 = vpop.eup %3980  ;;  %v2305_v44 = vmul.f32 %v3979_v42, %v2285_v24 }
 0x78a   : > { %v3983_v14 = vpop.eup %3982  ;;  %v5427_v2 = vadd.f32 %v2307_v0, %v2303_v40  ;;  %v2308_v46 = vmul.f32 %v3981_v45, %v2288_v18 }
 0x78b   : > { %v5430_v36 = vadd.f32 %v2305_v44, %v2301_v38  ;;  %v2306_v63 = vmul.f32 %v3983_v14, %v2286_v19 }
 0x78c   : > { %3992 = vtanh.f32 %v5427_v2  ;;  %v5433_v7 = vadd.f32 %v2308_v46, %v2304_v3 }
 0x78d   : > { %3994 = vtanh.f32 %v5430_v36  ;;  %v5436_v35 = vadd.f32 %v2306_v63, %v2302_v13 }
 0x78e   : > { %3996 = vtanh.f32 %v5433_v7 }
 0x78f   : > { %v3985_v9 = vpop.eup %3984  ;;  %3998 = vtanh.f32 %v5436_v35 }
 0x790   : > { %v3987_v32 = vpop.eup %3986  ;;  %v2283_v6 = vmul.f32 0.5, %v3985_v9 }
 0x791   : > { %v3989_v57 = vpop.eup %3988  ;;  %v2281_v16 = vmul.f32 0.5, %v3987_v32 }
 0x792   : > { %v3991_v55 = vpop.eup %3990  ;;  %v2284_v11 = vmul.f32 0.5, %v3989_v57  ;;  %v2299_v43 = vadd.f32 0.5, %v2283_v6 }
 0x793   : > { %v2297_v56 = vadd.f32 0.5, %v2281_v16  ;;  %v2282_v34 = vmul.f32 0.5, %v3991_v55 }
 0x794   : > { %v2300_v15 = vadd.f32 0.5, %v2284_v11 }
 0x795   : > { %v2298_v4 = vadd.f32 0.5, %v2282_v34  ;;  %v3222_v34 = vld [vmem:[%s5094_s11 + $0x310] sm:$0xff] }
 0x796   : > { %v3993_v8 = vpop.eup %3992 }
 0x797   : > { %v3995_v17 = vpop.eup %3994  ;;  %v2319_v24 = vmul.f32 %v3993_v8, %v2299_v43 }
 0x798   : > { %v3997_v41 = vpop.eup %3996  ;;  %v2317_v20 = vmul.f32 %v3995_v17, %v2297_v56  ;;  %v3220_v17 = vld [vmem:[%s5094_s11 + $0x300] sm:$0xff] }
 0x799   : > { %v3999_v1 = vpop.eup %3998  ;;  %v2320_v42 = vmul.f32 %v3997_v41, %v2300_v15  ;;  %v2323_v38 = vmul.f32 %v2319_v24, %v5130_v10  ;;  %v3223_v41 = vld [vmem:[%s5094_s11 + $0x318] sm:$0xff] }
 0x79a   : > { %v2318_v18 = vmul.f32 %v3999_v1, %v2298_v4  ;;  %v2321_v40 = vmul.f32 %v2317_v20, %v5128_v53 }
 0x79b   : > { %v2361_v0 = vpack.c.bf16 %v2320_v42, %v2319_v24  ;;  %v2324_v3 = vmul.f32 %v2320_v42, %v5135_v5  ;;  %v2328_v13 = vsel %vm456_vm0, %v2323_v38, 0.0  ;;  %v3221_v24 = vld [vmem:[%s5094_s11 + $0x308] sm:$0xff]  ;;  %v3227_v38 = vld [vmem:[%s5094_s11 + $0x338] sm:$0xff] }
 0x79c   : > { %v2322_v45 = vmul.f32 %v2318_v18, %v5132_v39  ;;  %v2360_v19 = vpack.c.bf16 %v2318_v18, %v2317_v20  ;;  %v2325_v44 = vsel %vm456_vm0, %v2321_v40, 0.0 }
 0x79d   : > { %v2330_v9 = vsel %vm456_vm0, %v2324_v3, 0.0  ;;  %v3225_v3 = vld [vmem:[%s5094_s11 + $0x328] sm:$0xff] }
 0x79e   : > { %v2326_v14 = vsel %vm456_vm0, %v2322_v45, 0.0  ;;  %3630 = vmatprep.subr.bf16.mxu0 %v2360_v19  ;;  %v3224_v45 = vld [vmem:[%s5094_s11 + $0x320] sm:$0xff] }
 0x79f   : > { %v2327_v46 = vadd.f32 %v2326_v14, %v2325_v44  ;;  %3631 = vmatpush3.bf16.msra.mxu0 %v2360_v19 }
 0x7a0   : > { %3632 = vmatprep.subr.bf16.mxu0 %v2361_v0 }
 0x7a1   : > { %v2329_v63 = vadd.f32 %v2328_v13, %v2327_v46 }
 0x7a3   : > { %v2331_v32 = vadd.f32 %v2330_v9, %v2329_v63  ;;  %3633 = vmatpush3.bf16.msra.mxu0 %v2361_v0  ;;  %v3226_v0 = vld [vmem:[%s5094_s11 + $0x330] sm:$0xff] }
 0x7a5   : > { %v2332_v6 = vrot.slane %v2331_v32, 4 }
 0x7a6   : > { %3635 = vmatmul.mubr.msk.bf16.vlgmr.msra.gmra.mrb[48].mxu0 %vm974_vm4, %v5047_v47 }
 0x7a7   : > { %v2333_v57 = vadd.f32 %v2332_v6, %v2331_v32  ;;  %3638 = vmatprep.mubr.msk.bf16.mxu0 %vm974_vm4, %v5052_v48  ;;  %v3230_v6 = vld [vmem:[%s5094_s11 + $0x350] sm:$0xff] }
 0x7a9   : > { %v2334_v16 = vrot.slane %v2333_v57, 2 }
 0x7ab   : > { %v2335_v55 = vadd.f32 %v2334_v16, %v2333_v57  ;;  %v3228_v57 = vld [vmem:[%s5094_s11 + $0x340] sm:$0xff] }
 0x7ad   : > { %v2336_v11 = vrot.slane %v2335_v55, 1 }
 0x7ae   : > { %3639 = vmatmul.mubr.msk.bf16.gmra.mrb[52].mxu0 %vm974_vm4, %v5062_v49 }
 0x7af   : > { %v2337_v43 = vadd.f32 %v2336_v11, %v2335_v55  ;;  %3642 = vmatprep.mubr.msk.bf16.mxu0 %vm974_vm4, %v5067_v50  ;;  %v3231_v55 = vld [vmem:[%s5094_s11 + $0x358] sm:$0xff] }
 0x7b1   : > { %v2338_v56 = vadd.f32 %v2337_v43, %v5150_v12 }
 0x7b3   : > { %3217 = vst.msk [vmem:[%s5159_s15 + $0x5] sm:$0x1] %vm1229_vm5, %v2338_v56 }
 0x7b6   : > { %3643 = vmatmul.mubr.msk.bf16.gmra.mrb[56].mxu0 %vm974_vm4, %v5075_v51 }
 0x7b7   : > { %3646 = vmatprep.mubr.msk.bf16.mxu0 %vm974_vm4, %v5079_v52 }
 0x7be   : > { %3647 = vmatmul.mubr.msk.bf16.gmra.mrb[60].mxu0 %vm974_vm4, %v5087_v54 }
 0x879   : > { %v3636_v8 = vpop.f32.mrb[48].mxu0 }
 0x87a   : > { %v2396_v15 = vpop.f32.mrb[49].mxu0  ;;  %v2461_v20 = vadd.f32 %v3636_v8, %v3222_v34  ;;  %v3229_v34 = vld [vmem:[%s5094_s11 + $0x348] sm:$0xff] }
 0x87b   : > { %v3637_v4 = vpop.f32.mrb[50].mxu0  ;;  %v2459_v42 = vadd.f32 %v3220_v17, %v2396_v15 }
 0x87c   : > { %v2399_v1 = vpop.f32.mrb[51].mxu0  ;;  %v2462_v18 = vadd.f32 %v3637_v4, %v3223_v41  ;;  %4000 = vtanh.f32 %v2461_v20 }
 0x87d   : > { %v2460_v40 = vadd.f32 %v3221_v24, %v2399_v1  ;;  %4002 = vtanh.f32 %v2459_v42 }
 0x87e   : > { %4004 = vtanh.f32 %v2462_v18 }
 0x87f   : > { %4006 = vtanh.f32 %v2460_v40 }
 0x881   : > { %v3640_v19 = vpop.f32.mrb[52].mxu0 }
 0x882   : > { %v2465_v44 = vadd.f32 %v3640_v19, %v3226_v0  ;;  %v2412_v14 = vpop.f32.mrb[53].mxu0  ;;  %v3234_v0 = vld [vmem:[%s5094_s11 + $0x370] sm:$0xff] }
 0x883   : > { %v2463_v46 = vadd.f32 %v3224_v45, %v2412_v14  ;;  %v3641_v13 = vpop.f32.mrb[54].mxu0 }
 0x884   : > { %4008 = vtanh.f32 %v2465_v44  ;;  %v2466_v63 = vadd.f32 %v3641_v13, %v3227_v38  ;;  %v2415_v9 = vpop.f32.mrb[55].mxu0  ;;  %v3232_v38 = vld [vmem:[%s5094_s11 + $0x360] sm:$0xff]  ;;  %v3235_v13 = vld [vmem:[%s5094_s11 + $0x378] sm:$0xff] }
 0x885   : > { %4010 = vtanh.f32 %v2463_v46  ;;  %v2464_v32 = vadd.f32 %v3225_v3, %v2415_v9 }
 0x886   : > { %4012 = vtanh.f32 %v2466_v63  ;;  %v4001_v11 = vpop.eup %4000 }
 0x887   : > { %4014 = vtanh.f32 %v2464_v32  ;;  %v4003_v8 = vpop.eup %4002  ;;  %v2493_v14 = vmul.f32 0.5, %v4001_v11 }
 0x888   : > { %v4005_v41 = vpop.eup %4004  ;;  %v2491_v63 = vmul.f32 0.5, %v4003_v8 }
 0x889   : > { %v3644_v16 = vpop.f32.mrb[56].mxu0  ;;  %v4007_v24 = vpop.eup %4006 }
 0x88a   : > { %v2469_v43 = vadd.f32 %v3644_v16, %v3230_v6  ;;  %v2428_v56 = vpop.f32.mrb[57].mxu0  ;;  %v2494_v16 = vmul.f32 0.5, %v4005_v41 }
 0x88b   : > { %v2467_v17 = vadd.f32 %v3228_v57, %v2428_v56  ;;  %v3645_v15 = vpop.f32.mrb[58].mxu0  ;;  %v3233_v57 = vld [vmem:[%s5094_s11 + $0x368] sm:$0xff] }
 0x88c   : > { %4016 = vtanh.f32 %v2469_v43  ;;  %v2470_v4 = vadd.f32 %v3645_v15, %v3231_v55  ;;  %v2431_v20 = vpop.f32.mrb[59].mxu0 }
 0x88d   : > { %4018 = vtanh.f32 %v2467_v17  ;;  %v2468_v1 = vadd.f32 %v3229_v34, %v2431_v20  ;;  %v2492_v34 = vmul.f32 0.5, %v4007_v24  ;;  %v2509_v20 = vadd.f32 0.5, %v2493_v14 }
 0x88e   : > { %v4009_v42 = vpop.eup %4008  ;;  %4020 = vtanh.f32 %v2470_v4 }
 0x88f   : > { %v4011_v18 = vpop.eup %4010  ;;  %v2497_v40 = vmul.f32 0.5, %v4009_v42  ;;  %4022 = vtanh.f32 %v2468_v1  ;;  %v2508_v24 = vadd.f32 0.5, %v2492_v34 }
 0x890   : > { %v4013_v45 = vpop.eup %4012  ;;  %v2495_v19 = vmul.f32 0.5, %v4011_v18  ;;  %v2507_v18 = vadd.f32 0.5, %v2491_v63 }
 0x891   : > { %v4015_v44 = vpop.eup %4014  ;;  %v2498_v3 = vmul.f32 0.5, %v4013_v45  ;;  %v3648_v46 = vpop.f32.mrb[60].mxu0  ;;  %v2513_v55 = vadd.f32 0.5, %v2497_v40  ;;  %v2510_v45 = vadd.f32 0.5, %v2494_v16 }
 0x892   : > { %v2496_v9 = vmul.f32 0.5, %v4015_v44  ;;  %v2473_v32 = vadd.f32 %v3648_v46, %v3234_v0  ;;  %v2444_v6 = vpop.f32.mrb[61].mxu0  ;;  %v2511_v17 = vadd.f32 0.5, %v2495_v19 }
 0x893   : > { %v2471_v43 = vadd.f32 %v3232_v38, %v2444_v6  ;;  %v3649_v56 = vpop.f32.mrb[62].mxu0  ;;  %v2514_v1 = vadd.f32 0.5, %v2498_v3  ;;  %v2525_v41 = vmul.f32 %v2513_v55, %v5427_v2 }
 0x894   : > { %4024 = vtanh.f32 %v2473_v32  ;;  %v2474_v15 = vadd.f32 %v3649_v56, %v3235_v13  ;;  %v2447_v4 = vpop.f32.mrb[63].mxu0  ;;  %v2512_v8 = vadd.f32 0.5, %v2496_v9  ;;  %v2523_v19 = vmul.f32 %v2511_v17, %v5430_v36 }
 0x895   : > { %4026 = vtanh.f32 %v2471_v43  ;;  %v2472_v11 = vadd.f32 %v3233_v57, %v2447_v4  ;;  %v2526_v14 = vmul.f32 %v2514_v1, %v5433_v7 }
 0x896   : > { %v4017_v42 = vpop.eup %4016  ;;  %4028 = vtanh.f32 %v2474_v15  ;;  %v2524_v63 = vmul.f32 %v2512_v8, %v5436_v35 }
 0x897   : > { %v4019_v0 = vpop.eup %4018  ;;  %v2529_v40 = vmul.f32 %v4017_v42, %v2509_v20  ;;  %4030 = vtanh.f32 %v2472_v11 }
 0x898   : > { %v4021_v38 = vpop.eup %4020  ;;  %v2527_v44 = vmul.f32 %v4019_v0, %v2507_v18 }
 0x899   : > { %v4023_v46 = vpop.eup %4022  ;;  %v5484_v3 = vadd.f32 %v2529_v40, %v2525_v41  ;;  %v2530_v13 = vmul.f32 %v4021_v38, %v2510_v45 }
 0x89a   : > { %v5487_v9 = vadd.f32 %v2527_v44, %v2523_v19  ;;  %v2528_v32 = vmul.f32 %v4023_v46, %v2508_v24 }
 0x89b   : > { %4032 = vtanh.f32 %v5484_v3  ;;  %v5490_v2 = vadd.f32 %v2530_v13, %v2526_v14 }
 0x89c   : > { %4034 = vtanh.f32 %v5487_v9  ;;  %v5493_v6 = vadd.f32 %v2528_v32, %v2524_v63 }
 0x89d   : > { %4036 = vtanh.f32 %v5490_v2 }
 0x89e   : > { %v4025_v36 = vpop.eup %4024  ;;  %4038 = vtanh.f32 %v5493_v6 }
 0x89f   : > { %v4027_v7 = vpop.eup %4026  ;;  %v2505_v57 = vmul.f32 0.5, %v4025_v36 }
 0x8a0   : > { %v4029_v16 = vpop.eup %4028  ;;  %v2503_v35 = vmul.f32 0.5, %v4027_v7 }
 0x8a1   : > { %v4031_v55 = vpop.eup %4030  ;;  %v2506_v43 = vmul.f32 0.5, %v4029_v16  ;;  %v2521_v56 = vadd.f32 0.5, %v2505_v57 }
 0x8a2   : > { %v2519_v34 = vadd.f32 0.5, %v2503_v35  ;;  %v2504_v17 = vmul.f32 0.5, %v4031_v55 }
 0x8a3   : > { %v2522_v20 = vadd.f32 0.5, %v2506_v43 }
 0x8a4   : > { %v2520_v11 = vadd.f32 0.5, %v2504_v17  ;;  %v3251_v17 = vld [vmem:[%s5094_s11 + $0x398] sm:$0xff] }
 0x8a5   : > { %v4033_v15 = vpop.eup %4032 }
 0x8a6   : > { %v4035_v4 = vpop.eup %4034  ;;  %v2541_v18 = vmul.f32 %v4033_v15, %v2521_v56 }
 0x8a7   : > { %v4037_v1 = vpop.eup %4036  ;;  %v2539_v42 = vmul.f32 %v4035_v4, %v2519_v34 }
 0x8a8   : > { %v4039_v8 = vpop.eup %4038  ;;  %v2542_v0 = vmul.f32 %v4037_v1, %v2522_v20  ;;  %v2545_v19 = vmul.f32 %v2541_v18, %v5130_v10  ;;  %v3249_v20 = vld [vmem:[%s5094_s11 + $0x388] sm:$0xff] }
 0x8a9   : > { %v2540_v45 = vmul.f32 %v4039_v8, %v2520_v11  ;;  %v2543_v41 = vmul.f32 %v2539_v42, %v5128_v53 }
 0x8aa   : > { %v2583_v40 = vpack.c.bf16 %v2542_v0, %v2541_v18  ;;  %v2546_v14 = vmul.f32 %v2542_v0, %v5135_v5  ;;  %v2550_v63 = vsel %vm456_vm0, %v2545_v19, 0.0  ;;  %v3254_v18 = vld [vmem:[%s5094_s11 + $0x3b0] sm:$0xff] }
 0x8ab   : > { %v2544_v38 = vmul.f32 %v2540_v45, %v5132_v39  ;;  %v2582_v24 = vpack.c.bf16 %v2540_v45, %v2539_v42  ;;  %v2547_v44 = vsel %vm456_vm0, %v2543_v41, 0.0  ;;  %v3253_v41 = vld [vmem:[%s5094_s11 + $0x3a8] sm:$0xff] }
 0x8ac   : > { %v2552_v36 = vsel %vm456_vm0, %v2546_v14, 0.0  ;;  %v3256_v14 = vld [vmem:[%s5094_s11 + $0x3c0] sm:$0xff] }
 0x8ad   : > { %v2548_v46 = vsel %vm456_vm0, %v2544_v38, 0.0  ;;  %3650 = vmatprep.subr.bf16.mxu1 %v2582_v24 }
 0x8ae   : > { %v2549_v13 = vadd.f32 %v2548_v46, %v2547_v44  ;;  %3651 = vmatpush3.bf16.msra.mxu1 %v2582_v24  ;;  %v3258_v46 = vld [vmem:[%s5094_s11 + $0x3d0] sm:$0xff] }
 0x8af   : > { %3652 = vmatprep.subr.bf16.mxu1 %v2583_v40 }
 0x8b0   : > { %v2551_v32 = vadd.f32 %v2550_v63, %v2549_v13  ;;  %v3259_v63 = vld [vmem:[%s5094_s11 + $0x3d8] sm:$0xff] }
 0x8b2   : > { %v2553_v7 = vadd.f32 %v2552_v36, %v2551_v32  ;;  %3653 = vmatpush3.bf16.msra.mxu1 %v2583_v40 }
 0x8b4   : > { %v2554_v57 = vrot.slane %v2553_v7, 4 }
 0x8b5   : > { %3655 = vmatmul.mubr.msk.bf16.vlgmr.msra.gmra.mrb[48].mxu1 %vm974_vm4, %v5047_v47  ;;  %v3250_v47 = vld [vmem:[%s5094_s11 + $0x390] sm:$0xff] }
 0x8b6   : > { %v2555_v16 = vadd.f32 %v2554_v57, %v2553_v7  ;;  %3658 = vmatprep.mubr.msk.bf16.mxu1 %vm974_vm4, %v5052_v48  ;;  %v3257_v57 = vld [vmem:[%s5094_s11 + $0x3c8] sm:$0xff] }
 0x8b8   : > { %v2556_v35 = vrot.slane %v2555_v16, 2 }
 0x8ba   : > { %v2557_v55 = vadd.f32 %v2556_v35, %v2555_v16 }
 0x8bc   : > { %v2558_v43 = vrot.slane %v2557_v55, 1 }
 0x8bd   : > { %3659 = vmatmul.mubr.msk.bf16.gmra.mrb[52].mxu1 %vm974_vm4, %v5062_v49  ;;  %v3248_v49 = vld [vmem:[%s5094_s11 + $0x380] sm:$0xff] }
 0x8be   : > { %v2559_v56 = vadd.f32 %v2558_v43, %v2557_v55  ;;  %3662 = vmatprep.mubr.msk.bf16.mxu1 %vm974_vm4, %v5067_v50 }
 0x8c0   : > { %v2560_v34 = vadd.f32 %v2559_v56, %v5150_v12 }
 0x8c2   : > { %3245 = vst.msk [vmem:[%s5159_s15 + $0x6] sm:$0x1] %vm1229_vm5, %v2560_v34 }
 0x8c5   : > { %3663 = vmatmul.mubr.msk.bf16.gmra.mrb[56].mxu1 %vm974_vm4, %v5075_v51 }
 0x8c6   : > { %3666 = vmatprep.mubr.msk.bf16.mxu1 %vm974_vm4, %v5079_v52  ;;  %v3252_v52 = vld [vmem:[%s5094_s11 + $0x3a0] sm:$0xff] }
 0x8cd   : > { %3667 = vmatmul.mubr.msk.bf16.gmra.mrb[60].mxu1 %vm974_vm4, %v5087_v54  ;;  %v3255_v54 = vld [vmem:[%s5094_s11 + $0x3b8] sm:$0xff] }
 0x988   : > { %v3656_v48 = vpop.f32.mrb[48].mxu1 }
 0x989   : > { %v2618_v50 = vpop.f32.mrb[49].mxu1  ;;  %v2683_v4 = vadd.f32 %v3656_v48, %v3250_v47 }
 0x98a   : > { %v3657_v15 = vpop.f32.mrb[50].mxu1  ;;  %v2681_v11 = vadd.f32 %v3248_v49, %v2618_v50 }
 0x98b   : > { %v2621_v1 = vpop.f32.mrb[51].mxu1  ;;  %v2684_v51 = vadd.f32 %v3657_v15, %v3251_v17  ;;  %4040 = vtanh.f32 %v2683_v4  ;;  %v3262_v15 = vld [vmem:[%s5094_s11 + $0x3f0] sm:$0xff] }
 0x98c   : > { %v2682_v42 = vadd.f32 %v3249_v20, %v2621_v1  ;;  %4042 = vtanh.f32 %v2681_v11  ;;  %v3260_v1 = vld [vmem:[%s5094_s11 + $0x3e0] sm:$0xff] }
 0x98d   : > { %4044 = vtanh.f32 %v2684_v51 }
 0x98e   : > { %4046 = vtanh.f32 %v2682_v42 }
 0x990   : > { %v3660_v8 = vpop.f32.mrb[52].mxu1 }
 0x991   : > { %v2687_v0 = vadd.f32 %v3660_v8, %v3254_v18  ;;  %v2634_v45 = vpop.f32.mrb[53].mxu1 }
 0x992   : > { %v2685_v40 = vadd.f32 %v3252_v52, %v2634_v45  ;;  %v3661_v38 = vpop.f32.mrb[54].mxu1  ;;  %v3263_v52 = vld [vmem:[%s5094_s11 + $0x3f8] sm:$0xff] }
 0x993   : > { %4048 = vtanh.f32 %v2687_v0  ;;  %v2688_v24 = vadd.f32 %v3661_v38, %v3255_v54  ;;  %v2637_v19 = vpop.f32.mrb[55].mxu1 }
 0x994   : > { %4050 = vtanh.f32 %v2685_v40  ;;  %v2686_v44 = vadd.f32 %v3253_v41, %v2637_v19  ;;  %v3261_v41 = vld [vmem:[%s5094_s11 + $0x3e8] sm:$0xff] }
 0x995   : > { %4052 = vtanh.f32 %v2688_v24  ;;  %v4041_v32 = vpop.eup %4040 }
 0x996   : > { %4054 = vtanh.f32 %v2686_v44  ;;  %v4043_v16 = vpop.eup %4042  ;;  %v2715_v51 = vmul.f32 0.5, %v4041_v32 }
 0x997   : > { %v4045_v43 = vpop.eup %4044  ;;  %v2713_v8 = vmul.f32 0.5, %v4043_v16 }
 0x998   : > { %v3664_v13 = vpop.f32.mrb[56].mxu1  ;;  %v4047_v47 = vpop.eup %4046  ;;  %v2716_v40 = vmul.f32 0.5, %v4045_v43 }
 0x999   : > { %v2691_v36 = vadd.f32 %v3664_v13, %v3258_v46  ;;  %v2650_v7 = vpop.f32.mrb[57].mxu1  ;;  %v2714_v44 = vmul.f32 0.5, %v4047_v47 }
 0x99a   : > { %v2689_v35 = vadd.f32 %v3256_v14, %v2650_v7  ;;  %v3665_v55 = vpop.f32.mrb[58].mxu1 }
 0x99b   : > { %4056 = vtanh.f32 %v2691_v36  ;;  %v2692_v56 = vadd.f32 %v3665_v55, %v3259_v63  ;;  %v2653_v34 = vpop.f32.mrb[59].mxu1  ;;  %v2731_v63 = vadd.f32 0.5, %v2715_v51  ;;  %v2732_v55 = vadd.f32 0.5, %v2716_v40 }
 0x99c   : > { %4058 = vtanh.f32 %v2689_v35  ;;  %v2690_v48 = vadd.f32 %v3257_v57, %v2653_v34  ;;  %v2729_v57 = vadd.f32 0.5, %v2713_v8  ;;  %v2730_v47 = vadd.f32 0.5, %v2714_v44 }
 0x99d   : > { %v4049_v49 = vpop.eup %4048  ;;  %4060 = vtanh.f32 %v2692_v56 }
 0x99e   : > { %v4051_v50 = vpop.eup %4050  ;;  %v2719_v17 = vmul.f32 0.5, %v4049_v49  ;;  %4062 = vtanh.f32 %v2690_v48 }
 0x99f   : > { %v4053_v4 = vpop.eup %4052  ;;  %v2717_v20 = vmul.f32 0.5, %v4051_v50 }
 0x9a0   : > { %v4055_v11 = vpop.eup %4054  ;;  %v2720_v42 = vmul.f32 0.5, %v4053_v4  ;;  %v3668_v18 = vpop.f32.mrb[60].mxu1  ;;  %v2735_v38 = vadd.f32 0.5, %v2719_v17 }
 0x9a1   : > { %v2718_v54 = vmul.f32 0.5, %v4055_v11  ;;  %v2695_v0 = vadd.f32 %v3668_v18, %v3262_v15  ;;  %v2666_v45 = vpop.f32.mrb[61].mxu1  ;;  %v2733_v46 = vadd.f32 0.5, %v2717_v20 }
 0x9a2   : > { %v2693_v24 = vadd.f32 %v3260_v1, %v2666_v45  ;;  %v3669_v19 = vpop.f32.mrb[62].mxu1  ;;  %v2736_v36 = vadd.f32 0.5, %v2720_v42  ;;  %v2747_v43 = vmul.f32 %v2735_v38, %v5484_v3 }
 0x9a3   : > { %4064 = vtanh.f32 %v2695_v0  ;;  %v2696_v14 = vadd.f32 %v3669_v19, %v3263_v52  ;;  %v2669_v13 = vpop.f32.mrb[63].mxu1  ;;  %v2734_v16 = vadd.f32 0.5, %v2718_v54  ;;  %v2745_v48 = vmul.f32 %v2733_v46, %v5487_v9 }
 0x9a4   : > { %4066 = vtanh.f32 %v2693_v24  ;;  %v2694_v32 = vadd.f32 %v3261_v41, %v2669_v13  ;;  %v2748_v17 = vmul.f32 %v2736_v36, %v5490_v2 }
 0x9a5   : > { %v4057_v7 = vpop.eup %4056  ;;  %4068 = vtanh.f32 %v2696_v14  ;;  %v2746_v4 = vmul.f32 %v2734_v16, %v5493_v6 }
 0x9a6   : > { %v4059_v35 = vpop.eup %4058  ;;  %v2751_v56 = vmul.f32 %v4057_v7, %v2731_v63  ;;  %4070 = vtanh.f32 %v2694_v32 }
 0x9a7   : > { %v4061_v34 = vpop.eup %4060  ;;  %v2749_v49 = vmul.f32 %v4059_v35, %v2729_v57 }
 0x9a8   : > { %v4063_v50 = vpop.eup %4062  ;;  %v2755_v38 = vadd.f32 %v2751_v56, %v2747_v43   ;;  %v2752_v15 = vmul.f32 %v4061_v34, %v2732_v55 }
 0x9a9   : > { %v2753_v7 = vadd.f32 %v2749_v49, %v2745_v48   ;;  %v2750_v20 = vmul.f32 %v4063_v50, %v2730_v47 }
 0x9aa   : > { %4072 = vtanh.f32 %v2755_v38  ;;  %v2756_v15 = vadd.f32 %v2752_v15, %v2748_v17  }
 0x9ab   : > { %4074 = vtanh.f32 %v2753_v7  ;;  %v2754_v14 = vadd.f32 %v2750_v20, %v2746_v4  }
 0x9ac   : > { %4076 = vtanh.f32 %v2756_v15 }
 0x9ad   : > { %v4065_v3 = vpop.eup %4064  ;;  %4078 = vtanh.f32 %v2754_v14 }
 0x9ae   : > { %v4067_v1 = vpop.eup %4066  ;;  %v2727_v11 = vmul.f32 0.5, %v4065_v3 }
 0x9af   : > { %v4069_v9 = vpop.eup %4068  ;;  %v2725_v51 = vmul.f32 0.5, %v4067_v1 }
 0x9b0   : > { %v4071_v42 = vpop.eup %4070  ;;  %v2743_v18 = vadd.f32 0.5, %v2727_v11  ;;  %v2728_v2 = vmul.f32 0.5, %v4069_v9 }
 0x9b1   : > { %v2741_v52 = vadd.f32 0.5, %v2725_v51  ;;  %v2726_v8 = vmul.f32 0.5, %v4071_v42 }
 0x9b2   : > { %v2744_v45 = vadd.f32 0.5, %v2728_v2 }
 0x9b3   : > { %v2742_v24 = vadd.f32 0.5, %v2726_v8 }
 0x9b4   : > { %v4073_v54 = vpop.eup %4072 }
 0x9b5   : > { %v4075_v6 = vpop.eup %4074  ;;  %v2763_v0 = vmul.f32 %v4073_v54, %v2743_v18  }
 0x9b6   : > { %v4077_v41 = vpop.eup %4076  ;;  %v2761_v40 = vmul.f32 %v4075_v6, %v2741_v52  }
 0x9b7   : > { %v4079_v19 = vpop.eup %4078  ;;  %v2764_v44 = vmul.f32 %v4077_v41, %v2744_v45   ;;  %v2767_v13 = vmul.f32 %v2763_v0, %v5130_v10  ;;  %v5675_v42 = vmov %v2763_v0  ;;  %2788 = vst.msk [vmem:[#allocation4 + $0x10] sm:$0xff] (%p901_p1), %vm456_vm0, %v2763_v0 }
 0x9b8   : > { %v2765_v46 = vmul.f32 %v2761_v40, %v5128_v53  ;;  %v2762_v63 = vmul.f32 %v4079_v19, %v2742_v24   ;;  %v5677_v6 = vmov %v2761_v40  ;;  %2786 = vst.msk [vmem:[#allocation4] sm:$0xff] (%p901_p1), %vm456_vm0, %v2761_v40 }
 0x9b9   : > { %v2768_v57 = vmul.f32 %v2764_v44, %v5135_v5  ;;  %v2772_v55 = vsel %vm456_vm0, %v2767_v13, 0.0  ;;  %v5674_v13 = vmov %v2764_v44  ;;  %2789 = vst.msk [vmem:[#allocation4 + $0x18] sm:$0xff] (%p901_p1), %vm456_vm0, %v2764_v44 }
 0x9ba   : > { %v2766_v36 = vmul.f32 %v2762_v63, %v5132_v39  ;;  %v2769_v32 = vsel %vm456_vm0, %v2765_v46, 0.0  ;;  %2787 = vst.msk [vmem:[#allocation4 + $0x8] sm:$0xff] (%p901_p1), %vm456_vm0, %v2762_v63 }
 0x9bb   : > { %v2774_v56 = vsel %vm456_vm0, %v2768_v57, 0.0 }
 0x9bc   : > { %v2770_v16 = vsel %vm456_vm0, %v2766_v36, 0.0 }
 0x9bd   : > { %v2771_v35 = vadd.f32 %v2770_v16, %v2769_v32 }
 0x9bf   : > { %v2773_v43 = vadd.f32 %v2772_v55, %v2771_v35  ;;  %v5676_v35 = vmov %v2762_v63 }
 0x9c1   : > { %v2775_v34 = vadd.f32 %v2774_v56, %v2773_v43 }
 0x9c3   : > { %v2776_v53 = vrot.slane %v2775_v34, 4 }
 0x9c5   : > { %v2777_v47 = vadd.f32 %v2776_v53, %v2775_v34 }
 0x9c7   : > { %v2778_v48 = vrot.slane %v2777_v47, 2 }
 0x9c9   : > { %v2779_v10 = vadd.f32 %v2778_v48, %v2777_v47 }
 0x9cb   : > { %v2780_v49 = vrot.slane %v2779_v10, 1  ;;  %903 = sbr.rel (!%p901_p1) target bundleno = 322 (0x142), region = 101 }
 0x9cd   : > { %v2781_v39 = vadd.f32 %v2780_v49, %v2779_v10 }
 0x9cf   : > { %v2782_v50 = vadd.f32 %v2781_v39, %v5150_v12 }
 0x9d1   : > { %3273 = vst.msk [vmem:[%s5159_s15 + $0x7] sm:$0x1] %vm1229_vm5, %v2782_v50 }
 0x9d2   :  { %4091 = shalt.err (!%p4088_p6)
}
 0x9d3   :  { %s4092_s6 = scalar_lea.hbm %s5595_s7, 512 }
 0x9d4   :  { %p4093_p7 = scmp.ne.s32.totalorder %s5595_s7, %s4092_s6  ;;  %p4096_p8 = scmp.lt.u32.totalorder %s4092_s6, %s5595_s7 }
 0x9d6   :  { %p4098_p9 = pnand %p4096_p8, %p4093_p7 }
 0x9d8   :  { %4101 = shalt.err (!%p4098_p9)
}
 0x9d9   :  { %s4188_s23 = smov 128   ;;  %s4189_s24 = smov 8  }
 0x9da   :  { %2803 = dma.vmem_to_hbm [thread:$0]  %s2798_s17, 512, %s5595_s7, [#allocation5], %s4188_s23, %s4188_s23, %s4189_s24  }
 0x9db   :  { %4142 = dma.done.wait [#allocation5], 512  }
 0x9dc   :  { %4143 = vsyncadd [#allocation5], 4294966784 }
 0x9dd   :  { %2809 = vsyncpa [#allocation5], 1 }

</bundles_post_ra>
